<compile_context>
chip_gen: v6e
topology: v6e:2x2x1
jax: 0.10.0
libtpu: 0.0.40
codegen_flags: <defaults>
</compile_context>

<pallas_src>
import functools

import jax
import jax.numpy as jnp
import numpy as np
from jax import lax
from jax.experimental import pallas as pl
from jax.experimental.pallas import tpu as pltpu

EPS = 1e-5     # PyTorch BatchNorm2d default eps
LANE = 128     # TPU lane width: channel (last) dims kept lane-dense


def _rup(x, m):
    return (x + m - 1) // m * m


def _vmem_limit_bytes():
    """~3/4 of physical VMEM, capped at 100 MiB (v5e/v6e ~96 MiB, v7x ~48 MiB)."""
    try:
        cap = int(pltpu.get_tpu_info().vmem_capacity_bytes)
    except Exception:
        cap = 64 * 1024 * 1024
    return int(min(100 * 1024 * 1024, (cap * 3) // 4))


_VMEM_LIMIT = _vmem_limit_bytes()


# --------------------------------------------------------------------------- #
# Kernels                                                                      #
# --------------------------------------------------------------------------- #
def _conv1x1_stats_kernel(x_ref, w_ref, h_ref, st_ref):
    """h = x @ w (1x1 conv over channels) + per-tile per-channel sum / sumsq."""
    _, TH, W, Ci = x_ref.shape
    Co = w_ref.shape[1]
    M = TH * W
    h = jnp.dot(x_ref[...].reshape(M, Ci), w_ref[...],
                preferred_element_type=jnp.float32)
    h_ref[...] = h.astype(h_ref.dtype).reshape(1, TH, W, Co)
    st_ref[:, :, 0:1, :] = jnp.sum(h, axis=0).reshape(1, 1, 1, Co)
    st_ref[:, :, 1:2, :] = jnp.sum(h * h, axis=0).reshape(1, 1, 1, Co)


def _bn_relu_conv3x3_kernel(h1_ref, sc_ref, sh_ref, w2_ref, h2_ref, st_ref):
    """a = relu(h1*scale+shift); h2 = conv3x3(a, pad=1); + stat partials.

    The three kw taps are fused into one K=3*C matmul per kh (weights prepacked
    as (3, 3C, C)); the three kh matmuls accumulate into jnp values — no VMEM
    accumulator read-modify-write, single store of h2.
    """
    _, H, W, C = h1_ref.shape
    M = H * W

    a = jnp.maximum(h1_ref[...].reshape(M, C).astype(jnp.float32)
                    * sc_ref[...] + sh_ref[...], 0.0)
    a4 = a.astype(jnp.bfloat16).reshape(1, H, W, C)

    # W-shifted copies (zero boundary), done ONCE; channel concat -> K = 3*C.
    zc = jnp.zeros((1, H, 1, C), jnp.bfloat16)
    xm1 = jnp.concatenate([zc, a4[:, :, :W - 1, :]], axis=2)   # input column x-1 (kw=0)
    xp1 = jnp.concatenate([a4[:, :, 1:, :], zc], axis=2)       # input column x+1 (kw=2)
    wcat = jnp.concatenate([xm1, a4, xp1], axis=3)             # (1, H, W, 3C)
    zr = jnp.zeros((1, 1, W, 3 * C), jnp.bfloat16)
    wcat_p = jnp.concatenate([zr, wcat, zr], axis=1)           # (1, H+2, W, 3C)

    h2 = jnp.dot(wcat_p[:, 0:H].reshape(M, 3 * C), w2_ref[0],
                 preferred_element_type=jnp.float32)
    h2 = h2 + jnp.dot(wcat_p[:, 1:H + 1].reshape(M, 3 * C), w2_ref[1],
                      preferred_element_type=jnp.float32)
    h2 = h2 + jnp.dot(wcat_p[:, 2:H + 2].reshape(M, 3 * C), w2_ref[2],
                      preferred_element_type=jnp.float32)

    h2_ref[...] = h2.astype(h2_ref.dtype).reshape(1, H, W, C)
    st_ref[:, 0:1, :] = jnp.sum(h2, axis=0).reshape(1, 1, C)
    st_ref[:, 1:2, :] = jnp.sum(h2 * h2, axis=0).reshape(1, 1, C)


def _bn_relu_conv1x1_kernel(h2_ref, sc_ref, sh_ref, w_ref, h3_ref, st_ref):
    """a = relu(h2*scale+shift); h3 = a @ w (1x1 conv); + stat partials."""
    _, TH, W, C = h2_ref.shape
    Co = w_ref.shape[1]
    M = TH * W
    a = jnp.maximum(h2_ref[...].reshape(M, C).astype(jnp.float32)
                    * sc_ref[...] + sh_ref[...], 0.0)
    h3 = jnp.dot(a.astype(jnp.bfloat16), w_ref[...],
                 preferred_element_type=jnp.float32)
    h3_ref[...] = h3.astype(h3_ref.dtype).reshape(1, TH, W, Co)
    st_ref[:, :, 0:1, :] = jnp.sum(h3, axis=0).reshape(1, 1, 1, Co)
    st_ref[:, :, 1:2, :] = jnp.sum(h3 * h3, axis=0).reshape(1, 1, 1, Co)


def _bn_add_relu_kernel(h3_ref, sc_ref, sh_ref, x_ref, o_ref, *, c_out):
    """out = relu(h3*scale + shift + identity); channel slice fused here."""
    _, TH, W, Cp = h3_ref.shape
    M = TH * W
    y = h3_ref[...].reshape(M, Cp).astype(jnp.float32) * sc_ref[...] + sh_ref[...]
    y = y[:, :c_out] + x_ref[...].reshape(M, c_out)
    o_ref[...] = jnp.maximum(y, 0.0).reshape(1, TH, W, c_out)


# --------------------------------------------------------------------------- #
# Wrapper                                                                      #
# --------------------------------------------------------------------------- #
def _bn_scale_shift(stats, count, gamma, beta):
    """Exact cross-tile BN reduction + fused affine (tiny per-channel XLA math)."""
    st = stats.reshape(-1, 2, stats.shape[-1])
    s = jnp.sum(st[:, 0, :], axis=0)
    ss = jnp.sum(st[:, 1, :], axis=0)
    mean = s / count
    var = jnp.maximum(ss / count - mean * mean, 0.0)   # biased var (training-mode norm)
    scale = gamma * lax.rsqrt(var + EPS)
    shift = beta - mean * scale
    return scale[None, :], shift[None, :]


@jax.jit
def bottleneck_forward(x_nchw, params):
    """BottleNeck forward (stride=1, downsample=None). x_nchw: (N, Cin, H, W) f32."""
    w1_t, w2_t, w3_t, g1, b1, g2, b2, g3, b3 = params
    N, Cin, H, W = x_nchw.shape
    Cmid = w1_t.shape[0]
    Cout = w3_t.shape[0]
    assert Cin == Cout, "identity path requires in_channels == out_channels * 4"

    Cin_p, Cmid_p, Cout_p = (_rup(c, LANE) for c in (Cin, Cmid, Cout))
    count = N * H * W
    TH = 8 if (H % 8 == 0 and H > 8) else H      # spatial tile for stages 1/3/4
    NH = H // TH

    # ---- layout prep (XLA): NCHW -> NHWC, lane-pad channels, bf16 operands ----
    x_nhwc = jnp.transpose(x_nchw, (0, 2, 3, 1)).astype(jnp.float32)   # residual (f32)
    x_p = jnp.pad(x_nhwc, ((0, 0), (0, 0), (0, 0), (0, Cin_p - Cin))).astype(jnp.bfloat16)

    w1 = jnp.pad(w1_t.T, ((0, Cin_p - Cin), (0, Cmid_p - Cmid))).astype(jnp.bfloat16)
    # (O,I,kh,kw) -> (kh,kw,I,O), pad channels, then (kh, 3*I_p, O_p): kw-major
    # rows match the in-kernel [x-1 | x | x+1] channel concatenation order.
    w2 = jnp.transpose(w2_t, (2, 3, 1, 0))
    w2 = jnp.pad(w2, ((0, 0), (0, 0), (0, Cmid_p - Cmid), (0, Cmid_p - Cmid)))
    w2 = w2.reshape(3, 3 * Cmid_p, Cmid_p).astype(jnp.bfloat16)
    w3 = jnp.pad(w3_t.T, ((0, Cmid_p - Cmid), (0, Cout_p - Cout))).astype(jnp.bfloat16)

    def pad1(v, cp):
        return jnp.pad(v.reshape(-1).astype(jnp.float32), (0, cp - v.size))
    g1p, b1p = pad1(g1, Cmid_p), pad1(b1, Cmid_p)
    g2p, b2p = pad1(g2, Cmid_p), pad1(b2, Cmid_p)
    g3p, b3p = pad1(g3, Cout_p), pad1(b3, Cout_p)

    cp2 = pltpu.CompilerParams(dimension_semantics=("parallel", "parallel"),
                               vmem_limit_bytes=_VMEM_LIMIT)
    cp1 = pltpu.CompilerParams(dimension_semantics=("parallel",),
                               vmem_limit_bytes=_VMEM_LIMIT)

    act2 = lambda C: pl.BlockSpec((1, TH, W, C), lambda n, t: (n, t, 0, 0))
    act1 = lambda C: pl.BlockSpec((1, H, W, C), lambda n: (n, 0, 0, 0))
    stat2 = lambda C: pl.BlockSpec((1, 1, 2, C), lambda n, t: (n, t, 0, 0))
    stat1 = lambda C: pl.BlockSpec((1, 2, C), lambda n: (n, 0, 0))
    full2 = lambda *s: pl.BlockSpec(s, lambda n, t: (0,) * len(s))
    full1 = lambda *s: pl.BlockSpec(s, lambda n: (0,) * len(s))

    # ---- stage 1: conv1 (1x1) + stat partials --------------------------------
    h1, st1 = pl.pallas_call(
        _conv1x1_stats_kernel,
        grid=(N, NH),
        in_specs=[act2(Cin_p), full2(Cin_p, Cmid_p)],
        out_specs=(act2(Cmid_p), stat2(Cmid_p)),
        out_shape=(jax.ShapeDtypeStruct((N, H, W, Cmid_p), jnp.bfloat16),
                   jax.ShapeDtypeStruct((N, NH, 2, Cmid_p), jnp.float32)),
        compiler_params=cp2,
        cost_estimate=pl.CostEstimate(
            flops=2 * count * Cin_p * Cmid_p, transcendentals=0,
            bytes_accessed=2 * count * (Cin_p + Cmid_p) + 2 * Cin_p * Cmid_p),
    )(x_p, w1)
    sc1, sh1 = _bn_scale_shift(st1, count, g1p, b1p)

    # ---- stage 2: bn1 + relu + conv2 (3x3, pad=1) + stat partials ------------
    h2, st2 = pl.pallas_call(
        _bn_relu_conv3x3_kernel,
        grid=(N,),
        in_specs=[act1(Cmid_p), full1(1, Cmid_p), full1(1, Cmid_p),
                  full1(3, 3 * Cmid_p, Cmid_p)],
        out_specs=(act1(Cmid_p), stat1(Cmid_p)),
        out_shape=(jax.ShapeDtypeStruct((N, H, W, Cmid_p), jnp.bfloat16),
                   jax.ShapeDtypeStruct((N, 2, Cmid_p), jnp.float32)),
        compiler_params=cp1,
        cost_estimate=pl.CostEstimate(
            flops=2 * count * 9 * Cmid_p * Cmid_p, transcendentals=0,
            bytes_accessed=4 * count * Cmid_p + 2 * 9 * Cmid_p * Cmid_p),
    )(h1, sc1, sh1, w2)
    sc2, sh2 = _bn_scale_shift(st2, count, g2p, b2p)

    # ---- stage 3: bn2 + relu + conv3 (1x1) + stat partials -------------------
    h3, st3 = pl.pallas_call(
        _bn_relu_conv1x1_kernel,
        grid=(N, NH),
        in_specs=[act2(Cmid_p), full2(1, Cmid_p), full2(1, Cmid_p),
                  full2(Cmid_p, Cout_p)],
        out_specs=(act2(Cout_p), stat2(Cout_p)),
        out_shape=(jax.ShapeDtypeStruct((N, H, W, Cout_p), jnp.bfloat16),
                   jax.ShapeDtypeStruct((N, NH, 2, Cout_p), jnp.float32)),
        compiler_params=cp2,
        cost_estimate=pl.CostEstimate(
            flops=2 * count * Cmid_p * Cout_p, transcendentals=0,
            bytes_accessed=2 * count * (Cmid_p + Cout_p) + 2 * Cmid_p * Cout_p),
    )(h2, sc2, sh2, w3)
    sc3, sh3 = _bn_scale_shift(st3, count, g3p, b3p)

    # ---- stage 4: bn3 + residual add + relu (unpadded-channel output) --------
    xr_spec = pl.BlockSpec((1, TH, W, Cin), lambda n, t: (n, t, 0, 0))
    out_spec = pl.BlockSpec((1, TH, W, Cout), lambda n, t: (n, t, 0, 0))
    out = pl.pallas_call(
        functools.partial(_bn_add_relu_kernel, c_out=Cout),
        grid=(N, NH),
        in_specs=[act2(Cout_p), full2(1, Cout_p), full2(1, Cout_p), xr_spec],
        out_specs=out_spec,
        out_shape=jax.ShapeDtypeStruct((N, H, W, Cout), jnp.float32),
        compiler_params=cp2,
        cost_estimate=pl.CostEstimate(
            flops=3 * count * Cout_p, transcendentals=0,
            bytes_accessed=2 * count * Cout_p + 8 * count * Cout),
    )(h3, sc3, sh3, x_nhwc)

    return jnp.transpose(out, (0, 3, 1, 2))    # NHWC (unpadded) -> NCHW


# --------------------------------------------------------------------------- #
# Parameters + pure-JAX reference                                              #
# --------------------------------------------------------------------------- #
def init_params(key, in_channels, out_channels):
    """Deterministic synthetic parameters (PyTorch weight layouts)."""
    expansion = 4
    ks = jax.random.split(key, 9)
    w1 = 0.1 * jax.random.normal(ks[0], (out_channels, in_channels), jnp.float32)
    w2 = 0.1 * jax.random.normal(ks[1], (out_channels, out_channels, 3, 3), jnp.float32)
    w3 = 0.1 * jax.random.normal(ks[2], (out_channels * expansion, out_channels), jnp.float32)
    g1 = jax.random.uniform(ks[3], (out_channels,), jnp.float32, 0.5, 1.5)
    b1 = 0.1 * jax.random.normal(ks[4], (out_channels,), jnp.float32)
    g2 = jax.random.uniform(ks[5], (out_channels,), jnp.float32, 0.5, 1.5)
    b2 = 0.1 * jax.random.normal(ks[6], (out_channels,), jnp.float32)
    g3 = jax.random.uniform(ks[7], (out_channels * expansion,), jnp.float32, 0.5, 1.5)
    b3 = 0.1 * jax.random.normal(ks[8], (out_channels * expansion,), jnp.float32)
    return (w1, w2, w3, g1, b1, g2, b2, g3, b3)


def bottleneck_ref(x_nchw, params):
    """Pure-JAX f32 reference (same math, standard ops)."""
    w1_t, w2_t, w3_t, g1, b1, g2, b2, g3, b3 = params
    x = jnp.transpose(x_nchw, (0, 2, 3, 1)).astype(jnp.float32)

    def bn(h, g, b):
        mu = h.mean(axis=(0, 1, 2), keepdims=True)
        var = ((h - mu) ** 2).mean(axis=(0, 1, 2), keepdims=True)
        return (h - mu) * lax.rsqrt(var + EPS) * g.reshape(1, 1, 1, -1) + b.reshape(1, 1, 1, -1)

    h = jnp.einsum('nhwc,oc->nhwo', x, w1_t)
    h = jax.nn.relu(bn(h, g1, b1))
    h = lax.conv_general_dilated(
        h, jnp.transpose(w2_t, (2, 3, 1, 0)), (1, 1), ((1, 1), (1, 1)),
        dimension_numbers=('NHWC', 'HWIO', 'NHWC'))
    h = jax.nn.relu(bn(h, g2, b2))
    h = jnp.einsum('nhwc,oc->nhwo', h, w3_t)
    h = bn(h, g3, b3)
    out = jax.nn.relu(h + x)
    return jnp.transpose(out, (0, 3, 1, 2))


if __name__ == "__main__":
    key = jax.random.PRNGKey(0)
    kx, kp = jax.random.split(key)

    N, Cmid, H, W = 2, 4, 16, 16
    Cin = Cmid * 4            # expansion=4; stride=1, downsample=None => Cin == Cout
    x = jax.random.normal(kx, (N, Cin, H, W), jnp.float32)

    params = init_params(kp, Cin, Cmid)

    out = jax.block_until_ready(bottleneck_forward(x, params))
    ref = bottleneck_ref(x, params)

    assert out.shape == (N, Cin, H, W)
    err = float(np.max(np.abs(np.asarray(out) - np.asarray(ref))))
    assert np.allclose(np.asarray(out), np.asarray(ref), atol=5e-2, rtol=5e-2), err
    print("KERNEL_OK")
</pallas_src>

<mosaic_0001>
module attributes {stable_mosaic.version = 11 : i64} {
  func.func @_conv1x1_stats_kernel(%arg0: i32, %arg1: i32, %arg2: memref<1x8x16x128xbf16, #tpu.memory_space<vmem>>, %arg3: memref<128x128xbf16, #tpu.memory_space<vmem>>, %arg4: memref<1x8x16x128xbf16, #tpu.memory_space<vmem>>, %arg5: memref<1x1x2x128xf32, #tpu.memory_space<vmem>>) attributes {dimension_semantics = [#tpu.dimension_semantics<parallel>, #tpu.dimension_semantics<parallel>], iteration_bounds = array<i64: 2, 2>, scalar_prefetch = 0 : i64, scratch_operands = 0 : i64, tpu.core_type = #tpu.core_type<tc>, window_params = [{transform_indices = @transform_0, window_bounds = array<i64: 1, 8, 16, 128>}, {pipeline_mode = #tpu.pipeline_mode<synchronous>, transform_indices = @transform_1, window_bounds = array<i64: 128, 128>}, {transform_indices = @transform_2, window_bounds = array<i64: 1, 8, 16, 128>}, {transform_indices = @transform_3, window_bounds = array<i64: 1, 1, 2, 128>}]} {
    %c0 = arith.constant 0 : index
    %c0_0 = arith.constant 0 : index
    %c0_1 = arith.constant 0 : index
    %c0_2 = arith.constant 0 : index
    %0 = vector.load %arg2[%c0, %c0_0, %c0_1, %c0_2] : memref<1x8x16x128xbf16, #tpu.memory_space<vmem>>, vector<1x8x16x128xbf16>
    %1 = vector.shape_cast %0 : vector<1x8x16x128xbf16> to vector<128x128xbf16>
    %c0_3 = arith.constant 0 : index
    %c0_4 = arith.constant 0 : index
    %2 = vector.load %arg3[%c0_3, %c0_4] : memref<128x128xbf16, #tpu.memory_space<vmem>>, vector<128x128xbf16>
    %cst = arith.constant dense<0.000000e+00> : vector<128x128xf32>
    %3 = tpu.matmul %1, %2, %cst {dimension_numbers = #tpu.dot_dimension_numbers<[1], [0], [0], [1], [0, 0, 1, 1], [], []>} : vector<128x128xbf16>, vector<128x128xbf16>, vector<128x128xf32> -> vector<128x128xf32>
    %4 = arith.truncf %3 : vector<128x128xf32> to vector<128x128xbf16>
    %5 = vector.shape_cast %4 : vector<128x128xbf16> to vector<1x8x16x128xbf16>
    %c0_5 = arith.constant 0 : index
    %c0_6 = arith.constant 0 : index
    %c0_7 = arith.constant 0 : index
    %c0_8 = arith.constant 0 : index
    %6 = vector.load %arg4[%c0_5, %c0_6, %c0_7, %c0_8] : memref<1x8x16x128xbf16, #tpu.memory_space<vmem>>, vector<1x8x16x128xbf16>
    tpu.vector_store %arg4[%c0_5, %c0_6, %c0_7, %c0_8], %5 {strides = array<i32>} : memref<1x8x16x128xbf16, #tpu.memory_space<vmem>>, vector<1x8x16x128xbf16>,
    %cst_9 = arith.constant dense<0.000000e+00> : vector<128xf32>
    %7 = vector.multi_reduction <add>, %3, %cst_9 [0] : vector<128x128xf32> to vector<128xf32>
    %8 = vector.shape_cast %7 : vector<128xf32> to vector<1x1x1x128xf32>
    %c0_10 = arith.constant 0 : index
    %c0_11 = arith.constant 0 : index
    %c0_12 = arith.constant 0 : index
    %c0_13 = arith.constant 0 : index
    %9 = vector.load %arg5[%c0_10, %c0_11, %c0_12, %c0_13] : memref<1x1x2x128xf32, #tpu.memory_space<vmem>>, vector<1x1x1x128xf32>
    tpu.vector_store %arg5[%c0_10, %c0_11, %c0_12, %c0_13], %8 {strides = array<i32>} : memref<1x1x2x128xf32, #tpu.memory_space<vmem>>, vector<1x1x1x128xf32>,
    %10 = arith.mulf %3, %3 : vector<128x128xf32>
    %cst_14 = arith.constant dense<0.000000e+00> : vector<128xf32>
    %11 = vector.multi_reduction <add>, %10, %cst_14 [0] : vector<128x128xf32> to vector<128xf32>
    %12 = vector.shape_cast %11 : vector<128xf32> to vector<1x1x1x128xf32>
    %c0_15 = arith.constant 0 : index
    %c0_16 = arith.constant 0 : index
    %c1 = arith.constant 1 : index
    %c0_17 = arith.constant 0 : index
    %13 = vector.load %arg5[%c0_15, %c0_16, %c1, %c0_17] : memref<1x1x2x128xf32, #tpu.memory_space<vmem>>, vector<1x1x1x128xf32>
    tpu.vector_store %arg5[%c0_15, %c0_16, %c1, %c0_17], %12 {strides = array<i32>} : memref<1x1x2x128xf32, #tpu.memory_space<vmem>>, vector<1x1x1x128xf32>,
    return
  }
  func.func @transform_0(%arg0: i32, %arg1: i32) -> (i32, i32, i32, i32) {
    %c0_i32 = arith.constant 0 : i32
    %c0_i32_0 = arith.constant 0 : i32
    %c0_i32_1 = arith.constant 0 : i32
    return %arg0, %arg1, %c0_i32, %c0_i32_0 : i32, i32, i32, i32
  }
  func.func @transform_1(%arg0: i32, %arg1: i32) -> (i32, i32) {
    %c0_i32 = arith.constant 0 : i32
    %c0_i32_0 = arith.constant 0 : i32
    %c0_i32_1 = arith.constant 0 : i32
    return %c0_i32, %c0_i32_0 : i32, i32
  }
  func.func @transform_2(%arg0: i32, %arg1: i32) -> (i32, i32, i32, i32) {
    %c0_i32 = arith.constant 0 : i32
    %c0_i32_0 = arith.constant 0 : i32
    %c0_i32_1 = arith.constant 0 : i32
    return %arg0, %arg1, %c0_i32, %c0_i32_0 : i32, i32, i32, i32
  }
  func.func @transform_3(%arg0: i32, %arg1: i32) -> (i32, i32, i32, i32) {
    %c0_i32 = arith.constant 0 : i32
    %c0_i32_0 = arith.constant 0 : i32
    %c0_i32_1 = arith.constant 0 : i32
    return %arg0, %arg1, %c0_i32, %c0_i32_0 : i32, i32, i32, i32
  }
}

module attributes {stable_mosaic.version = 11 : i64} {
  func.func @_bn_relu_conv3x3_kernel(%arg0: i32, %arg1: memref<1x16x16x128xbf16, #tpu.memory_space<vmem>>, %arg2: memref<1x128xf32, #tpu.memory_space<vmem>>, %arg3: memref<1x128xf32, #tpu.memory_space<vmem>>, %arg4: memref<3x384x128xbf16, #tpu.memory_space<vmem>>, %arg5: memref<1x16x16x128xbf16, #tpu.memory_space<vmem>>, %arg6: memref<1x2x128xf32, #tpu.memory_space<vmem>>) attributes {dimension_semantics = [#tpu.dimension_semantics<parallel>], iteration_bounds = array<i64: 2>, scalar_prefetch = 0 : i64, scratch_operands = 0 : i64, tpu.core_type = #tpu.core_type<tc>, window_params = [{transform_indices = @transform_0, window_bounds = array<i64: 1, 16, 16, 128>}, {pipeline_mode = #tpu.pipeline_mode<synchronous>, transform_indices = @transform_1, window_bounds = array<i64: 1, 128>}, {pipeline_mode = #tpu.pipeline_mode<synchronous>, transform_indices = @transform_2, window_bounds = array<i64: 1, 128>}, {pipeline_mode = #tpu.pipeline_mode<synchronous>, transform_indices = @transform_3, window_bounds = array<i64: 3, 384, 128>}, {transform_indices = @transform_4, window_bounds = array<i64: 1, 16, 16, 128>}, {transform_indices = @transform_5, window_bounds = array<i64: 1, 2, 128>}]} {
    %c0 = arith.constant 0 : index
    %c0_0 = arith.constant 0 : index
    %c0_1 = arith.constant 0 : index
    %c0_2 = arith.constant 0 : index
    %0 = vector.load %arg1[%c0, %c0_0, %c0_1, %c0_2] : memref<1x16x16x128xbf16, #tpu.memory_space<vmem>>, vector<1x16x16x128xbf16>
    %1 = vector.shape_cast %0 : vector<1x16x16x128xbf16> to vector<256x128xbf16>
    %2 = arith.extf %1 : vector<256x128xbf16> to vector<256x128xf32>
    %c0_3 = arith.constant 0 : index
    %c0_4 = arith.constant 0 : index
    %3 = vector.load %arg2[%c0_3, %c0_4] : memref<1x128xf32, #tpu.memory_space<vmem>>, vector<1x128xf32>
    %4 = vector.broadcast %3 : vector<1x128xf32> to vector<256x128xf32>
    %5 = arith.mulf %2, %4 : vector<256x128xf32>
    %c0_5 = arith.constant 0 : index
    %c0_6 = arith.constant 0 : index
    %6 = vector.load %arg3[%c0_5, %c0_6] : memref<1x128xf32, #tpu.memory_space<vmem>>, vector<1x128xf32>
    %7 = vector.broadcast %6 : vector<1x128xf32> to vector<256x128xf32>
    %8 = arith.addf %5, %7 : vector<256x128xf32>
    %cst = arith.constant 0.000000e+00 : f32
    %9 = vector.broadcast %cst : f32 to vector<256x128xf32>
    %10 = arith.maximumf %8, %9 : vector<256x128xf32>
    %11 = arith.truncf %10 : vector<256x128xf32> to vector<256x128xbf16>
    %12 = vector.shape_cast %11 : vector<256x128xbf16> to vector<1x16x16x128xbf16>
    %cst_7 = arith.constant 0.000000e+00 : bf16
    %13 = vector.broadcast %cst_7 : bf16 to vector<1x16x1x128xbf16>
    %14 = vector.extract_strided_slice %12 {offsets = [0, 0, 0, 0], sizes = [1, 16, 15, 128], strides = [1, 1, 1, 1]} : vector<1x16x16x128xbf16> to vector<1x16x15x128xbf16>
    %15 = tpu.concatenate %13, %14 in 2 : vector<1x16x1x128xbf16>, vector<1x16x15x128xbf16> -> vector<1x16x16x128xbf16>
    %16 = vector.extract_strided_slice %12 {offsets = [0, 0, 1, 0], sizes = [1, 16, 15, 128], strides = [1, 1, 1, 1]} : vector<1x16x16x128xbf16> to vector<1x16x15x128xbf16>
    %17 = tpu.concatenate %16, %13 in 2 : vector<1x16x15x128xbf16>, vector<1x16x1x128xbf16> -> vector<1x16x16x128xbf16>
    %18 = tpu.concatenate %15, %12, %17 in 3 : vector<1x16x16x128xbf16>, vector<1x16x16x128xbf16>, vector<1x16x16x128xbf16> -> vector<1x16x16x384xbf16>
    %cst_8 = arith.constant 0.000000e+00 : bf16
    %19 = vector.broadcast %cst_8 : bf16 to vector<1x1x16x384xbf16>
    %20 = tpu.concatenate %19, %18, %19 in 1 : vector<1x1x16x384xbf16>, vector<1x16x16x384xbf16>, vector<1x1x16x384xbf16> -> vector<1x18x16x384xbf16>
    %21 = vector.extract_strided_slice %20 {offsets = [0, 0, 0, 0], sizes = [1, 16, 16, 384], strides = [1, 1, 1, 1]} : vector<1x18x16x384xbf16> to vector<1x16x16x384xbf16>
    %22 = vector.shape_cast %21 : vector<1x16x16x384xbf16> to vector<256x384xbf16>
    %c0_9 = arith.constant 0 : index
    %c0_10 = arith.constant 0 : index
    %c0_11 = arith.constant 0 : index
    %23 = vector.load %arg4[%c0_9, %c0_10, %c0_11] : memref<3x384x128xbf16, #tpu.memory_space<vmem>>, vector<1x384x128xbf16>
    %24 = vector.shape_cast %23 : vector<1x384x128xbf16> to vector<384x128xbf16>
    %cst_12 = arith.constant dense<0.000000e+00> : vector<256x128xf32>
    %25 = tpu.matmul %22, %24, %cst_12 {dimension_numbers = #tpu.dot_dimension_numbers<[1], [0], [0], [1], [0, 0, 1, 1], [], []>} : vector<256x384xbf16>, vector<384x128xbf16>, vector<256x128xf32> -> vector<256x128xf32>
    %26 = vector.extract_strided_slice %20 {offsets = [0, 1, 0, 0], sizes = [1, 16, 16, 384], strides = [1, 1, 1, 1]} : vector<1x18x16x384xbf16> to vector<1x16x16x384xbf16>
    %27 = vector.shape_cast %26 : vector<1x16x16x384xbf16> to vector<256x384xbf16>
    %c1 = arith.constant 1 : index
    %c0_13 = arith.constant 0 : index
    %c0_14 = arith.constant 0 : index
    %28 = vector.load %arg4[%c1, %c0_13, %c0_14] : memref<3x384x128xbf16, #tpu.memory_space<vmem>>, vector<1x384x128xbf16>
    %29 = vector.shape_cast %28 : vector<1x384x128xbf16> to vector<384x128xbf16>
    %cst_15 = arith.constant dense<0.000000e+00> : vector<256x128xf32>
    %30 = tpu.matmul %27, %29, %cst_15 {dimension_numbers = #tpu.dot_dimension_numbers<[1], [0], [0], [1], [0, 0, 1, 1], [], []>} : vector<256x384xbf16>, vector<384x128xbf16>, vector<256x128xf32> -> vector<256x128xf32>
    %31 = arith.addf %25, %30 : vector<256x128xf32>
    %32 = vector.extract_strided_slice %20 {offsets = [0, 2, 0, 0], sizes = [1, 16, 16, 384], strides = [1, 1, 1, 1]} : vector<1x18x16x384xbf16> to vector<1x16x16x384xbf16>
    %33 = vector.shape_cast %32 : vector<1x16x16x384xbf16> to vector<256x384xbf16>
    %c2 = arith.constant 2 : index
    %c0_16 = arith.constant 0 : index
    %c0_17 = arith.constant 0 : index
    %34 = vector.load %arg4[%c2, %c0_16, %c0_17] : memref<3x384x128xbf16, #tpu.memory_space<vmem>>, vector<1x384x128xbf16>
    %35 = vector.shape_cast %34 : vector<1x384x128xbf16> to vector<384x128xbf16>
    %cst_18 = arith.constant dense<0.000000e+00> : vector<256x128xf32>
    %36 = tpu.matmul %33, %35, %cst_18 {dimension_numbers = #tpu.dot_dimension_numbers<[1], [0], [0], [1], [0, 0, 1, 1], [], []>} : vector<256x384xbf16>, vector<384x128xbf16>, vector<256x128xf32> -> vector<256x128xf32>
    %37 = arith.addf %31, %36 : vector<256x128xf32>
    %38 = arith.truncf %37 : vector<256x128xf32> to vector<256x128xbf16>
    %39 = vector.shape_cast %38 : vector<256x128xbf16> to vector<1x16x16x128xbf16>
    %c0_19 = arith.constant 0 : index
    %c0_20 = arith.constant 0 : index
    %c0_21 = arith.constant 0 : index
    %c0_22 = arith.constant 0 : index
    %40 = vector.load %arg5[%c0_19, %c0_20, %c0_21, %c0_22] : memref<1x16x16x128xbf16, #tpu.memory_space<vmem>>, vector<1x16x16x128xbf16>
    tpu.vector_store %arg5[%c0_19, %c0_20, %c0_21, %c0_22], %39 {strides = array<i32>} : memref<1x16x16x128xbf16, #tpu.memory_space<vmem>>, vector<1x16x16x128xbf16>,
    %cst_23 = arith.constant dense<0.000000e+00> : vector<128xf32>
    %41 = vector.multi_reduction <add>, %37, %cst_23 [0] : vector<256x128xf32> to vector<128xf32>
    %42 = vector.shape_cast %41 : vector<128xf32> to vector<1x1x128xf32>
    %c0_24 = arith.constant 0 : index
    %c0_25 = arith.constant 0 : index
    %c0_26 = arith.constant 0 : index
    %43 = vector.load %arg6[%c0_24, %c0_25, %c0_26] : memref<1x2x128xf32, #tpu.memory_space<vmem>>, vector<1x1x128xf32>
    tpu.vector_store %arg6[%c0_24, %c0_25, %c0_26], %42 {strides = array<i32>} : memref<1x2x128xf32, #tpu.memory_space<vmem>>, vector<1x1x128xf32>,
    %44 = arith.mulf %37, %37 : vector<256x128xf32>
    %cst_27 = arith.constant dense<0.000000e+00> : vector<128xf32>
    %45 = vector.multi_reduction <add>, %44, %cst_27 [0] : vector<256x128xf32> to vector<128xf32>
    %46 = vector.shape_cast %45 : vector<128xf32> to vector<1x1x128xf32>
    %c0_28 = arith.constant 0 : index
    %c1_29 = arith.constant 1 : index
    %c0_30 = arith.constant 0 : index
    %47 = vector.load %arg6[%c0_28, %c1_29, %c0_30] : memref<1x2x128xf32, #tpu.memory_space<vmem>>, vector<1x1x128xf32>
    tpu.vector_store %arg6[%c0_28, %c1_29, %c0_30], %46 {strides = array<i32>} : memref<1x2x128xf32, #tpu.memory_space<vmem>>, vector<1x1x128xf32>,
    return
  }
  func.func @transform_0(%arg0: i32) -> (i32, i32, i32, i32) {
    %c0_i32 = arith.constant 0 : i32
    %c0_i32_0 = arith.constant 0 : i32
    %c0_i32_1 = arith.constant 0 : i32
    %c0_i32_2 = arith.constant 0 : i32
    return %arg0, %c0_i32, %c0_i32_0, %c0_i32_1 : i32, i32, i32, i32
  }
  func.func @transform_1(%arg0: i32) -> (i32, i32) {
    %c0_i32 = arith.constant 0 : i32
    %c0_i32_0 = arith.constant 0 : i32
    %c0_i32_1 = arith.constant 0 : i32
    return %c0_i32, %c0_i32_0 : i32, i32
  }
  func.func @transform_2(%arg0: i32) -> (i32, i32) {
    %c0_i32 = arith.constant 0 : i32
    %c0_i32_0 = arith.constant 0 : i32
    %c0_i32_1 = arith.constant 0 : i32
    return %c0_i32, %c0_i32_0 : i32, i32
  }
  func.func @transform_3(%arg0: i32) -> (i32, i32, i32) {
    %c0_i32 = arith.constant 0 : i32
    %c0_i32_0 = arith.constant 0 : i32
    %c0_i32_1 = arith.constant 0 : i32
    %c0_i32_2 = arith.constant 0 : i32
    return %c0_i32, %c0_i32_0, %c0_i32_1 : i32, i32, i32
  }
  func.func @transform_4(%arg0: i32) -> (i32, i32, i32, i32) {
    %c0_i32 = arith.constant 0 : i32
    %c0_i32_0 = arith.constant 0 : i32
    %c0_i32_1 = arith.constant 0 : i32
    %c0_i32_2 = arith.constant 0 : i32
    return %arg0, %c0_i32, %c0_i32_0, %c0_i32_1 : i32, i32, i32, i32
  }
  func.func @transform_5(%arg0: i32) -> (i32, i32, i32) {
    %c0_i32 = arith.constant 0 : i32
    %c0_i32_0 = arith.constant 0 : i32
    %c0_i32_1 = arith.constant 0 : i32
    return %arg0, %c0_i32, %c0_i32_0 : i32, i32, i32
  }
}

module attributes {stable_mosaic.version = 11 : i64} {
  func.func @_bn_relu_conv1x1_kernel(%arg0: i32, %arg1: i32, %arg2: memref<1x8x16x128xbf16, #tpu.memory_space<vmem>>, %arg3: memref<1x128xf32, #tpu.memory_space<vmem>>, %arg4: memref<1x128xf32, #tpu.memory_space<vmem>>, %arg5: memref<128x128xbf16, #tpu.memory_space<vmem>>, %arg6: memref<1x8x16x128xbf16, #tpu.memory_space<vmem>>, %arg7: memref<1x1x2x128xf32, #tpu.memory_space<vmem>>) attributes {dimension_semantics = [#tpu.dimension_semantics<parallel>, #tpu.dimension_semantics<parallel>], iteration_bounds = array<i64: 2, 2>, scalar_prefetch = 0 : i64, scratch_operands = 0 : i64, tpu.core_type = #tpu.core_type<tc>, window_params = [{transform_indices = @transform_0, window_bounds = array<i64: 1, 8, 16, 128>}, {pipeline_mode = #tpu.pipeline_mode<synchronous>, transform_indices = @transform_1, window_bounds = array<i64: 1, 128>}, {pipeline_mode = #tpu.pipeline_mode<synchronous>, transform_indices = @transform_2, window_bounds = array<i64: 1, 128>}, {pipeline_mode = #tpu.pipeline_mode<synchronous>, transform_indices = @transform_3, window_bounds = array<i64: 128, 128>}, {transform_indices = @transform_4, window_bounds = array<i64: 1, 8, 16, 128>}, {transform_indices = @transform_5, window_bounds = array<i64: 1, 1, 2, 128>}]} {
    %c0 = arith.constant 0 : index
    %c0_0 = arith.constant 0 : index
    %c0_1 = arith.constant 0 : index
    %c0_2 = arith.constant 0 : index
    %0 = vector.load %arg2[%c0, %c0_0, %c0_1, %c0_2] : memref<1x8x16x128xbf16, #tpu.memory_space<vmem>>, vector<1x8x16x128xbf16>
    %1 = vector.shape_cast %0 : vector<1x8x16x128xbf16> to vector<128x128xbf16>
    %2 = arith.extf %1 : vector<128x128xbf16> to vector<128x128xf32>
    %c0_3 = arith.constant 0 : index
    %c0_4 = arith.constant 0 : index
    %3 = vector.load %arg3[%c0_3, %c0_4] : memref<1x128xf32, #tpu.memory_space<vmem>>, vector<1x128xf32>
    %4 = vector.broadcast %3 : vector<1x128xf32> to vector<128x128xf32>
    %5 = arith.mulf %2, %4 : vector<128x128xf32>
    %c0_5 = arith.constant 0 : index
    %c0_6 = arith.constant 0 : index
    %6 = vector.load %arg4[%c0_5, %c0_6] : memref<1x128xf32, #tpu.memory_space<vmem>>, vector<1x128xf32>
    %7 = vector.broadcast %6 : vector<1x128xf32> to vector<128x128xf32>
    %8 = arith.addf %5, %7 : vector<128x128xf32>
    %cst = arith.constant 0.000000e+00 : f32
    %9 = vector.broadcast %cst : f32 to vector<128x128xf32>
    %10 = arith.maximumf %8, %9 : vector<128x128xf32>
    %11 = arith.truncf %10 : vector<128x128xf32> to vector<128x128xbf16>
    %c0_7 = arith.constant 0 : index
    %c0_8 = arith.constant 0 : index
    %12 = vector.load %arg5[%c0_7, %c0_8] : memref<128x128xbf16, #tpu.memory_space<vmem>>, vector<128x128xbf16>
    %cst_9 = arith.constant dense<0.000000e+00> : vector<128x128xf32>
    %13 = tpu.matmul %11, %12, %cst_9 {dimension_numbers = #tpu.dot_dimension_numbers<[1], [0], [0], [1], [0, 0, 1, 1], [], []>} : vector<128x128xbf16>, vector<128x128xbf16>, vector<128x128xf32> -> vector<128x128xf32>
    %14 = arith.truncf %13 : vector<128x128xf32> to vector<128x128xbf16>
    %15 = vector.shape_cast %14 : vector<128x128xbf16> to vector<1x8x16x128xbf16>
    %c0_10 = arith.constant 0 : index
    %c0_11 = arith.constant 0 : index
    %c0_12 = arith.constant 0 : index
    %c0_13 = arith.constant 0 : index
    %16 = vector.load %arg6[%c0_10, %c0_11, %c0_12, %c0_13] : memref<1x8x16x128xbf16, #tpu.memory_space<vmem>>, vector<1x8x16x128xbf16>
    tpu.vector_store %arg6[%c0_10, %c0_11, %c0_12, %c0_13], %15 {strides = array<i32>} : memref<1x8x16x128xbf16, #tpu.memory_space<vmem>>, vector<1x8x16x128xbf16>,
    %cst_14 = arith.constant dense<0.000000e+00> : vector<128xf32>
    %17 = vector.multi_reduction <add>, %13, %cst_14 [0] : vector<128x128xf32> to vector<128xf32>
    %18 = vector.shape_cast %17 : vector<128xf32> to vector<1x1x1x128xf32>
    %c0_15 = arith.constant 0 : index
    %c0_16 = arith.constant 0 : index
    %c0_17 = arith.constant 0 : index
    %c0_18 = arith.constant 0 : index
    %19 = vector.load %arg7[%c0_15, %c0_16, %c0_17, %c0_18] : memref<1x1x2x128xf32, #tpu.memory_space<vmem>>, vector<1x1x1x128xf32>
    tpu.vector_store %arg7[%c0_15, %c0_16, %c0_17, %c0_18], %18 {strides = array<i32>} : memref<1x1x2x128xf32, #tpu.memory_space<vmem>>, vector<1x1x1x128xf32>,
    %20 = arith.mulf %13, %13 : vector<128x128xf32>
    %cst_19 = arith.constant dense<0.000000e+00> : vector<128xf32>
    %21 = vector.multi_reduction <add>, %20, %cst_19 [0] : vector<128x128xf32> to vector<128xf32>
    %22 = vector.shape_cast %21 : vector<128xf32> to vector<1x1x1x128xf32>
    %c0_20 = arith.constant 0 : index
    %c0_21 = arith.constant 0 : index
    %c1 = arith.constant 1 : index
    %c0_22 = arith.constant 0 : index
    %23 = vector.load %arg7[%c0_20, %c0_21, %c1, %c0_22] : memref<1x1x2x128xf32, #tpu.memory_space<vmem>>, vector<1x1x1x128xf32>
    tpu.vector_store %arg7[%c0_20, %c0_21, %c1, %c0_22], %22 {strides = array<i32>} : memref<1x1x2x128xf32, #tpu.memory_space<vmem>>, vector<1x1x1x128xf32>,
    return
  }
  func.func @transform_0(%arg0: i32, %arg1: i32) -> (i32, i32, i32, i32) {
    %c0_i32 = arith.constant 0 : i32
    %c0_i32_0 = arith.constant 0 : i32
    %c0_i32_1 = arith.constant 0 : i32
    return %arg0, %arg1, %c0_i32, %c0_i32_0 : i32, i32, i32, i32
  }
  func.func @transform_1(%arg0: i32, %arg1: i32) -> (i32, i32) {
    %c0_i32 = arith.constant 0 : i32
    %c0_i32_0 = arith.constant 0 : i32
    %c0_i32_1 = arith.constant 0 : i32
    return %c0_i32, %c0_i32_0 : i32, i32
  }
  func.func @transform_2(%arg0: i32, %arg1: i32) -> (i32, i32) {
    %c0_i32 = arith.constant 0 : i32
    %c0_i32_0 = arith.constant 0 : i32
    %c0_i32_1 = arith.constant 0 : i32
    return %c0_i32, %c0_i32_0 : i32, i32
  }
  func.func @transform_3(%arg0: i32, %arg1: i32) -> (i32, i32) {
    %c0_i32 = arith.constant 0 : i32
    %c0_i32_0 = arith.constant 0 : i32
    %c0_i32_1 = arith.constant 0 : i32
    return %c0_i32, %c0_i32_0 : i32, i32
  }
  func.func @transform_4(%arg0: i32, %arg1: i32) -> (i32, i32, i32, i32) {
    %c0_i32 = arith.constant 0 : i32
    %c0_i32_0 = arith.constant 0 : i32
    %c0_i32_1 = arith.constant 0 : i32
    return %arg0, %arg1, %c0_i32, %c0_i32_0 : i32, i32, i32, i32
  }
  func.func @transform_5(%arg0: i32, %arg1: i32) -> (i32, i32, i32, i32) {
    %c0_i32 = arith.constant 0 : i32
    %c0_i32_0 = arith.constant 0 : i32
    %c0_i32_1 = arith.constant 0 : i32
    return %arg0, %arg1, %c0_i32, %c0_i32_0 : i32, i32, i32, i32
  }
}

module attributes {stable_mosaic.version = 11 : i64} {
  func.func @_bn_add_relu_kernel(%arg0: i32, %arg1: i32, %arg2: memref<1x8x16x128xbf16, #tpu.memory_space<vmem>>, %arg3: memref<1x128xf32, #tpu.memory_space<vmem>>, %arg4: memref<1x128xf32, #tpu.memory_space<vmem>>, %arg5: memref<1x8x16x16xf32, #tpu.memory_space<vmem>>, %arg6: memref<1x8x16x16xf32, #tpu.memory_space<vmem>>) attributes {dimension_semantics = [#tpu.dimension_semantics<parallel>, #tpu.dimension_semantics<parallel>], iteration_bounds = array<i64: 2, 2>, scalar_prefetch = 0 : i64, scratch_operands = 0 : i64, tpu.core_type = #tpu.core_type<tc>, window_params = [{transform_indices = @transform_0, window_bounds = array<i64: 1, 8, 16, 128>}, {pipeline_mode = #tpu.pipeline_mode<synchronous>, transform_indices = @transform_1, window_bounds = array<i64: 1, 128>}, {pipeline_mode = #tpu.pipeline_mode<synchronous>, transform_indices = @transform_2, window_bounds = array<i64: 1, 128>}, {transform_indices = @transform_3, window_bounds = array<i64: 1, 8, 16, 16>}, {transform_indices = @transform_4, window_bounds = array<i64: 1, 8, 16, 16>}]} {
    %c0 = arith.constant 0 : index
    %c0_0 = arith.constant 0 : index
    %c0_1 = arith.constant 0 : index
    %c0_2 = arith.constant 0 : index
    %0 = vector.load %arg2[%c0, %c0_0, %c0_1, %c0_2] : memref<1x8x16x128xbf16, #tpu.memory_space<vmem>>, vector<1x8x16x128xbf16>
    %1 = vector.shape_cast %0 : vector<1x8x16x128xbf16> to vector<128x128xbf16>
    %2 = arith.extf %1 : vector<128x128xbf16> to vector<128x128xf32>
    %c0_3 = arith.constant 0 : index
    %c0_4 = arith.constant 0 : index
    %3 = vector.load %arg3[%c0_3, %c0_4] : memref<1x128xf32, #tpu.memory_space<vmem>>, vector<1x128xf32>
    %4 = vector.broadcast %3 : vector<1x128xf32> to vector<128x128xf32>
    %5 = arith.mulf %2, %4 : vector<128x128xf32>
    %c0_5 = arith.constant 0 : index
    %c0_6 = arith.constant 0 : index
    %6 = vector.load %arg4[%c0_5, %c0_6] : memref<1x128xf32, #tpu.memory_space<vmem>>, vector<1x128xf32>
    %7 = vector.broadcast %6 : vector<1x128xf32> to vector<128x128xf32>
    %8 = arith.addf %5, %7 : vector<128x128xf32>
    %9 = vector.extract_strided_slice %8 {offsets = [0, 0], sizes = [128, 16], strides = [1, 1]} : vector<128x128xf32> to vector<128x16xf32>
    %c0_7 = arith.constant 0 : index
    %c0_8 = arith.constant 0 : index
    %c0_9 = arith.constant 0 : index
    %c0_10 = arith.constant 0 : index
    %10 = vector.load %arg5[%c0_7, %c0_8, %c0_9, %c0_10] : memref<1x8x16x16xf32, #tpu.memory_space<vmem>>, vector<1x8x16x16xf32>
    %11 = vector.shape_cast %10 : vector<1x8x16x16xf32> to vector<128x16xf32>
    %12 = arith.addf %9, %11 : vector<128x16xf32>
    %cst = arith.constant 0.000000e+00 : f32
    %13 = vector.broadcast %cst : f32 to vector<128x16xf32>
    %14 = arith.maximumf %12, %13 : vector<128x16xf32>
    %15 = vector.shape_cast %14 : vector<128x16xf32> to vector<1x8x16x16xf32>
    %c0_11 = arith.constant 0 : index
    %c0_12 = arith.constant 0 : index
    %c0_13 = arith.constant 0 : index
    %c0_14 = arith.constant 0 : index
    %16 = vector.load %arg6[%c0_11, %c0_12, %c0_13, %c0_14] : memref<1x8x16x16xf32, #tpu.memory_space<vmem>>, vector<1x8x16x16xf32>
    tpu.vector_store %arg6[%c0_11, %c0_12, %c0_13, %c0_14], %15 {strides = array<i32>} : memref<1x8x16x16xf32, #tpu.memory_space<vmem>>, vector<1x8x16x16xf32>,
    return
  }
  func.func @transform_0(%arg0: i32, %arg1: i32) -> (i32, i32, i32, i32) {
    %c0_i32 = arith.constant 0 : i32
    %c0_i32_0 = arith.constant 0 : i32
    %c0_i32_1 = arith.constant 0 : i32
    return %arg0, %arg1, %c0_i32, %c0_i32_0 : i32, i32, i32, i32
  }
  func.func @transform_1(%arg0: i32, %arg1: i32) -> (i32, i32) {
    %c0_i32 = arith.constant 0 : i32
    %c0_i32_0 = arith.constant 0 : i32
    %c0_i32_1 = arith.constant 0 : i32
    return %c0_i32, %c0_i32_0 : i32, i32
  }
  func.func @transform_2(%arg0: i32, %arg1: i32) -> (i32, i32) {
    %c0_i32 = arith.constant 0 : i32
    %c0_i32_0 = arith.constant 0 : i32
    %c0_i32_1 = arith.constant 0 : i32
    return %c0_i32, %c0_i32_0 : i32, i32
  }
  func.func @transform_3(%arg0: i32, %arg1: i32) -> (i32, i32, i32, i32) {
    %c0_i32 = arith.constant 0 : i32
    %c0_i32_0 = arith.constant 0 : i32
    %c0_i32_1 = arith.constant 0 : i32
    return %arg0, %arg1, %c0_i32, %c0_i32_0 : i32, i32, i32, i32
  }
  func.func @transform_4(%arg0: i32, %arg1: i32) -> (i32, i32, i32, i32) {
    %c0_i32 = arith.constant 0 : i32
    %c0_i32_0 = arith.constant 0 : i32
    %c0_i32_1 = arith.constant 0 : i32
    return %arg0, %arg1, %c0_i32, %c0_i32_0 : i32, i32, i32, i32
  }
}

</mosaic_0001>

<bundles_post_ra>
// kernel: bottleneck_forward.7
= control target key start
LH: loop header
LB: loop body
LE: loop exit
PB: predicated region body
PF: predicated region fallthrough
CT: control target
= control target key end

     0   :  { %s709_s15 = smov 0   ;;  %s711_s16 = smov 0   ;;  %s875_s0 = inlined_call_operand.vmem [shape: bf16[2,16,16,128], index: 0, kind: input, shape index: {}]   ;;  %s876_s1 = inlined_call_operand.vmem [shape: f32[1,128], index: 1, kind: input, shape index: {}]   ;;  %s877_s2 = inlined_call_operand.vmem [shape: f32[1,128], index: 2, kind: input, shape index: {}]   ;;  %s878_s3 = inlined_call_operand.vmem [shape: f32[2,16,16,16], index: 3, kind: input, shape index: {}]   ;;  %s879_s4 = inlined_call_operand.vmem [shape: f32[2,16,16,16], index: 4, kind: output, shape index: {}]  }
   0x1   :  { %s713_s17 = smov 0   ;;  %s715_s18 = smov 0  }
   0x2   :  { %s717_s19 = smov 0  }
   0x3 LB: > { %s23_s20 = sadd.s32 1, %s674_s17  ;;  %s26_s21 = sadd.s32 1, %s678_s18  ;;  %s682_s19 = sphi %s717_s19, %s14_s19   ;;  %s678_s18 = sphi %s715_s18, %s883_s18   ;;  %s674_s17 = sphi %s713_s17, %s882_s17   ;;  %s670_s16 = sphi %s711_s16, %s881_s16   ;;  %s666_s15 = sphi %s709_s15, %s880_s15  }
   0x4   : > { %p24_p0 = scmp.ge.s32.totalorder %s23_s20, 2  ;;  %p548_p1 = scmp.ge.s32.totalorder %s682_s19, 1 }
   0x5   : > { %p202_p2 = scmp.lt.s32.totalorder %s682_s19, 5 }
   0x6   : > { %s885_s20 = smov (%p24_p0, %s23_s20), 0  ;;  %s887_s21 = smov (!%p24_p0, %s26_s21), %s678_s18 }
   0x7   : > { %p203_p3 = pnand %p548_p1, %p202_p2  ;;  %p28_p4 = scmp.ge.s32.totalorder %s887_s21, 2 }
   0x8   : > { %s549_s22 = sshll.u32 (!%p203_p3), %s666_s15, 3  ;;  %p249_p5 = scmp.lt.s32.totalorder (!%p203_p3), %s670_s16, 1 }
   0x9   : > { %s889_s21 = smov (%p28_p4, %s887_s21), 0  ;;  %206 = sbr.rel (%p203_p3) target bundleno = 44 (0x2c), region = 36 }
   0xa   : > { %p251_p6 = scmp.lt.s32.totalorder (!%p203_p3), %s549_s22, 15 }
   0xe   : > { %s891_s16 = smov (!%p249_p5, %s670_s16), 1  ;;  %s893_s22 = smov (!%p251_p6, %s549_s22), 15  ;;  %v752_v1 = vld [vmem:[%s876_s1] ss:$0 sm:$0xff]  ;;  %vm407_vm0 = vcmask 130048  }
   0xf   : > { %s551_s23 = sshll.u32 %s891_s16, 5  ;;  %s550_s24 = sshll.u32 %s893_s22, 1  ;;  %v765_v5 = vld [vmem:[%s877_s2] ss:$0 sm:$0xff] }
  0x10   : > { %s739_s25 = sadd.s32 %s551_s23, %s550_s24 }
  0x11   : > { %s552_s26 = sshll.u32 %s739_s25, 2  ;;  %s556_s27 = sshll.u32 %s739_s25, 3 }
  0x12   : > { %s746_s30 = scalar_lea.vmem %s875_s0, %s552_s26  ;;  %s759_s9 = scalar_lea.vmem %s878_s3, %s556_s27 }
  0x13   : > { %v566_v0 = vld [vmem:[%s746_s30] sm:$0xff]   ;;  %v597_v4 = vld [vmem:[%s746_s30 + $0x8] sm:$0xff]   ;;  %v598_v8 = vld [vmem:[%s746_s30 + $0x10] sm:$0xff]   ;;  %s796_s14 = scalar_lea.vmem %s879_s4, %s556_s27 }
  0x14   : > { %v567_v2 = vunpack.c.l.bf16 %v566_v0  ;;  %v568_v3 = vunpack.c.h.bf16 %v566_v0  ;;  %v571_v6 = vunpack.c.l.bf16 %v597_v4  ;;  %v572_v7 = vunpack.c.h.bf16 %v597_v4  ;;  %v599_v13 = vld [vmem:[%s746_s30 + $0x18] sm:$0xff]   ;;  %v359_v14 = vld [vmem:[%s759_s9] sm:$0xff]  ;;  %v360_v15 = vld [vmem:[%s759_s9 + $0x8] sm:$0xff] }
  0x15   : > { %v575_v11 = vunpack.c.l.bf16 %v598_v8  ;;  %v576_v12 = vunpack.c.h.bf16 %v598_v8  ;;  %v579_v18 = vunpack.c.l.bf16 %v599_v13  ;;  %v580_v19 = vunpack.c.h.bf16 %v599_v13  ;;  %v361_v22 = vld [vmem:[%s759_s9 + $0x10] sm:$0xff]  ;;  %v362_v23 = vld [vmem:[%s759_s9 + $0x18] sm:$0xff]  ;;  %v363_v28 = vld [vmem:[%s759_s9 + $0x20] sm:$0xff] }
  0x16   : > { %v320_v9 = vmul.f32 %v567_v2, %v752_v1  ;;  %v321_v10 = vmul.f32 %v568_v3, %v752_v1  ;;  %v322_v16 = vmul.f32 %v571_v6, %v752_v1  ;;  %v323_v17 = vmul.f32 %v572_v7, %v752_v1  ;;  %v364_v29 = vld [vmem:[%s759_s9 + $0x28] sm:$0xff]  ;;  %v365_v36 = vld [vmem:[%s759_s9 + $0x30] sm:$0xff]  ;;  %v366_v37 = vld [vmem:[%s759_s9 + $0x38] sm:$0xff] }
  0x17   : > { %v324_v24 = vmul.f32 %v575_v11, %v752_v1  ;;  %v325_v25 = vmul.f32 %v576_v12, %v752_v1  ;;  %v326_v30 = vmul.f32 %v579_v18, %v752_v1  ;;  %v327_v31 = vmul.f32 %v580_v19, %v752_v1  ;;  %v600_v42 = vld [vmem:[%s746_s30 + $0x20] sm:$0xff]   ;;  %v601_v47 = vld [vmem:[%s746_s30 + $0x28] sm:$0xff]   ;;  %v602_v52 = vld [vmem:[%s746_s30 + $0x30] sm:$0xff]  }
  0x18   : > { %v343_v20 = vadd.f32 %v765_v5, %v320_v9  ;;  %v344_v21 = vadd.f32 %v765_v5, %v321_v10  ;;  %v345_v26 = vadd.f32 %v765_v5, %v322_v16  ;;  %v346_v27 = vadd.f32 %v765_v5, %v323_v17  ;;  %v603_v57 = vld [vmem:[%s746_s30 + $0x38] sm:$0xff]   ;;  %v367_v3 = vld [vmem:[%s759_s9 + $0x40] sm:$0xff]  ;;  %v368_v4 = vld [vmem:[%s759_s9 + $0x48] sm:$0xff] }
  0x19   : > { %v347_v34 = vadd.f32 %v765_v5, %v324_v24  ;;  %v348_v35 = vadd.f32 %v765_v5, %v325_v25  ;;  %v349_v40 = vadd.f32 %v765_v5, %v326_v30  ;;  %v350_v41 = vadd.f32 %v765_v5, %v327_v31  ;;  %v369_v12 = vld [vmem:[%s759_s9 + $0x50] sm:$0xff]  ;;  %v370_v13 = vld [vmem:[%s759_s9 + $0x58] sm:$0xff]  ;;  %v371_v18 = vld [vmem:[%s759_s9 + $0x60] sm:$0xff] }
  0x1a   : > { %v375_v32 = vadd.f32 %v359_v14, %v343_v20  ;;  %v376_v33 = vadd.f32 %v360_v15, %v344_v21  ;;  %v377_v38 = vadd.f32 %v361_v22, %v345_v26  ;;  %v378_v39 = vadd.f32 %v362_v23, %v346_v27  ;;  %v372_v19 = vld [vmem:[%s759_s9 + $0x68] sm:$0xff]  ;;  %v373_v26 = vld [vmem:[%s759_s9 + $0x70] sm:$0xff]  ;;  %v374_v27 = vld [vmem:[%s759_s9 + $0x78] sm:$0xff] }
  0x1b   : > { %v379_v45 = vadd.f32 %v363_v28, %v347_v34  ;;  %v380_v46 = vadd.f32 %v364_v29, %v348_v35  ;;  %v381_v50 = vadd.f32 %v365_v36, %v349_v40  ;;  %v382_v51 = vadd.f32 %v366_v37, %v350_v41 }
  0x1c   : > { %v391_v43 = vmax.f32 %v375_v32, 0.0  ;;  %v392_v44 = vmax.f32 %v376_v33, 0.0  ;;  %v393_v48 = vmax.f32 %v377_v38, 0.0  ;;  %v394_v49 = vmax.f32 %v378_v39, 0.0 }
  0x1d   : > { %v395_v53 = vmax.f32 %v379_v45, 0.0  ;;  %v396_v54 = vmax.f32 %v380_v46, 0.0  ;;  %v583_v55 = vunpack.c.l.bf16 %v600_v42  ;;  %v584_v56 = vunpack.c.h.bf16 %v600_v42 }
  0x1e   : > { %408 = vst.msk [vmem:[%s796_s14] sm:$0xff] %vm407_vm0, %v391_v43  ;;  %409 = vst.msk [vmem:[%s796_s14 + $0x8] sm:$0xff] %vm407_vm0, %v392_v44  ;;  %v397_v58 = vmax.f32 %v381_v50, 0.0  ;;  %v398_v59 = vmax.f32 %v382_v51, 0.0  ;;  %v587_v60 = vunpack.c.l.bf16 %v601_v47  ;;  %v588_v61 = vunpack.c.h.bf16 %v601_v47 }
  0x1f   : > { %410 = vst.msk [vmem:[%s796_s14 + $0x10] sm:$0xff] %vm407_vm0, %v393_v48  ;;  %411 = vst.msk [vmem:[%s796_s14 + $0x18] sm:$0xff] %vm407_vm0, %v394_v49  ;;  %v328_v62 = vmul.f32 %v583_v55, %v752_v1  ;;  %v329_v63 = vmul.f32 %v584_v56, %v752_v1  ;;  %v591_v0 = vunpack.c.l.bf16 %v602_v52  ;;  %v592_v2 = vunpack.c.h.bf16 %v602_v52 }
  0x20   : > { %412 = vst.msk [vmem:[%s796_s14 + $0x20] sm:$0xff] %vm407_vm0, %v395_v53  ;;  %413 = vst.msk [vmem:[%s796_s14 + $0x28] sm:$0xff] %vm407_vm0, %v396_v54  ;;  %v330_v6 = vmul.f32 %v587_v60, %v752_v1  ;;  %v331_v7 = vmul.f32 %v588_v61, %v752_v1  ;;  %v595_v8 = vunpack.c.l.bf16 %v603_v57  ;;  %v596_v9 = vunpack.c.h.bf16 %v603_v57 }
  0x21   : > { %414 = vst.msk [vmem:[%s796_s14 + $0x30] sm:$0xff] %vm407_vm0, %v397_v58  ;;  %415 = vst.msk [vmem:[%s796_s14 + $0x38] sm:$0xff] %vm407_vm0, %v398_v59  ;;  %v351_v10 = vadd.f32 %v765_v5, %v328_v62  ;;  %v352_v11 = vadd.f32 %v765_v5, %v329_v63  ;;  %v332_v14 = vmul.f32 %v591_v0, %v752_v1 }
  0x22   : > { %v333_v15 = vmul.f32 %v592_v2, %v752_v1  ;;  %v353_v16 = vadd.f32 %v765_v5, %v330_v6  ;;  %v354_v17 = vadd.f32 %v765_v5, %v331_v7  ;;  %v334_v20 = vmul.f32 %v595_v8, %v752_v1 }
  0x23   : > { %v335_v21 = vmul.f32 %v596_v9, %v752_v1  ;;  %v383_v22 = vadd.f32 %v367_v3, %v351_v10  ;;  %v384_v23 = vadd.f32 %v368_v4, %v352_v11  ;;  %v355_v24 = vadd.f32 %v765_v5, %v332_v14 }
  0x24   : > { %v356_v25 = vadd.f32 %v765_v5, %v333_v15  ;;  %v385_v28 = vadd.f32 %v369_v12, %v353_v16  ;;  %v386_v29 = vadd.f32 %v370_v13, %v354_v17  ;;  %v357_v30 = vadd.f32 %v765_v5, %v334_v20 }
  0x25   : > { %v358_v31 = vadd.f32 %v765_v5, %v335_v21  ;;  %v399_v32 = vmax.f32 %v383_v22, 0.0  ;;  %v400_v1 = vmax.f32 %v384_v23, 0.0  ;;  %v387_v33 = vadd.f32 %v371_v18, %v355_v24 }
  0x26   : > { %v388_v34 = vadd.f32 %v372_v19, %v356_v25  ;;  %v401_v35 = vmax.f32 %v385_v28, 0.0  ;;  %v402_v36 = vmax.f32 %v386_v29, 0.0  ;;  %v389_v37 = vadd.f32 %v373_v26, %v357_v30 }
  0x27   : > { %v390_v38 = vadd.f32 %v374_v27, %v358_v31  ;;  %416 = vst.msk [vmem:[%s796_s14 + $0x40] sm:$0xff] %vm407_vm0, %v399_v32  ;;  %417 = vst.msk [vmem:[%s796_s14 + $0x48] sm:$0xff] %vm407_vm0, %v400_v1  ;;  %v403_v39 = vmax.f32 %v387_v33, 0.0 }
  0x28   : > { %v404_v40 = vmax.f32 %v388_v34, 0.0  ;;  %418 = vst.msk [vmem:[%s796_s14 + $0x50] sm:$0xff] %vm407_vm0, %v401_v35  ;;  %419 = vst.msk [vmem:[%s796_s14 + $0x58] sm:$0xff] %vm407_vm0, %v402_v36  ;;  %v405_v5 = vmax.f32 %v389_v37, 0.0 }
  0x29   : > { %v406_v41 = vmax.f32 %v390_v38, 0.0  ;;  %420 = vst.msk [vmem:[%s796_s14 + $0x60] sm:$0xff] %vm407_vm0, %v403_v39 }
  0x2a   : > { %421 = vst.msk [vmem:[%s796_s14 + $0x68] sm:$0xff] %vm407_vm0, %v404_v40  ;;  %422 = vst.msk [vmem:[%s796_s14 + $0x70] sm:$0xff] %vm407_vm0, %v405_v5 }
  0x2b   : > { %423 = vst.msk [vmem:[%s796_s14 + $0x78] sm:$0xff] %vm407_vm0, %v406_v41 }
  0x2c PF: > { %s14_s19 = sadd.s32 1, %s682_s19   ;;  %s880_s15 = smov %s674_s17 }
  0x2d   : > { %p11_p7 = scmp.ge.s32.totalorder %s14_s19, 6   ;;  %s881_s16 = smov %s678_s18 }
  0x2e   : > { %s882_s17 = smov %s885_s20  ;;  %s883_s18 = smov %s889_s21 }
  0x2f   :  { %13 = sbr.rel (!%p11_p7) target bundleno = 3 (0x3), region = 69 }

// kernel: bottleneck_forward.4
= control target key start
LH: loop header
LB: loop body
LE: loop exit
PB: predicated region body
PF: predicated region fallthrough
CT: control target
= control target key end

     0   :  { %s1040_s12 = smov 0   ;;  %s1042_s13 = smov 0   ;;  %s1154_s0 = inlined_call_operand.vmem [shape: bf16[2,16,16,128], index: 0, kind: input, shape index: {}]   ;;  %s1155_s1 = inlined_call_operand.vmem [shape: bf16[128,128], index: 1, kind: input, shape index: {}]   ;;  %s1156_s2 = inlined_call_operand.vmem [shape: bf16[2,16,16,128], index: 2, kind: output, shape index: {0}]   ;;  %s1157_s3 = inlined_call_operand.vmem [shape: f32[2,2,2,128], index: 3, kind: output, shape index: {1}]  }
   0x1   :  { %s1044_s14 = smov 0   ;;  %s1046_s15 = smov 0  }
   0x2   :  { %s1048_s16 = smov 0  }
   0x3 LB: > { %s23_s17 = sadd.s32 1, %s1010_s14  ;;  %s26_s18 = sadd.s32 1, %s1014_s15  ;;  %s1018_s16 = sphi %s1048_s16, %s14_s16   ;;  %s1014_s15 = sphi %s1046_s15, %s1161_s15   ;;  %s1010_s14 = sphi %s1044_s14, %s1160_s14   ;;  %s1006_s13 = sphi %s1042_s13, %s1159_s13   ;;  %s1002_s12 = sphi %s1040_s12, %s1158_s12  }
   0x4   : > { %p24_p0 = scmp.ge.s32.totalorder %s23_s17, 2  ;;  %p752_p1 = scmp.ge.s32.totalorder %s1018_s16, 1 }
   0x5   : > { %p164_p2 = scmp.lt.s32.totalorder %s1018_s16, 5 }
   0x6   : > { %s1163_s17 = smov (%p24_p0, %s23_s17), 0  ;;  %s1165_s18 = smov (!%p24_p0, %s26_s18), %s1014_s15 }
   0x7   : > { %p165_p3 = pnand %p752_p1, %p164_p2  ;;  %p28_p4 = scmp.ge.s32.totalorder %s1165_s18, 2 }
   0x8   : > { %s753_s21 = sshll.u32 (!%p165_p3), %s1002_s12, 3  ;;  %p207_p5 = scmp.lt.s32.totalorder (!%p165_p3), %s1006_s13, 1 }
   0x9   : > { %s1167_s18 = smov (%p28_p4, %s1165_s18), 0  ;;  %168 = sbr.rel (%p165_p3) target bundleno = 291 (0x123), region = 28 }
   0xa   : > { %p209_p6 = scmp.lt.s32.totalorder (!%p165_p3), %s753_s21, 15  ;;  %p230_p7 = scmp.lt.s32.totalorder (!%p165_p3), %s1002_s12, 1 }
   0xe   : > { %v964_v0 = vld [vmem:[%s1155_s1 + $0x38] sm:$0xff]   ;;  %v965_v1 = vld [vmem:[%s1155_s1 + $0x30] sm:$0xff]   ;;  %s1169_s13 = smov (!%p207_p5, %s1006_s13), 1  ;;  %v966_v2 = vld [vmem:[%s1155_s1 + $0x28] sm:$0xff]   ;;  %s1171_s21 = smov (!%p209_p6, %s753_s21), 15 }
   0xf   : > { %876 = vmatprep.subr.bf16.mxu0 %v964_v0  ;;  %908 = vmatprep.subr.bf16.mxu1 %v964_v0  ;;  %s755_s26 = sshll.u32 %s1169_s13, 5  ;;  %s754_s27 = sshll.u32 %s1171_s21, 1  ;;  %v967_v3 = vld [vmem:[%s1155_s1 + $0x20] sm:$0xff]   ;;  %v968_v5 = vld [vmem:[%s1155_s1 + $0x18] sm:$0xff]   ;;  %v969_v7 = vld [vmem:[%s1155_s1 + $0x10] sm:$0xff]  }
  0x10   : > { %877 = vmatpush3.bf16.msra.mxu0 %v964_v0  ;;  %916 = vmatpush3.bf16.msra.mxu1 %v964_v0  ;;  %s1085_s28 = sadd.s32 %s755_s26, %s754_s27  ;;  %v970_v8 = vld [vmem:[%s1155_s1 + $0x8] sm:$0xff]   ;;  %v971_v9 = vld [vmem:[%s1155_s1] sm:$0xff]   ;;  %s1173_s12 = smov (!%p230_p7, %s1002_s12), 1 }
  0x11   : > { %878 = vmatprep.subr.bf16.mxu0 %v965_v1  ;;  %909 = vmatprep.subr.bf16.mxu1 %v965_v1  ;;  %s756_s4 = sshll.u32 %s1085_s28, 2  ;;  %s761_s26 = sshll.u32 %s1169_s13, 1 }
  0x12   : > { %s1096_s7 = scalar_lea.vmem %s1154_s0, %s756_s4  ;;  %s1123_s25 = scalar_lea.vmem %s1156_s2, %s756_s4 }
  0x13   : > { %v972_v4 = vld [vmem:[%s1096_s7] sm:$0xff]   ;;  %v973_v10 = vld [vmem:[%s1096_s7 + $0x8] sm:$0xff]   ;;  %v974_v12 = vld [vmem:[%s1096_s7 + $0x10] sm:$0xff]   ;;  %s233_s27 = sadd.s32 %s761_s26, %s1173_s12 }
  0x14   : > { %879 = vmatpush3.bf16.msra.mxu0 %v965_v1  ;;  %917 = vmatpush3.bf16.msra.mxu1 %v965_v1  ;;  %v976_v6 = vld [vmem:[%s1096_s7 + $0x20] sm:$0xff]   ;;  %v977_v11 = vld [vmem:[%s1096_s7 + $0x28] sm:$0xff]   ;;  %v978_v13 = vld [vmem:[%s1096_s7 + $0x30] sm:$0xff]   ;;  %s762_s28 = sshll.u32 %s233_s27, 1 }
  0x15   : > { %880 = vmatprep.subr.bf16.mxu0 %v966_v2  ;;  %910 = vmatprep.subr.bf16.mxu1 %v966_v2  ;;  %v975_v14 = vld [vmem:[%s1096_s7 + $0x18] sm:$0xff]   ;;  %s235_s4 = scalar_lea.vmem %s1157_s3, %s762_s28 }
  0x16   : > { %892 = vmatprep.mubr.bf16.mxu0 %v972_v4  ;;  %900 = vmatprep.mubr.bf16.mxu1 %v976_v6  ;;  %v979_v15 = vld [vmem:[%s1096_s7 + $0x38] sm:$0xff]  }
  0x18   : > { %881 = vmatpush3.bf16.msra.mxu0 %v966_v2  ;;  %918 = vmatpush3.bf16.msra.mxu1 %v966_v2 }
  0x19   : > { %882 = vmatprep.subr.bf16.mxu0 %v967_v3  ;;  %911 = vmatprep.subr.bf16.mxu1 %v967_v3 }
  0x1c   : > { %883 = vmatpush3.bf16.msra.mxu0 %v967_v3  ;;  %919 = vmatpush3.bf16.msra.mxu1 %v967_v3 }
  0x1d   : > { %884 = vmatprep.subr.bf16.mxu0 %v968_v5  ;;  %912 = vmatprep.subr.bf16.mxu1 %v968_v5 }
  0x20   : > { %885 = vmatpush3.bf16.msra.mxu0 %v968_v5  ;;  %920 = vmatpush3.bf16.msra.mxu1 %v968_v5 }
  0x21   : > { %886 = vmatprep.subr.bf16.mxu0 %v969_v7  ;;  %913 = vmatprep.subr.bf16.mxu1 %v969_v7 }
  0x24   : > { %887 = vmatpush3.bf16.msra.mxu0 %v969_v7  ;;  %921 = vmatpush3.bf16.msra.mxu1 %v969_v7 }
  0x25   : > { %888 = vmatprep.subr.bf16.mxu0 %v970_v8  ;;  %914 = vmatprep.subr.bf16.mxu1 %v970_v8 }
  0x28   : > { %889 = vmatpush3.bf16.msra.mxu0 %v970_v8  ;;  %922 = vmatpush3.bf16.msra.mxu1 %v970_v8 }
  0x29   : > { %890 = vmatprep.subr.bf16.mxu0 %v971_v9  ;;  %915 = vmatprep.subr.bf16.mxu1 %v971_v9 }
  0x2c   : > { %891 = vmatpush3.bf16.msra.mxu0 %v971_v9  ;;  %923 = vmatpush3.bf16.msra.mxu1 %v971_v9 }
  0x2f   : > { %893 = vmatmul.mubr.bf16.vlgmr.msra.gmra.mxu0 %v973_v10  ;;  %901 = vmatmul.mubr.bf16.vlgmr.msra.gmra.mxu1 %v977_v11 }
  0x30   : > { %896 = vmatprep.mubr.bf16.mxu0 %v974_v12  ;;  %904 = vmatprep.mubr.bf16.mxu1 %v978_v13 }
  0x37   : > { %897 = vmatmul.mubr.bf16.gmra.mxu0 %v975_v14  ;;  %905 = vmatmul.mubr.bf16.gmra.mxu1 %v979_v15 }
  0xef   : > { %v894_v16 = vpop.f32.mrf.mxu0  ;;  %v902_v17 = vpop.f32.mrf.mxu1 }
  0xf0   : > { %v566_v33 = vmul.f32 %v894_v16, %v894_v16  ;;  %v574_v3 = vmul.f32 %v902_v17, %v902_v17 }
  0xf1   : > { %v399_v18 = vpop.f32.mrf.mxu0  ;;  %v431_v19 = vpop.f32.mrf.mxu1 }
  0xf2   : > { %v564_v24 = vmul.f32 %v399_v18, %v399_v18  ;;  %v572_v61 = vmul.f32 %v431_v19, %v431_v19 }
  0xf3   : > { %v895_v20 = vpop.f32.mrf.mxu0  ;;  %v903_v21 = vpop.f32.mrf.mxu1 }
  0xf4   : > { %v821_v22 = vpack.c.bf16 %v895_v20, %v894_v16  ;;  %v841_v23 = vpack.c.bf16 %v903_v21, %v902_v17  ;;  %v567_v38 = vmul.f32 %v895_v20, %v895_v20  ;;  %v575_v6 = vmul.f32 %v903_v21, %v903_v21 }
  0xf5   : > { %v402_v25 = vpop.f32.mrf.mxu0  ;;  %v434_v26 = vpop.f32.mrf.mxu1 }
  0xf6   : > { %853 = vst [vmem:[%s1123_s25 + $0x8] sm:$0xff] %v821_v22   ;;  %v816_v27 = vpack.c.bf16 %v402_v25, %v399_v18  ;;  %v542_v28 = vadd.f32 %v402_v25, %v399_v18  ;;  %v565_v29 = vmul.f32 %v402_v25, %v402_v25  ;;  %857 = vst [vmem:[%s1123_s25 + $0x28] sm:$0xff] %v841_v23  }
  0xf7   : > { %v836_v30 = vpack.c.bf16 %v434_v26, %v431_v19  ;;  %v898_v31 = vpop.f32.mrf.mxu0  ;;  %v906_v32 = vpop.f32.mrf.mxu1  ;;  %v573_v1 = vmul.f32 %v434_v26, %v434_v26 }
  0xf8   : > { %817 = vst [vmem:[%s1123_s25] sm:$0xff] %v816_v27   ;;  %v543_v34 = vadd.f32 %v894_v16, %v542_v28  ;;  %v580_v35 = vadd.f32 %v565_v29, %v564_v24  ;;  %v570_v55 = vmul.f32 %v898_v31, %v898_v31  ;;  %v578_v15 = vmul.f32 %v906_v32, %v906_v32 }
  0xf9   : > { %856 = vst [vmem:[%s1123_s25 + $0x20] sm:$0xff] %v836_v30   ;;  %v415_v36 = vpop.f32.mrf.mxu0  ;;  %v447_v37 = vpop.f32.mrf.mxu1 }
  0xfa   : > { %v581_v39 = vadd.f32 %v580_v35, %v566_v33  ;;  %v544_v40 = vadd.f32 %v895_v20, %v543_v34  ;;  %v568_v44 = vmul.f32 %v415_v36, %v415_v36  ;;  %v576_v10 = vmul.f32 %v447_v37, %v447_v37 }
  0xfb   : > { %v899_v41 = vpop.f32.mrf.mxu0  ;;  %v907_v42 = vpop.f32.mrf.mxu1 }
  0xfc   : > { %v545_v43 = vadd.f32 %v544_v40, %v415_v36  ;;  %v582_v45 = vadd.f32 %v581_v39, %v567_v38  ;;  %v831_v46 = vpack.c.bf16 %v899_v41, %v898_v31  ;;  %v851_v48 = vpack.c.bf16 %v907_v42, %v906_v32 }
  0xfd   : > { %v418_v47 = vpop.f32.mrf.mxu0  ;;  %v450_v49 = vpop.f32.mrf.mxu1  ;;  %v571_v58 = vmul.f32 %v899_v41, %v899_v41 }
  0xfe   : > { %v583_v50 = vadd.f32 %v582_v45, %v568_v44  ;;  %855 = vst [vmem:[%s1123_s25 + $0x18] sm:$0xff] %v831_v46   ;;  %v826_v51 = vpack.c.bf16 %v418_v47, %v415_v36  ;;  %v546_v52 = vadd.f32 %v545_v43, %v418_v47  ;;  %v569_v53 = vmul.f32 %v418_v47, %v418_v47 }
  0xff   : > { %859 = vst [vmem:[%s1123_s25 + $0x38] sm:$0xff] %v851_v48   ;;  %v846_v54 = vpack.c.bf16 %v450_v49, %v447_v37  ;;  %v577_v14 = vmul.f32 %v450_v49, %v450_v49 }
 0x100   : > { %854 = vst [vmem:[%s1123_s25 + $0x10] sm:$0xff] %v826_v51   ;;  %v547_v56 = vadd.f32 %v898_v31, %v546_v52  ;;  %v584_v57 = vadd.f32 %v583_v50, %v569_v53 }
 0x101   : > { %858 = vst [vmem:[%s1123_s25 + $0x30] sm:$0xff] %v846_v54  }
 0x102   : > { %v548_v59 = vadd.f32 %v899_v41, %v547_v56  ;;  %v585_v60 = vadd.f32 %v584_v57, %v570_v55 }
 0x104   : > { %v586_v62 = vadd.f32 %v585_v60, %v571_v58  ;;  %v549_v63 = vadd.f32 %v548_v59, %v431_v19  ;;  %v579_v19 = vmul.f32 %v907_v42, %v907_v42 }
 0x106   : > { %v550_v0 = vadd.f32 %v549_v63, %v434_v26  ;;  %v587_v2 = vadd.f32 %v586_v62, %v572_v61 }
 0x108   : > { %v551_v4 = vadd.f32 %v902_v17, %v550_v0  ;;  %v588_v5 = vadd.f32 %v587_v2, %v573_v1 }
 0x10a   : > { %v589_v7 = vadd.f32 %v588_v5, %v574_v3  ;;  %v552_v8 = vadd.f32 %v903_v21, %v551_v4 }
 0x10c   : > { %v553_v9 = vadd.f32 %v552_v8, %v447_v37  ;;  %v590_v11 = vadd.f32 %v589_v7, %v575_v6 }
 0x10e   : > { %v591_v12 = vadd.f32 %v590_v11, %v576_v10  ;;  %v554_v13 = vadd.f32 %v553_v9, %v450_v49 }
 0x110   : > { %v555_v16 = vadd.f32 %v906_v32, %v554_v13  ;;  %v592_v18 = vadd.f32 %v591_v12, %v577_v14 }
 0x112   : > { %v556_v20 = vadd.f32 %v907_v42, %v555_v16  ;;  %v593_v22 = vadd.f32 %v592_v18, %v578_v15 }
 0x114   : > { %v557_v17 = vrot.slane %v556_v20, 4  ;;  %v594_v23 = vadd.f32 %v593_v22, %v579_v19 }
 0x116   : > { %v558_v24 = vadd.f32 %v557_v17, %v556_v20  ;;  %v595_v25 = vrot.slane %v594_v23, 4 }
 0x118   : > { %v559_v21 = vrot.slane %v558_v24, 2  ;;  %v596_v26 = vadd.f32 %v595_v25, %v594_v23 }
 0x11a   : > { %v560_v27 = vadd.f32 %v559_v21, %v558_v24  ;;  %v597_v28 = vrot.slane %v596_v26, 2 }
 0x11c   : > { %v561_v29 = vrot.slane %v560_v27, 1  ;;  %v598_v30 = vadd.f32 %v597_v28, %v596_v26 }
 0x11e   : > { %v562_v31 = vadd.f32 %v561_v29, %v560_v27  ;;  %v599_v32 = vrot.slane %v598_v30, 1 }
 0x120   : > { %563 = vst [vmem:[%s235_s4] sm:$0x1] %v562_v31  ;;  %v600_v33 = vadd.f32 %v599_v32, %v598_v30 }
 0x122   : > { %601 = vst [vmem:[%s235_s4 + $0x1] sm:$0x1] %v600_v33 }
 0x123 PF: > { %s14_s16 = sadd.s32 1, %s1018_s16   ;;  %s1158_s12 = smov %s1010_s14 }
 0x124   : > { %p11_p8 = scmp.ge.s32.totalorder %s14_s16, 6   ;;  %s1159_s13 = smov %s1014_s15 }
 0x125   : > { %s1160_s14 = smov %s1163_s17  ;;  %s1161_s15 = smov %s1167_s18 }
 0x126   :  { %13 = sbr.rel (!%p11_p8) target bundleno = 3 (0x3), region = 70 }

// kernel: bottleneck_forward.6
= control target key start
LH: loop header
LB: loop body
LE: loop exit
PB: predicated region body
PF: predicated region fallthrough
CT: control target
= control target key end

     0   :  { %s1167_s18 = smov 0   ;;  %s1169_s19 = smov 0   ;;  %s1323_s0 = inlined_call_operand.vmem [shape: bf16[2,16,16,128], index: 0, kind: input, shape index: {}]   ;;  %s1324_s1 = inlined_call_operand.vmem [shape: f32[1,128], index: 1, kind: input, shape index: {}]   ;;  %s1325_s2 = inlined_call_operand.vmem [shape: f32[1,128], index: 2, kind: input, shape index: {}]   ;;  %s1326_s3 = inlined_call_operand.vmem [shape: bf16[128,128], index: 3, kind: input, shape index: {}]   ;;  %s1327_s4 = inlined_call_operand.vmem [shape: bf16[2,16,16,128], index: 4, kind: output, shape index: {0}]   ;;  %s1328_s5 = inlined_call_operand.vmem [shape: f32[2,2,2,128], index: 5, kind: output, shape index: {1}]  }
   0x1   :  { %s1171_s20 = smov 0   ;;  %s1173_s21 = smov 0  }
   0x2   :  { %s1175_s22 = smov 0  }
   0x3 LB: > { %s25_s23 = sadd.s32 1, %s1127_s20  ;;  %s28_s24 = sadd.s32 1, %s1131_s21  ;;  %s1135_s22 = sphi %s1175_s22, %s16_s22   ;;  %s1131_s21 = sphi %s1173_s21, %s1332_s21   ;;  %s1127_s20 = sphi %s1171_s20, %s1331_s20   ;;  %s1123_s19 = sphi %s1169_s19, %s1330_s19   ;;  %s1119_s18 = sphi %s1167_s18, %s1329_s18  }
   0x4   : > { %p26_p0 = scmp.ge.s32.totalorder %s25_s23, 2  ;;  %p844_p1 = scmp.ge.s32.totalorder %s1135_s22, 1 }
   0x5   : > { %p214_p2 = scmp.lt.s32.totalorder %s1135_s22, 5 }
   0x6   : > { %s1334_s23 = smov (%p26_p0, %s25_s23), 0  ;;  %s1336_s24 = smov (!%p26_p0, %s28_s24), %s1131_s21 }
   0x7   : > { %p215_p3 = pnand %p844_p1, %p214_p2  ;;  %p30_p4 = scmp.ge.s32.totalorder %s1336_s24, 2 }
   0x8   : > { %s845_s27 = sshll.u32 (!%p215_p3), %s1119_s18, 3  ;;  %p261_p5 = scmp.lt.s32.totalorder (!%p215_p3), %s1123_s19, 1 }
   0x9   : > { %s1338_s24 = smov (%p30_p4, %s1336_s24), 0  ;;  %218 = sbr.rel (%p215_p3) target bundleno = 291 (0x123), region = 36 }
   0xa   : > { %p263_p6 = scmp.lt.s32.totalorder (!%p215_p3), %s845_s27, 15  ;;  %p284_p7 = scmp.lt.s32.totalorder (!%p215_p3), %s1119_s18, 1 }
   0xe   : > { %v1089_v0 = vld [vmem:[%s1326_s3 + $0x38] sm:$0xff]   ;;  %v1090_v1 = vld [vmem:[%s1326_s3 + $0x30] sm:$0xff]   ;;  %s1340_s19 = smov (!%p261_p5, %s1123_s19), 1  ;;  %v1091_v2 = vld [vmem:[%s1326_s3 + $0x28] sm:$0xff]   ;;  %s1342_s27 = smov (!%p263_p6, %s845_s27), 15 }
   0xf   : > { %1001 = vmatprep.subr.bf16.mxu0 %v1089_v0  ;;  %1033 = vmatprep.subr.bf16.mxu1 %v1089_v0  ;;  %s847_s7 = sshll.u32 %s1340_s19, 5  ;;  %s846_s8 = sshll.u32 %s1342_s27, 1  ;;  %v1092_v3 = vld [vmem:[%s1326_s3 + $0x20] sm:$0xff]   ;;  %v1093_v11 = vld [vmem:[%s1326_s3 + $0x18] sm:$0xff]   ;;  %v1094_v25 = vld [vmem:[%s1326_s3 + $0x10] sm:$0xff]  }
  0x10   : > { %1002 = vmatpush3.bf16.msra.mxu0 %v1089_v0  ;;  %1041 = vmatpush3.bf16.msra.mxu1 %v1089_v0  ;;  %s1212_s9 = sadd.s32 %s847_s7, %s846_s8  ;;  %v1228_v4 = vld [vmem:[%s1324_s1] ss:$0 sm:$0xff]  ;;  %v1095_v41 = vld [vmem:[%s1326_s3 + $0x8] sm:$0xff]   ;;  %s1344_s18 = smov (!%p284_p7, %s1119_s18), 1 }
  0x11   : > { %1003 = vmatprep.subr.bf16.mxu0 %v1090_v1  ;;  %1034 = vmatprep.subr.bf16.mxu1 %v1090_v1  ;;  %s848_s12 = sshll.u32 %s1212_s9, 2  ;;  %v1240_v12 = vld [vmem:[%s1325_s2] ss:$0 sm:$0xff]  ;;  %s853_s9 = sshll.u32 %s1340_s19, 1 }
  0x12   : > { %s1223_s15 = scalar_lea.vmem %s1323_s0, %s848_s12  ;;  %v1096_v58 = vld [vmem:[%s1326_s3] sm:$0xff]   ;;  %s1292_s14 = scalar_lea.vmem %s1327_s4, %s848_s12 }
  0x13   : > { %v900_v5 = vld [vmem:[%s1223_s15] sm:$0xff]   ;;  %v971_v6 = vld [vmem:[%s1223_s15 + $0x8] sm:$0xff]   ;;  %v972_v7 = vld [vmem:[%s1223_s15 + $0x10] sm:$0xff]   ;;  %s287_s12 = sadd.s32 %s853_s9, %s1344_s18 }
  0x14   : > { %1004 = vmatpush3.bf16.msra.mxu0 %v1090_v1  ;;  %1042 = vmatpush3.bf16.msra.mxu1 %v1090_v1  ;;  %v901_v8 = vunpack.c.l.bf16 %v900_v5  ;;  %v902_v9 = vunpack.c.h.bf16 %v900_v5  ;;  %v973_v10 = vld [vmem:[%s1223_s15 + $0x18] sm:$0xff]   ;;  %v905_v13 = vunpack.c.l.bf16 %v971_v6  ;;  %v906_v14 = vunpack.c.h.bf16 %v971_v6  ;;  %v974_v16 = vld [vmem:[%s1223_s15 + $0x20] sm:$0xff]   ;;  %v975_v32 = vld [vmem:[%s1223_s15 + $0x28] sm:$0xff]  }
  0x15   : > { %1005 = vmatprep.subr.bf16.mxu0 %v1091_v2  ;;  %1035 = vmatprep.subr.bf16.mxu1 %v1091_v2  ;;  %v909_v15 = vunpack.c.l.bf16 %v972_v7  ;;  %v910_v19 = vunpack.c.h.bf16 %v972_v7  ;;  %v913_v20 = vunpack.c.l.bf16 %v973_v10  ;;  %v914_v21 = vunpack.c.h.bf16 %v973_v10  ;;  %v976_v36 = vld [vmem:[%s1223_s15 + $0x30] sm:$0xff]   ;;  %v977_v40 = vld [vmem:[%s1223_s15 + $0x38] sm:$0xff]   ;;  %s854_s15 = sshll.u32 %s287_s12, 1 }
  0x16   : > { %v330_v17 = vmul.f32 %v901_v8, %v1228_v4  ;;  %v331_v18 = vmul.f32 %v902_v9, %v1228_v4  ;;  %v917_v24 = vunpack.c.l.bf16 %v974_v16  ;;  %v332_v26 = vmul.f32 %v905_v13, %v1228_v4  ;;  %s289_s25 = scalar_lea.vmem %s1328_s5, %s854_s15 }
  0x17   : > { %v333_v27 = vmul.f32 %v906_v14, %v1228_v4  ;;  %v334_v28 = vmul.f32 %v909_v15, %v1228_v4  ;;  %v918_v29 = vunpack.c.h.bf16 %v974_v16  ;;  %v335_v33 = vmul.f32 %v910_v19, %v1228_v4 }
  0x18   : > { %1006 = vmatpush3.bf16.msra.mxu0 %v1091_v2  ;;  %1043 = vmatpush3.bf16.msra.mxu1 %v1091_v2  ;;  %v353_v22 = vadd.f32 %v1240_v12, %v330_v17  ;;  %v354_v23 = vadd.f32 %v1240_v12, %v331_v18  ;;  %v336_v34 = vmul.f32 %v913_v20, %v1228_v4  ;;  %v921_v45 = vunpack.c.l.bf16 %v975_v32 }
  0x19   : > { %1007 = vmatprep.subr.bf16.mxu0 %v1092_v3  ;;  %1036 = vmatprep.subr.bf16.mxu1 %v1092_v3  ;;  %v337_v35 = vmul.f32 %v914_v21, %v1228_v4  ;;  %v338_v38 = vmul.f32 %v917_v24, %v1228_v4  ;;  %v339_v39 = vmul.f32 %v918_v29, %v1228_v4  ;;  %v922_v48 = vunpack.c.h.bf16 %v975_v32 }
  0x1a   : > { %v369_v30 = vmax.f32 %v353_v22, 0.0  ;;  %v370_v31 = vmax.f32 %v354_v23, 0.0  ;;  %v355_v42 = vadd.f32 %v1240_v12, %v332_v26  ;;  %v356_v43 = vadd.f32 %v1240_v12, %v333_v27 }
  0x1b   : > { %v357_v44 = vadd.f32 %v1240_v12, %v334_v28  ;;  %v361_v46 = vadd.f32 %v1240_v12, %v338_v38  ;;  %v362_v47 = vadd.f32 %v1240_v12, %v339_v39  ;;  %v925_v49 = vunpack.c.l.bf16 %v976_v36 }
  0x1c   : > { %1008 = vmatpush3.bf16.msra.mxu0 %v1092_v3  ;;  %1044 = vmatpush3.bf16.msra.mxu1 %v1092_v3  ;;  %v385_v37 = vpack.c.bf16 %v370_v31, %v369_v30  ;;  %v358_v50 = vadd.f32 %v1240_v12, %v335_v33  ;;  %v340_v51 = vmul.f32 %v921_v45, %v1228_v4  ;;  %v926_v52 = vunpack.c.h.bf16 %v976_v36 }
  0x1d   : > { %1009 = vmatprep.subr.bf16.mxu0 %v1093_v11  ;;  %1037 = vmatprep.subr.bf16.mxu1 %v1093_v11  ;;  %v929_v53 = vunpack.c.l.bf16 %v977_v40  ;;  %v377_v54 = vmax.f32 %v361_v46, 0.0  ;;  %v378_v55 = vmax.f32 %v362_v47, 0.0  ;;  %v341_v56 = vmul.f32 %v922_v48, %v1228_v4 }
  0x1e   : > { %1017 = vmatprep.mubr.bf16.mxu0 %v385_v37  ;;  %v342_v57 = vmul.f32 %v925_v49, %v1228_v4  ;;  %v371_v59 = vmax.f32 %v355_v42, 0.0  ;;  %v363_v60 = vadd.f32 %v1240_v12, %v340_v51  ;;  %v343_v61 = vmul.f32 %v926_v52, %v1228_v4 }
  0x1f   : > { %v930_v62 = vunpack.c.h.bf16 %v977_v40  ;;  %v372_v63 = vmax.f32 %v356_v43, 0.0  ;;  %v389_v0 = vpack.c.bf16 %v378_v55, %v377_v54  ;;  %v364_v1 = vadd.f32 %v1240_v12, %v341_v56 }
  0x20   : > { %1010 = vmatpush3.bf16.msra.mxu0 %v1093_v11  ;;  %1045 = vmatpush3.bf16.msra.mxu1 %v1093_v11  ;;  %v365_v2 = vadd.f32 %v1240_v12, %v342_v57  ;;  %v379_v3 = vmax.f32 %v363_v60, 0.0  ;;  %v366_v5 = vadd.f32 %v1240_v12, %v343_v61  ;;  %v344_v6 = vmul.f32 %v929_v53, %v1228_v4 }
  0x21   : > { %1011 = vmatprep.subr.bf16.mxu0 %v1094_v25  ;;  %1038 = vmatprep.subr.bf16.mxu1 %v1094_v25  ;;  %v345_v7 = vmul.f32 %v930_v62, %v1228_v4  ;;  %v373_v8 = vmax.f32 %v357_v44, 0.0  ;;  %v374_v9 = vmax.f32 %v358_v50, 0.0  ;;  %v380_v10 = vmax.f32 %v364_v1, 0.0 }
  0x22   : > { %v381_v11 = vmax.f32 %v365_v2, 0.0  ;;  %v382_v13 = vmax.f32 %v366_v5, 0.0  ;;  %v359_v14 = vadd.f32 %v1240_v12, %v336_v34  ;;  %v360_v15 = vadd.f32 %v1240_v12, %v337_v35  ;;  %1025 = vmatprep.mubr.bf16.mxu1 %v389_v0 }
  0x23   : > { %v386_v16 = vpack.c.bf16 %v372_v63, %v371_v59  ;;  %v390_v17 = vpack.c.bf16 %v380_v10, %v379_v3  ;;  %v367_v18 = vadd.f32 %v1240_v12, %v344_v6  ;;  %v368_v4 = vadd.f32 %v1240_v12, %v345_v7 }
  0x24   : > { %1012 = vmatpush3.bf16.msra.mxu0 %v1094_v25  ;;  %1046 = vmatpush3.bf16.msra.mxu1 %v1094_v25  ;;  %v387_v19 = vpack.c.bf16 %v374_v9, %v373_v8  ;;  %v391_v20 = vpack.c.bf16 %v382_v13, %v381_v11  ;;  %v375_v21 = vmax.f32 %v359_v14, 0.0  ;;  %v376_v22 = vmax.f32 %v360_v15, 0.0 }
  0x25   : > { %1013 = vmatprep.subr.bf16.mxu0 %v1095_v41  ;;  %1039 = vmatprep.subr.bf16.mxu1 %v1095_v41  ;;  %v383_v23 = vmax.f32 %v367_v18, 0.0  ;;  %v384_v24 = vmax.f32 %v368_v4, 0.0 }
  0x26   : > { %v388_v25 = vpack.c.bf16 %v376_v22, %v375_v21 }
  0x27   : > { %v392_v26 = vpack.c.bf16 %v384_v24, %v383_v23 }
  0x28   : > { %1014 = vmatpush3.bf16.msra.mxu0 %v1095_v41  ;;  %1047 = vmatpush3.bf16.msra.mxu1 %v1095_v41 }
  0x29   : > { %1015 = vmatprep.subr.bf16.mxu0 %v1096_v58  ;;  %1040 = vmatprep.subr.bf16.mxu1 %v1096_v58 }
  0x2c   : > { %1016 = vmatpush3.bf16.msra.mxu0 %v1096_v58  ;;  %1048 = vmatpush3.bf16.msra.mxu1 %v1096_v58 }
  0x2f   : > { %1018 = vmatmul.mubr.bf16.vlgmr.msra.gmra.mxu0 %v386_v16  ;;  %1026 = vmatmul.mubr.bf16.vlgmr.msra.gmra.mxu1 %v390_v17 }
  0x30   : > { %1021 = vmatprep.mubr.bf16.mxu0 %v387_v19  ;;  %1029 = vmatprep.mubr.bf16.mxu1 %v391_v20 }
  0x37   : > { %1022 = vmatmul.mubr.bf16.gmra.mxu0 %v388_v25  ;;  %1030 = vmatmul.mubr.bf16.gmra.mxu1 %v392_v26 }
  0xef   : > { %v1019_v27 = vpop.f32.mrf.mxu0  ;;  %v1027_v28 = vpop.f32.mrf.mxu1 }
  0xf0   : > { %v658_v43 = vmul.f32 %v1019_v27, %v1019_v27  ;;  %v666_v15 = vmul.f32 %v1027_v28, %v1027_v28 }
  0xf1   : > { %v491_v12 = vpop.f32.mrf.mxu0  ;;  %v523_v29 = vpop.f32.mrf.mxu1 }
  0xf2   : > { %v656_v34 = vmul.f32 %v491_v12, %v491_v12  ;;  %v664_v8 = vmul.f32 %v523_v29, %v523_v29 }
  0xf3   : > { %v1020_v30 = vpop.f32.mrf.mxu0  ;;  %v1028_v31 = vpop.f32.mrf.mxu1 }
  0xf4   : > { %v939_v32 = vpack.c.bf16 %v1020_v30, %v1019_v27  ;;  %v959_v33 = vpack.c.bf16 %v1028_v31, %v1027_v28  ;;  %v659_v48 = vmul.f32 %v1020_v30, %v1020_v30  ;;  %v667_v18 = vmul.f32 %v1028_v31, %v1028_v31 }
  0xf5   : > { %v494_v35 = vpop.f32.mrf.mxu0  ;;  %v526_v36 = vpop.f32.mrf.mxu1 }
  0xf6   : > { %978 = vst [vmem:[%s1292_s14 + $0x8] sm:$0xff] %v939_v32   ;;  %v934_v37 = vpack.c.bf16 %v494_v35, %v491_v12  ;;  %v634_v38 = vadd.f32 %v494_v35, %v491_v12  ;;  %v657_v39 = vmul.f32 %v494_v35, %v494_v35  ;;  %982 = vst [vmem:[%s1292_s14 + $0x28] sm:$0xff] %v959_v33  }
  0xf7   : > { %v954_v40 = vpack.c.bf16 %v526_v36, %v523_v29  ;;  %v1023_v41 = vpop.f32.mrf.mxu0  ;;  %v1031_v42 = vpop.f32.mrf.mxu1  ;;  %v665_v13 = vmul.f32 %v526_v36, %v526_v36 }
  0xf8   : > { %935 = vst [vmem:[%s1292_s14] sm:$0xff] %v934_v37   ;;  %v635_v44 = vadd.f32 %v1019_v27, %v634_v38  ;;  %v672_v45 = vadd.f32 %v657_v39, %v656_v34  ;;  %v662_v1 = vmul.f32 %v1023_v41, %v1023_v41  ;;  %v670_v26 = vmul.f32 %v1031_v42, %v1031_v42 }
  0xf9   : > { %981 = vst [vmem:[%s1292_s14 + $0x20] sm:$0xff] %v954_v40   ;;  %v507_v46 = vpop.f32.mrf.mxu0  ;;  %v539_v47 = vpop.f32.mrf.mxu1 }
  0xfa   : > { %v673_v49 = vadd.f32 %v672_v45, %v658_v43  ;;  %v636_v50 = vadd.f32 %v1020_v30, %v635_v44  ;;  %v660_v54 = vmul.f32 %v507_v46, %v507_v46  ;;  %v668_v21 = vmul.f32 %v539_v47, %v539_v47 }
  0xfb   : > { %v1024_v51 = vpop.f32.mrf.mxu0  ;;  %v1032_v52 = vpop.f32.mrf.mxu1 }
  0xfc   : > { %v637_v53 = vadd.f32 %v636_v50, %v507_v46  ;;  %v674_v55 = vadd.f32 %v673_v49, %v659_v48  ;;  %v949_v56 = vpack.c.bf16 %v1024_v51, %v1023_v41  ;;  %v969_v58 = vpack.c.bf16 %v1032_v52, %v1031_v42 }
  0xfd   : > { %v510_v57 = vpop.f32.mrf.mxu0  ;;  %v542_v59 = vpop.f32.mrf.mxu1  ;;  %v663_v5 = vmul.f32 %v1024_v51, %v1024_v51 }
  0xfe   : > { %v675_v60 = vadd.f32 %v674_v55, %v660_v54  ;;  %980 = vst [vmem:[%s1292_s14 + $0x18] sm:$0xff] %v949_v56   ;;  %v944_v61 = vpack.c.bf16 %v510_v57, %v507_v46  ;;  %v638_v62 = vadd.f32 %v637_v53, %v510_v57  ;;  %v661_v63 = vmul.f32 %v510_v57, %v510_v57 }
  0xff   : > { %984 = vst [vmem:[%s1292_s14 + $0x38] sm:$0xff] %v969_v58   ;;  %v964_v0 = vpack.c.bf16 %v542_v59, %v539_v47  ;;  %v669_v25 = vmul.f32 %v542_v59, %v542_v59 }
 0x100   : > { %979 = vst [vmem:[%s1292_s14 + $0x10] sm:$0xff] %v944_v61   ;;  %v639_v2 = vadd.f32 %v1023_v41, %v638_v62  ;;  %v676_v3 = vadd.f32 %v675_v60, %v661_v63 }
 0x101   : > { %983 = vst [vmem:[%s1292_s14 + $0x30] sm:$0xff] %v964_v0  }
 0x102   : > { %v640_v6 = vadd.f32 %v1024_v51, %v639_v2  ;;  %v677_v7 = vadd.f32 %v676_v3, %v662_v1 }
 0x104   : > { %v678_v9 = vadd.f32 %v677_v7, %v663_v5  ;;  %v641_v10 = vadd.f32 %v640_v6, %v523_v29  ;;  %v671_v29 = vmul.f32 %v1032_v52, %v1032_v52 }
 0x106   : > { %v642_v11 = vadd.f32 %v641_v10, %v526_v36  ;;  %v679_v14 = vadd.f32 %v678_v9, %v664_v8 }
 0x108   : > { %v643_v16 = vadd.f32 %v1027_v28, %v642_v11  ;;  %v680_v17 = vadd.f32 %v679_v14, %v665_v13 }
 0x10a   : > { %v681_v4 = vadd.f32 %v680_v17, %v666_v15  ;;  %v644_v19 = vadd.f32 %v1028_v31, %v643_v16 }
 0x10c   : > { %v645_v20 = vadd.f32 %v644_v19, %v539_v47  ;;  %v682_v22 = vadd.f32 %v681_v4, %v667_v18 }
 0x10e   : > { %v683_v23 = vadd.f32 %v682_v22, %v668_v21  ;;  %v646_v24 = vadd.f32 %v645_v20, %v542_v59 }
 0x110   : > { %v647_v27 = vadd.f32 %v1031_v42, %v646_v24  ;;  %v684_v12 = vadd.f32 %v683_v23, %v669_v25 }
 0x112   : > { %v648_v30 = vadd.f32 %v1032_v52, %v647_v27  ;;  %v685_v32 = vadd.f32 %v684_v12, %v670_v26 }
 0x114   : > { %v649_v28 = vrot.slane %v648_v30, 4  ;;  %v686_v33 = vadd.f32 %v685_v32, %v671_v29 }
 0x116   : > { %v650_v34 = vadd.f32 %v649_v28, %v648_v30  ;;  %v687_v35 = vrot.slane %v686_v33, 4 }
 0x118   : > { %v651_v31 = vrot.slane %v650_v34, 2  ;;  %v688_v36 = vadd.f32 %v687_v35, %v686_v33 }
 0x11a   : > { %v652_v37 = vadd.f32 %v651_v31, %v650_v34  ;;  %v689_v38 = vrot.slane %v688_v36, 2 }
 0x11c   : > { %v653_v39 = vrot.slane %v652_v37, 1  ;;  %v690_v40 = vadd.f32 %v689_v38, %v688_v36 }
 0x11e   : > { %v654_v41 = vadd.f32 %v653_v39, %v652_v37  ;;  %v691_v42 = vrot.slane %v690_v40, 1 }
 0x120   : > { %655 = vst [vmem:[%s289_s25] sm:$0x1] %v654_v41  ;;  %v692_v43 = vadd.f32 %v691_v42, %v690_v40 }
 0x122   : > { %693 = vst [vmem:[%s289_s25 + $0x1] sm:$0x1] %v692_v43 }
 0x123 PF: > { %s16_s22 = sadd.s32 1, %s1135_s22   ;;  %s1329_s18 = smov %s1127_s20 }
 0x124   : > { %p13_p8 = scmp.ge.s32.totalorder %s16_s22, 6   ;;  %s1330_s19 = smov %s1131_s21 }
 0x125   : > { %s1331_s20 = smov %s1334_s23  ;;  %s1332_s21 = smov %s1338_s24 }
 0x126   :  { %15 = sbr.rel (!%p13_p8) target bundleno = 3 (0x3), region = 78 }

// kernel: bottleneck_forward.5
= control target key start
LH: loop header
LB: loop body
LE: loop exit
PB: predicated region body
PF: predicated region fallthrough
CT: control target
= control target key end

     0   :  { %s3681_s18 = smov 0   ;;  %s4890_s0 = inlined_call_operand.vmem [shape: bf16[2,16,16,128], index: 0, kind: input, shape index: {}]   ;;  %s4891_s1 = inlined_call_operand.vmem [shape: f32[1,128], index: 1, kind: input, shape index: {}]   ;;  %s4892_s2 = inlined_call_operand.vmem [shape: f32[1,128], index: 2, kind: input, shape index: {}]   ;;  %s4893_s3 = inlined_call_operand.vmem [shape: bf16[3,384,128], index: 3, kind: input, shape index: {}]   ;;  %s4894_s4 = inlined_call_operand.vmem [shape: bf16[2,16,16,128], index: 4, kind: output, shape index: {0}]   ;;  %s4895_s5 = inlined_call_operand.vmem [shape: f32[2,2,128], index: 5, kind: output, shape index: {1}]  }
   0x1 LB: > { %s2571_s19 = sadd.s32 4294967295, %s3648_s18   ;;  %p2575_p0 = scmp.ge.s32.totalorder %s3648_s18, 1  ;;  %s3648_s18 = sphi %s3681_s18, %s16_s18  }
   0x2   : > { %p190_p1 = scmp.lt.s32.totalorder %s3648_s18, 3 }
   0x4   : > { %p191_p2 = pnand %p2575_p0, %p190_p1 }
   0x6   : > { %194 = sbr.rel (%p191_p2) target bundleno = 550 (0x226), region = 36 }
   0xb   : > { %v3570_v0 = vld [vmem:[%s4893_s3 + $0x138] sm:$0xff]   ;;  %v3572_v2 = vld [vmem:[%s4893_s3 + $0x130] sm:$0xff]   ;;  %p222_p3 = scmp.lt.s32.totalorder %s2571_s19, 1  ;;  %v3574_v4 = vld [vmem:[%s4893_s3 + $0x128] sm:$0xff]   ;;  %vm555_vm0 = vcmask 1040384   ;;  %vm622_vm4 = vcmask 1047552  }
   0xc   : > { %v3571_v1 = vld [vmem:[%s4893_s3 + $0xf8] sm:$0xff]   ;;  %2993 = vmatprep.subr.bf16.mxu0 %v3570_v0  ;;  %3545 = vmatprep.subr.bf16.mxu1 %v3570_v0  ;;  %v3573_v3 = vld [vmem:[%s4893_s3 + $0xf0] sm:$0xff]   ;;  %v3575_v5 = vld [vmem:[%s4893_s3 + $0xe8] sm:$0xff]   ;;  %vm556_vm1 = vsmask.f32 256 }
   0xd   : > { %2994 = vmatpush3.bf16.msra.mxu0 %v3571_v1  ;;  %3553 = vmatpush3.bf16.msra.mxu1 %v3571_v1  ;;  %s4941_s19 = smov (!%p222_p3, %s2571_s19), 1  ;;  %v3576_v6 = vld [vmem:[%s4893_s3 + $0x120] sm:$0xff]   ;;  %v3578_v8 = vld [vmem:[%s4893_s3 + $0x118] sm:$0xff]   ;;  %v3580_v10 = vld [vmem:[%s4893_s3 + $0x110] sm:$0xff]   ;;  %vm623_vm3 = vsmask.f32 7424 }
   0xe   : > { %2995 = vmatprep.subr.bf16.mxu0 %v3572_v2  ;;  %3546 = vmatprep.subr.bf16.mxu1 %v3572_v2  ;;  %s2785_s9 = sshll.u32 %s4941_s19, 7  ;;  %v3577_v7 = vld [vmem:[%s4893_s3 + $0xe0] sm:$0xff]   ;;  %v3579_v9 = vld [vmem:[%s4893_s3 + $0xd8] sm:$0xff]   ;;  %v3581_v19 = vld [vmem:[%s4893_s3 + $0xd0] sm:$0xff]  }
   0xf   : > { %s3724_s16 = scalar_lea.vmem %s4890_s0, %s2785_s9  ;;  %v3736_v12 = vld [vmem:[%s4891_s1] ss:$0 sm:$0xff]  ;;  %v3582_v22 = vld [vmem:[%s4893_s3 + $0x108] sm:$0xff]   ;;  %v3586_v52 = vld [vmem:[%s4893_s3 + $0x178] sm:$0xff]   ;;  %s4766_s21 = scalar_lea.vmem %s4894_s4, %s2785_s9 }
  0x10   : > { %v2820_v11 = vld [vmem:[%s3724_s16] sm:$0xff]   ;;  %v2963_v25 = vld [vmem:[%s3724_s16 + $0x8] sm:$0xff]   ;;  %v2964_v45 = vld [vmem:[%s3724_s16 + $0x10] sm:$0xff]   ;;  %s2580_s9 = sshll.u32 %s4941_s19, 1 }
  0x11   : > { %2996 = vmatpush3.bf16.msra.mxu0 %v3573_v3  ;;  %3554 = vmatpush3.bf16.msra.mxu1 %v3573_v3  ;;  %v2821_v13 = vunpack.c.l.bf16 %v2820_v11  ;;  %v2822_v14 = vunpack.c.h.bf16 %v2820_v11  ;;  %v2974_v15 = vld [vmem:[%s3724_s16 + $0x60] sm:$0xff]   ;;  %v2825_v28 = vunpack.c.l.bf16 %v2963_v25  ;;  %v2826_v29 = vunpack.c.h.bf16 %v2963_v25  ;;  %v2975_v30 = vld [vmem:[%s3724_s16 + $0x68] sm:$0xff]   ;;  %v3587_v58 = vld [vmem:[%s4893_s3 + $0xb8] sm:$0xff]   ;;  %s235_s24 = scalar_lea.vmem %s4895_s5, %s2580_s9 }
  0x12   : > { %2997 = vmatprep.subr.bf16.mxu0 %v3574_v4  ;;  %3547 = vmatprep.subr.bf16.mxu1 %v3574_v4  ;;  %v3742_v16 = vld [vmem:[%s4892_s2] ss:$0 sm:$0xff]  ;;  %v2869_v17 = vunpack.c.l.bf16 %v2974_v15  ;;  %v2870_v18 = vunpack.c.h.bf16 %v2974_v15  ;;  %v2873_v33 = vunpack.c.l.bf16 %v2975_v30  ;;  %v2874_v34 = vunpack.c.h.bf16 %v2975_v30  ;;  %v3583_v35 = vld [vmem:[%s4893_s3 + $0xc8] sm:$0xff]   ;;  %v2976_v61 = vld [vmem:[%s3724_s16 + $0x70] sm:$0xff]  }
  0x13   : > { %v308_v20 = vmul.f32 %v2821_v13, %v3736_v12  ;;  %v309_v21 = vmul.f32 %v2822_v14, %v3736_v12  ;;  %v310_v38 = vmul.f32 %v2825_v28, %v3736_v12  ;;  %v311_v39 = vmul.f32 %v2826_v29, %v3736_v12  ;;  %v3584_v40 = vld [vmem:[%s4893_s3 + $0x100] sm:$0xff]   ;;  %vm3803_vm2 = vmand %vm555_vm0, %vm556_vm1  ;;  %v3591_v29 = vld [vmem:[%s4893_s3 + $0xb0] sm:$0xff]  }
  0x14   : > { %v332_v23 = vmul.f32 %v2869_v17, %v3736_v12  ;;  %v333_v24 = vmul.f32 %v2870_v18, %v3736_v12  ;;  %v334_v43 = vmul.f32 %v2873_v33, %v3736_v12  ;;  %v335_v44 = vmul.f32 %v2874_v34, %v3736_v12  ;;  %v3585_v46 = vld [vmem:[%s4893_s3 + $0xc0] sm:$0xff]   ;;  %v2965_v17 = vld [vmem:[%s3724_s16 + $0x18] sm:$0xff]   ;;  %v3589_v33 = vld [vmem:[%s4893_s3 + $0x168] sm:$0xff]  }
  0x15   : > { %2998 = vmatpush3.bf16.msra.mxu0 %v3575_v5  ;;  %3555 = vmatpush3.bf16.msra.mxu1 %v3575_v5  ;;  %v347_v26 = vadd.f32 %v3742_v16, %v308_v20  ;;  %v348_v27 = vadd.f32 %v3742_v16, %v309_v21  ;;  %v349_v48 = vadd.f32 %v3742_v16, %v310_v38  ;;  %v2829_v50 = vunpack.c.l.bf16 %v2964_v45  ;;  %vm3961_vm5 = vmand %vm622_vm4, %vm623_vm3 }
  0x16   : > { %2999 = vmatprep.subr.bf16.mxu0 %v3576_v6  ;;  %3548 = vmatprep.subr.bf16.mxu1 %v3576_v6  ;;  %v371_v31 = vadd.f32 %v3742_v16, %v332_v23  ;;  %v372_v32 = vadd.f32 %v3742_v16, %v333_v24  ;;  %v350_v49 = vadd.f32 %v3742_v16, %v311_v39  ;;  %v2830_v55 = vunpack.c.h.bf16 %v2964_v45  ;;  %v3588_v23 = vld [vmem:[%s4893_s3 + $0x170] sm:$0xff]  }
  0x17   : > { %v379_v36 = vmax.f32 %v347_v26, 0.0  ;;  %v380_v37 = vmax.f32 %v348_v27, 0.0  ;;  %v373_v53 = vadd.f32 %v3742_v16, %v334_v43  ;;  %v374_v54 = vadd.f32 %v3742_v16, %v335_v44  ;;  %v2977_v26 = vld [vmem:[%s3724_s16 + $0x78] sm:$0xff]   ;;  %v3621_v6 = vld [vmem:[%s4893_s3 + $0x1f0] sm:$0xff]  }
  0x18   : > { %v403_v41 = vmax.f32 %v371_v31, 0.0  ;;  %v404_v42 = vmax.f32 %v372_v32, 0.0  ;;  %v381_v59 = vmax.f32 %v349_v48, 0.0  ;;  %v382_v60 = vmax.f32 %v350_v49, 0.0 }
  0x19   : > { %3000 = vmatpush3.bf16.msra.mxu0 %v3577_v7  ;;  %3556 = vmatpush3.bf16.msra.mxu1 %v3577_v7  ;;  %v3774_v47 = vpack.c.bf16 %v380_v37, %v379_v36  ;;  %v405_v0 = vmax.f32 %v373_v53, 0.0  ;;  %v406_v1 = vmax.f32 %v374_v54, 0.0  ;;  %v312_v4 = vmul.f32 %v2829_v50, %v3736_v12 }
  0x1a   : > { %3001 = vmatprep.subr.bf16.mxu0 %v3578_v8  ;;  %3549 = vmatprep.subr.bf16.mxu1 %v3578_v8  ;;  %v3778_v51 = vpack.c.bf16 %v404_v42, %v403_v41  ;;  %v3797_v3 = vpack.c.bf16 %v382_v60, %v381_v59  ;;  %v313_v5 = vmul.f32 %v2830_v55, %v3736_v12  ;;  %v2834_v36 = vunpack.c.h.bf16 %v2965_v17  ;;  %v3595_v41 = vld [vmem:[%s4893_s3 + $0xa8] sm:$0xff]   ;;  %v3590_v59 = vld [vmem:[%s4893_s3 + $0x160] sm:$0xff]  }
  0x1b   : > { %v428_v56 = vshrl.u32 %v3774_v47, 16  ;;  %v431_v57 = vshll.u32 %v3774_v47, 16  ;;  %914 = vmatprep.mubr.bf16.mxu0 %v3774_v47  ;;  %v3809_v8 = vpack.c.bf16 %v406_v1, %v405_v0  ;;  %v351_v15 = vadd.f32 %v3742_v16, %v312_v4 }
  0x1c   : > { %v512_v62 = vshrl.u32 %v3778_v51, 16  ;;  %v515_v63 = vshll.u32 %v3778_v51, 16  ;;  %1010 = vmatprep.mubr.bf16.mxu1 %v3778_v51  ;;  %v435_v13 = vshrl.u32 %v3797_v3, 16  ;;  %v438_v14 = vshll.u32 %v3797_v3, 16 }
  0x1d   : > { %3002 = vmatpush3.bf16.msra.mxu0 %v3579_v9  ;;  %3557 = vmatpush3.bf16.msra.mxu1 %v3579_v9  ;;  %v430_v2 = vrot.slane %v428_v56, 7  ;;  %v2877_v9 = vunpack.c.l.bf16 %v2976_v61  ;;  %v522_v20 = vshll.u32 %v3809_v8, 16  ;;  %v352_v21 = vadd.f32 %v3742_v16, %v313_v5 }
  0x1e   : > { %3003 = vmatprep.subr.bf16.mxu0 %v3580_v10  ;;  %3550 = vmatprep.subr.bf16.mxu1 %v3580_v10  ;;  %v514_v7 = vrot.slane %v512_v62, 7  ;;  %v2878_v10 = vunpack.c.h.bf16 %v2976_v61  ;;  %v437_v24 = vrot.slane %v435_v13, 7  ;;  %v383_v25 = vmax.f32 %v351_v15, 0.0 }
  0x1f   : > { %v433_v11 = vor.u32 %v431_v57, %v430_v2  ;;  %v384_v30 = vmax.f32 %v352_v21, 0.0  ;;  %v336_v31 = vmul.f32 %v2877_v9, %v3736_v12  ;;  %v315_v45 = vmul.f32 %v2834_v36, %v3736_v12 }
  0x20   : > { %v517_v18 = vor.u32 %v515_v63, %v514_v7  ;;  %v440_v32 = vor.u32 %v438_v14, %v437_v24  ;;  %v337_v34 = vmul.f32 %v2878_v10, %v3736_v12 }
  0x21   : > { %3004 = vmatpush3.bf16.msra.mxu0 %v3581_v19  ;;  %3558 = vmatpush3.bf16.msra.mxu1 %v3581_v19  ;;  %v519_v19 = vshrl.u32 %v3809_v8, 16  ;;  %v3853_v38 = vpack.c.bf16 %v384_v30, %v383_v25  ;;  %v375_v39 = vadd.f32 %v3742_v16, %v336_v31  ;;  %v354_v55 = vadd.f32 %v3742_v16, %v315_v45  ;;  %v3604_v31 = vld [vmem:[%s4893_s3 + $0x98] sm:$0xff]  }
  0x22   : > { %3005 = vmatprep.subr.bf16.mxu0 %v3582_v22  ;;  %3551 = vmatprep.subr.bf16.mxu1 %v3582_v22  ;;  %v3824_v22 = vsel %vm3803_vm2, 0, %v433_v11  ;;  %v3835_v27 = vsel %vm3803_vm2, 0, %v517_v18  ;;  %v3862_v42 = vsel %vm3803_vm2, 0, %v440_v32  ;;  %v376_v43 = vadd.f32 %v3742_v16, %v337_v34 }
  0x23   : > { %v521_v28 = vrot.slane %v519_v19, 7  ;;  %v407_v49 = vmax.f32 %v375_v39, 0.0  ;;  %v442_v50 = vshrl.u32 %v3853_v38, 16  ;;  %v386_v5 = vmax.f32 %v354_v55, 0.0 }
  0x24   : > { %v408_v53 = vmax.f32 %v376_v43, 0.0 }
  0x25   : > { %3006 = vmatpush3.bf16.msra.mxu0 %v3583_v35  ;;  %3559 = vmatpush3.bf16.msra.mxu1 %v3583_v35  ;;  %v2833_v35 = vunpack.c.l.bf16 %v2965_v17  ;;  %v524_v37 = vor.u32 %v522_v20, %v521_v28  ;;  %v444_v60 = vrot.slane %v442_v50, 7  ;;  %v3599_v17 = vld [vmem:[%s4893_s3 + $0xa0] sm:$0xff]  }
  0x26   : > { %3007 = vmatprep.subr.bf16.mxu0 %v3584_v40  ;;  %3552 = vmatprep.subr.bf16.mxu1 %v3584_v40  ;;  %v2881_v40 = vunpack.c.l.bf16 %v2977_v26  ;;  %v3882_v2 = vpack.c.bf16 %v408_v53, %v407_v49 }
  0x27   : > { %v314_v44 = vmul.f32 %v2833_v35, %v3736_v12  ;;  %v3870_v48 = vsel %vm3803_vm2, 0, %v524_v37 }
  0x28   : > { %v338_v61 = vmul.f32 %v2881_v40, %v3736_v12  ;;  %v526_v18 = vshrl.u32 %v3882_v2, 16  ;;  %v529_v21 = vshll.u32 %v3882_v2, 16  ;;  %v574_v40 = vrot.slane %v431_v57, 1 }
  0x29   : > { %3008 = vmatpush3.bf16.msra.mxu0 %v3585_v46  ;;  %3560 = vmatpush3.bf16.msra.mxu1 %v3585_v46  ;;  %v2966_v46 = vld [vmem:[%s3724_s16 + $0x20] sm:$0xff]   ;;  %v353_v54 = vadd.f32 %v3742_v16, %v314_v44 }
  0x2a   : > { %3401 = vmatprep.subr.bf16.mxu1 %v3586_v52  ;;  %3449 = vmatprep.subr.bf16.mxu0 %v3587_v58  ;;  %v2837_v0 = vunpack.c.l.bf16 %v2966_v46  ;;  %v2838_v1 = vunpack.c.h.bf16 %v2966_v46  ;;  %v377_v10 = vadd.f32 %v3742_v16, %v338_v61  ;;  %v528_v34 = vrot.slane %v526_v18, 7 }
  0x2b   : > { %v385_v4 = vmax.f32 %v353_v54, 0.0 }
  0x2c   : > { %915 = vmatmul.mubr.bf16.vlgmr.msra.gmra.mxu0 %v3824_v22  ;;  %1011 = vmatmul.mubr.bf16.vlgmr.msra.gmra.mxu1 %v3835_v27  ;;  %v316_v11 = vmul.f32 %v2837_v0, %v3736_v12  ;;  %v317_v15 = vmul.f32 %v2838_v1, %v3736_v12  ;;  %v409_v28 = vmax.f32 %v377_v10, 0.0  ;;  %v531_v43 = vor.u32 %v529_v21, %v528_v34  ;;  %v3607_v1 = vld [vmem:[%s4893_s3 + $0x90] sm:$0xff]  }
  0x2d   : > { %3450 = vmatpush3.bf16.msra.mxu0 %v3587_v58  ;;  %3402 = vmatpush3.bf16.msra.mxu1 %v3586_v52  ;;  %v445_v52 = vshll.u32 %v3853_v38, 16  ;;  %v2882_v58 = vunpack.c.h.bf16 %v2977_v26  ;;  %v3901_v24 = vpack.c.bf16 %v386_v5, %v385_v4  ;;  %v2967_v26 = vld [vmem:[%s3724_s16 + $0x28] sm:$0xff]  }
  0x2e   : > { %922 = vmatprep.mubr.bf16.mxu0 %v3797_v3  ;;  %3403 = vmatprep.subr.bf16.mxu1 %v3588_v23  ;;  %v356_v30 = vadd.f32 %v3742_v16, %v317_v15  ;;  %v2841_v46 = vunpack.c.l.bf16 %v2967_v26  ;;  %v2842_v57 = vunpack.c.h.bf16 %v2967_v26  ;;  %v3934_v53 = vsel %vm3803_vm2, 0, %v531_v43 }
  0x2f   : > { %1018 = vmatprep.mubr.bf16.mxu1 %v3809_v8  ;;  %3451 = vmatprep.subr.bf16.mxu0 %v3591_v29  ;;  %v339_v7 = vmul.f32 %v2882_v58, %v3736_v12  ;;  %v447_v9 = vor.u32 %v445_v52, %v444_v60  ;;  %v449_v35 = vshrl.u32 %v3901_v24, 16  ;;  %v452_v36 = vshll.u32 %v3901_v24, 16  ;;  %v2968_v58 = vld [vmem:[%s3724_s16 + $0x30] sm:$0xff]  }
  0x30   : > { %v388_v39 = vmax.f32 %v356_v30, 0.0  ;;  %v575_v60 = vor.u32 %v574_v40, %v428_v56  ;;  %v318_v0 = vmul.f32 %v2841_v46, %v3736_v12  ;;  %v3594_v56 = vld [vmem:[%s4893_s3 + $0x148] sm:$0xff]   ;;  %v578_v15 = vrot.slane %v445_v52, 1 }
  0x31   : > { %3452 = vmatpush3.bf16.msra.mxu0 %v3591_v29  ;;  %3404 = vmatpush3.bf16.msra.mxu1 %v3588_v23  ;;  %v3592_v23 = vld [vmem:[%s4893_s3 + $0x158] sm:$0xff]   ;;  %v378_v25 = vadd.f32 %v3742_v16, %v339_v7  ;;  %v355_v29 = vadd.f32 %v3742_v16, %v316_v11  ;;  %v3913_v32 = vsel %vm3803_vm2, 0, %v447_v9  ;;  %v451_v45 = vrot.slane %v449_v35, 7  ;;  %v3612_v52 = vld [vmem:[%s4893_s3 + $0x88] sm:$0xff]   ;;  %v3623_v9 = vld [vmem:[%s4893_s3 + $0x230] sm:$0xff]  }
  0x32   : > { %3453 = vmatprep.subr.bf16.mxu0 %v3595_v41  ;;  %3405 = vmatprep.subr.bf16.mxu1 %v3589_v33  ;;  %v319_v7 = vmul.f32 %v2842_v57, %v3736_v12  ;;  %v357_v11 = vadd.f32 %v3742_v16, %v318_v0  ;;  %v579_v43 = vor.u32 %v578_v15, %v442_v50  ;;  %v3596_v57 = vld [vmem:[%s4893_s3 + $0x140] sm:$0xff]  }
  0x33   : > { %v387_v37 = vmax.f32 %v355_v29, 0.0 }
  0x34   : > { %923 = vmatmul.mubr.bf16.gmra.mxu0 %v3862_v42  ;;  %1019 = vmatmul.mubr.bf16.gmra.mxu1 %v3870_v48  ;;  %v358_v26 = vadd.f32 %v3742_v16, %v319_v7  ;;  %v389_v30 = vmax.f32 %v357_v11, 0.0 }
  0x35   : > { %930 = vmatprep.mubr.bf16.mxu0 %v3853_v38  ;;  %3406 = vmatpush3.bf16.msra.mxu1 %v3589_v33  ;;  %v410_v33 = vmax.f32 %v378_v25, 0.0  ;;  %v3930_v49 = vpack.c.bf16 %v388_v39, %v387_v37  ;;  %v2969_v25 = vld [vmem:[%s3724_s16 + $0x38] sm:$0xff]   ;;  %v3986_v37 = vsel %vm3961_vm5, %v575_v60, 0 }
  0x36   : > { %1026 = vmatprep.mubr.bf16.mxu1 %v3882_v2  ;;  %3407 = vmatprep.subr.bf16.mxu1 %v3590_v59  ;;  %v2850_v60 = vunpack.c.h.bf16 %v2969_v25 }
  0x37   : > { %3454 = vmatpush3.bf16.msra.mxu0 %v3595_v41  ;;  %v3923_v44 = vpack.c.bf16 %v410_v33, %v409_v28  ;;  %v3593_v41 = vld [vmem:[%s4893_s3 + $0x150] sm:$0xff]   ;;  %v456_v61 = vshrl.u32 %v3930_v49, 16  ;;  %v459_v5 = vshll.u32 %v3930_v49, 16  ;;  %v2846_v28 = vunpack.c.h.bf16 %v2968_v58 }
  0x38   : > { %3455 = vmatprep.subr.bf16.mxu0 %v3599_v17 }
  0x39   : > { %3408 = vmatpush3.bf16.msra.mxu1 %v3590_v59  ;;  %v4896_v54 = vshrl.u32 %v3923_v44, 16  ;;  %v4897_v55 = vshll.u32 %v3923_v44, 16  ;;  %v576_v59 = vrot.slane %v438_v14, 1  ;;  %v454_v14 = vor.u32 %v452_v36, %v451_v45 }
  0x3a   : > { %3409 = vmatprep.subr.bf16.mxu1 %v3592_v23  ;;  %v458_v10 = vrot.slane %v456_v61, 7  ;;  %v321_v39 = vmul.f32 %v2846_v28, %v3736_v12  ;;  %v580_v45 = vrot.slane %v452_v36, 1  ;;  %v582_v15 = vrot.slane %v459_v5, 1 }
  0x3b   : > { %3456 = vmatpush3.bf16.msra.mxu0 %v3599_v17  ;;  %v535_v4 = vrot.slane %v4896_v54, 7  ;;  %v2845_v17 = vunpack.c.l.bf16 %v2968_v58  ;;  %v577_v29 = vor.u32 %v576_v59, %v435_v13  ;;  %v3982_v33 = vsel %vm3803_vm2, 0, %v454_v14  ;;  %v2970_v13 = vld [vmem:[%s3724_s16 + $0x40] sm:$0xff]  }
  0x3c   : > { %931 = vmatmul.mubr.bf16.gmra.mxu0 %v3913_v32  ;;  %3457 = vmatprep.subr.bf16.mxu0 %v3604_v31  ;;  %v360_v59 = vadd.f32 %v3742_v16, %v321_v39  ;;  %v461_v0 = vor.u32 %v459_v5, %v458_v10  ;;  %v2853_v36 = vunpack.c.l.bf16 %v2970_v13  ;;  %v2854_v14 = vunpack.c.h.bf16 %v2970_v13  ;;  %v3597_v10 = vld [vmem:[%s4893_s3 + $0x78] sm:$0xff]  }
  0x3d   : > { %1027 = vmatmul.mubr.bf16.gmra.mxu1 %v3934_v53  ;;  %938 = vmatprep.mubr.bf16.mxu0 %v3901_v24  ;;  %v320_v34 = vmul.f32 %v2845_v17, %v3736_v12  ;;  %v2971_v17 = vld [vmem:[%s3724_s16 + $0x48] sm:$0xff]  }
  0x3e   : > { %3410 = vmatpush3.bf16.msra.mxu1 %v3592_v23  ;;  %1034 = vmatprep.mubr.bf16.mxu1 %v3923_v44  ;;  %v538_v23 = vor.u32 %v4897_v55, %v535_v4  ;;  %v3615_v4 = vld [vmem:[%s4893_s3 + $0x80] sm:$0xff]   ;;  %v392_v11 = vmax.f32 %v360_v59, 0.0  ;;  %v2857_v13 = vunpack.c.l.bf16 %v2971_v17  ;;  %v4033_v59 = vsel %vm3803_vm2, 0, %v461_v0 }
  0x3f   : > { %3411 = vmatprep.subr.bf16.mxu1 %v3593_v41  ;;  %3458 = vmatpush3.bf16.msra.mxu0 %v3604_v31  ;;  %v390_v31 = vmax.f32 %v358_v26, 0.0  ;;  %v359_v46 = vadd.f32 %v3742_v16, %v320_v34  ;;  %v325_v26 = vmul.f32 %v2854_v14, %v3736_v12 }
  0x40   : > { %3459 = vmatprep.subr.bf16.mxu0 %v3607_v1  ;;  %v3992_v40 = vsel %vm3803_vm2, 0, %v538_v23  ;;  %v324_v23 = vmul.f32 %v2853_v36, %v3736_v12  ;;  %v2972_v36 = vld [vmem:[%s3724_s16 + $0x50] sm:$0xff]  }
  0x41   : > { %v4000_v58 = vpack.c.bf16 %v390_v31, %v389_v30  ;;  %v391_v50 = vmax.f32 %v359_v46, 0.0  ;;  %v364_v39 = vadd.f32 %v3742_v16, %v325_v26  ;;  %v3619_v46 = vld [vmem:[%s4893_s3 + $0x1f8] sm:$0xff]  }
  0x42   : > { %3412 = vmatpush3.bf16.msra.mxu1 %v3593_v41  ;;  %v2849_v41 = vunpack.c.l.bf16 %v2969_v25  ;;  %v323_v25 = vmul.f32 %v2850_v60, %v3736_v12  ;;  %v363_v31 = vadd.f32 %v3742_v16, %v324_v23  ;;  %v581_v60 = vor.u32 %v580_v45, %v449_v35  ;;  %v3600_v23 = vld [vmem:[%s4893_s3 + $0x70] sm:$0xff]  }
  0x43   : > { %3413 = vmatprep.subr.bf16.mxu1 %v3594_v56  ;;  %3460 = vmatpush3.bf16.msra.mxu0 %v3607_v1  ;;  %v463_v7 = vshrl.u32 %v4000_v58, 16  ;;  %v466_v28 = vshll.u32 %v4000_v58, 16 }
  0x44   : > { %939 = vmatmul.mubr.bf16.gmra.mxu0 %v3982_v33  ;;  %3461 = vmatprep.subr.bf16.mxu0 %v3612_v52  ;;  %v322_v1 = vmul.f32 %v2849_v41, %v3736_v12  ;;  %v362_v34 = vadd.f32 %v3742_v16, %v323_v25  ;;  %v4037_v41 = vsel %vm3961_vm5, %v577_v29, 0  ;;  %v395_v0 = vmax.f32 %v363_v31, 0.0 }
  0x45   : > { %1035 = vmatmul.mubr.bf16.gmra.mxu1 %v3992_v40  ;;  %946 = vmatprep.mubr.bf16.mxu0 %v3930_v49  ;;  %v465_v5 = vrot.slane %v463_v7, 7  ;;  %v4049_v29 = vsel %vm3961_vm5, %v579_v43, 0  ;;  %v3601_v43 = vld [vmem:[%s4893_s3 + $0x30] sm:$0xff]  }
  0x46   : > { %3414 = vmatpush3.bf16.msra.mxu1 %v3594_v56  ;;  %3417 = vmatprep.mubr.bf16.mxu1 %v3986_v37  ;;  %v4022_v56 = vpack.c.bf16 %v392_v11, %v391_v50  ;;  %v361_v30 = vadd.f32 %v3742_v16, %v322_v1  ;;  %v583_v50 = vor.u32 %v582_v15, %v456_v61  ;;  %v394_v11 = vmax.f32 %v362_v34, 0.0 }
  0x47   : > { %3415 = vmatprep.subr.bf16.mxu1 %v3596_v57  ;;  %3462 = vmatpush3.bf16.msra.mxu0 %v3612_v52  ;;  %v3598_v52 = vld [vmem:[%s4893_s3 + $0x38] sm:$0xff]   ;;  %v396_v1 = vmax.f32 %v364_v39, 0.0  ;;  %v468_v25 = vor.u32 %v466_v28, %v465_v5  ;;  %v326_v15 = vmul.f32 %v2857_v13, %v3736_v12  ;;  %v3602_v39 = vld [vmem:[%s4893_s3 + $0x68] sm:$0xff]  }
  0x48   : > { %3463 = vmatprep.subr.bf16.mxu0 %v3615_v4  ;;  %v393_v14 = vmax.f32 %v361_v30, 0.0  ;;  %v470_v35 = vshrl.u32 %v4022_v56, 16  ;;  %v4073_v26 = vsel %vm3961_vm5, %v583_v50, 0  ;;  %v473_v5 = vshll.u32 %v4022_v56, 16 }
  0x49   : > { %v4058_v45 = vpack.c.bf16 %v396_v1, %v395_v0  ;;  %v584_v30 = vrot.slane %v466_v28, 1  ;;  %v4078_v34 = vsel %vm3803_vm2, 0, %v468_v25 }
  0x4a   : > { %3416 = vmatpush3.bf16.msra.mxu1 %v3596_v57  ;;  %v4056_v61 = vpack.c.bf16 %v394_v11, %v393_v14  ;;  %v2858_v57 = vunpack.c.h.bf16 %v2971_v17  ;;  %v4069_v17 = vsel %vm3961_vm5, %v581_v60, 0  ;;  %v472_v31 = vrot.slane %v470_v35, 7  ;;  %v3603_v14 = vld [vmem:[%s4893_s3 + $0x28] sm:$0xff]  }
  0x4b   : > { %3129 = vmatprep.subr.bf16.mxu1 %v3597_v10  ;;  %3464 = vmatpush3.bf16.msra.mxu0 %v3615_v4  ;;  %v2861_v4 = vunpack.c.l.bf16 %v2972_v36  ;;  %v2862_v10 = vunpack.c.h.bf16 %v2972_v36  ;;  %v586_v60 = vrot.slane %v473_v5, 1  ;;  %v487_v36 = vshll.u32 %v4058_v45, 16 }
  0x4c   : > { %947 = vmatmul.mubr.bf16.gmra.mxu0 %v4033_v59  ;;  %3265 = vmatprep.subr.bf16.mxu0 %v3619_v46  ;;  %v327_v13 = vmul.f32 %v2858_v57, %v3736_v12  ;;  %v365_v46 = vadd.f32 %v3742_v16, %v326_v15  ;;  %v477_v50 = vshrl.u32 %v4056_v61, 16  ;;  %v480_v28 = vshll.u32 %v4056_v61, 16  ;;  %v3605_v57 = vld [vmem:[%s4893_s3 + $0x60] sm:$0xff]  }
  0x4d   : > { %3418 = vmatmul.mubr.bf16.vlgmr.msra.gmra.mxu1 %v4037_v41  ;;  %954 = vmatprep.mubr.bf16.mxu0 %v4000_v58  ;;  %v328_v1 = vmul.f32 %v2861_v4, %v3736_v12  ;;  %v329_v25 = vmul.f32 %v2862_v10, %v3736_v12  ;;  %v475_v4 = vor.u32 %v473_v5, %v472_v31  ;;  %v598_v31 = vrot.slane %v515_v63, 1 }
  0x4e   : > { %3130 = vmatpush3.bf16.msra.mxu1 %v3598_v52  ;;  %3421 = vmatprep.mubr.bf16.mxu1 %v4049_v29  ;;  %v2973_v52 = vld [vmem:[%s3724_s16 + $0x58] sm:$0xff]   ;;  %v366_v11 = vadd.f32 %v3742_v16, %v327_v13  ;;  %v397_v0 = vmax.f32 %v365_v46, 0.0  ;;  %v587_v46 = vor.u32 %v586_v60, %v470_v35  ;;  %v479_v10 = vrot.slane %v477_v50, 7 }
  0x4f   : > { %3131 = vmatprep.subr.bf16.mxu1 %v3600_v23  ;;  %v585_v23 = vor.u32 %v584_v30, %v463_v7  ;;  %v367_v54 = vadd.f32 %v3742_v16, %v328_v1  ;;  %v368_v55 = vadd.f32 %v3742_v16, %v329_v25  ;;  %v2865_v13 = vunpack.c.l.bf16 %v2973_v52  ;;  %v3606_v7 = vld [vmem:[%s4893_s3 + $0x20] sm:$0xff]   ;;  %v3608_v35 = vld [vmem:[%s4893_s3 + $0x58] sm:$0xff]  }
  0x50   : > { %v398_v15 = vmax.f32 %v366_v11, 0.0  ;;  %v2866_v1 = vunpack.c.h.bf16 %v2973_v52  ;;  %v600_v60 = vrot.slane %v522_v20, 1  ;;  %v590_v52 = vrot.slane %v487_v36, 1 }
  0x51   : > { %v400_v11 = vmax.f32 %v368_v55, 0.0  ;;  %v330_v5 = vmul.f32 %v2865_v13, %v3736_v12  ;;  %v588_v55 = vrot.slane %v480_v28, 1  ;;  %v4130_v63 = vor.u32 %v598_v31, %v512_v62  ;;  %v3609_v62 = vld [vmem:[%s4893_s3 + $0x18] sm:$0xff]   ;;  %v3610_v13 = vld [vmem:[%s4893_s3 + $0x50] sm:$0xff]   ;;  %v3614_v31 = vld [vmem:[%s4893_s3 + $0x8] sm:$0xff]  }
  0x52   : > { %3132 = vmatpush3.bf16.msra.mxu1 %v3601_v43  ;;  %v484_v43 = vshrl.u32 %v4058_v45, 16  ;;  %v4109_v30 = vpack.c.bf16 %v398_v15, %v397_v0  ;;  %v331_v0 = vmul.f32 %v2866_v1, %v3736_v12  ;;  %v4134_v20 = vor.u32 %v600_v60, %v519_v19  ;;  %v3616_v60 = vld [vmem:[%s4893_s3 + $0x40] sm:$0xff]  }
  0x53   : > { %3133 = vmatprep.subr.bf16.mxu1 %v3602_v39  ;;  %v399_v39 = vmax.f32 %v367_v54, 0.0  ;;  %v602_v54 = vrot.slane %v529_v21, 1  ;;  %v369_v25 = vadd.f32 %v3742_v16, %v330_v5  ;;  %v4146_v12 = vsel %vm3961_vm5, %v585_v23, 0 }
  0x54   : > { %955 = vmatmul.mubr.bf16.gmra.mxu0 %v4078_v34  ;;  %v370_v19 = vadd.f32 %v3742_v16, %v331_v0  ;;  %v482_v23 = vor.u32 %v480_v28, %v479_v10  ;;  %v3611_v16 = vld [vmem:[%s4893_s3 + $0x10] sm:$0xff]   ;;  %v486_v5 = vrot.slane %v484_v43, 7 }
  0x55   : > { %3422 = vmatmul.mubr.bf16.gmra.mxu1 %v4069_v17  ;;  %962 = vmatprep.mubr.bf16.mxu0 %v4022_v56  ;;  %v4138_v21 = vor.u32 %v602_v54, %v526_v18  ;;  %v401_v15 = vmax.f32 %v369_v25, 0.0  ;;  %v4154_v18 = vsel %vm3961_vm5, %v587_v46, 0  ;;  %v494_v46 = vshll.u32 %v4109_v30, 16 }
  0x56   : > { %3425 = vmatprep.mubr.bf16.mxu1 %v4073_v26  ;;  %3134 = vmatpush3.bf16.msra.mxu1 %v3603_v14  ;;  %v4124_v14 = vpack.c.bf16 %v400_v11, %v399_v39  ;;  %v402_v39 = vmax.f32 %v370_v19, 0.0  ;;  %v4175_v28 = vsel %vm3803_vm2, 0, %v482_v23  ;;  %v491_v54 = vshrl.u32 %v4109_v30, 16  ;;  %v3617_v19 = vld [vmem:[%s4893_s3] sm:$0xff]  }
  0x57   : > { %3135 = vmatprep.subr.bf16.mxu1 %v3605_v57  ;;  %v4142_v57 = vsel %vm3803_vm2, 0, %v475_v4  ;;  %v589_v4 = vor.u32 %v588_v55, %v477_v50  ;;  %v3613_v50 = vld [vmem:[%s4893_s3 + $0x48] sm:$0xff]   ;;  %v592_v55 = vrot.slane %v494_v46, 1 }
  0x58   : > { %v501_v11 = vshll.u32 %v4124_v14, 16  ;;  %v4168_v1 = vpack.c.bf16 %v402_v39, %v401_v15 }
  0x59   : > { %v4179_v10 = vsel %vm3961_vm5, %v589_v4, 0  ;;  %v593_v25 = vor.u32 %v592_v55, %v491_v54  ;;  %v4234_v55 = vsel %vm3961_vm5, %v4130_v63, 0  ;;  %v4902_v63 = vshll.u32 %v3923_v44, 16 }
  0x5a   : > { %3136 = vmatpush3.bf16.msra.mxu1 %v3606_v7  ;;  %v591_v7 = vor.u32 %v590_v52, %v484_v43  ;;  %v498_v52 = vshrl.u32 %v4124_v14, 16  ;;  %v594_v0 = vrot.slane %v501_v11, 1  ;;  %v489_v43 = vor.u32 %v487_v36, %v486_v5 }
  0x5b   : > { %3137 = vmatprep.subr.bf16.mxu1 %v3608_v35  ;;  %v493_v36 = vrot.slane %v491_v54, 7  ;;  %v4212_v4 = vsel %vm3961_vm5, %v593_v25, 0  ;;  %v604_v25 = vrot.slane %v4902_v63, 1  ;;  %v3631_v63 = vld [vmem:[%s4893_s3 + $0x1d0] sm:$0xff]  }
  0x5c   : > { %963 = vmatmul.mubr.bf16.gmra.mxu0 %v4142_v57  ;;  %v4183_v35 = vsel %vm3961_vm5, %v591_v7, 0  ;;  %v595_v15 = vor.u32 %v594_v0, %v498_v52  ;;  %v4208_v23 = vsel %vm3803_vm2, 0, %v489_v43  ;;  %v505_v7 = vshrl.u32 %v4168_v1, 16 }
  0x5d   : > { %3426 = vmatmul.mubr.bf16.gmra.mxu1 %v4146_v12  ;;  %970 = vmatprep.mubr.bf16.mxu0 %v4056_v61  ;;  %v4247_v43 = vsel %vm3961_vm5, %v4134_v20, 0  ;;  %v4903_v20 = vshrl.u32 %v3923_v44, 16 }
  0x5e   : > { %3429 = vmatprep.mubr.bf16.mxu1 %v4154_v18  ;;  %3138 = vmatpush3.bf16.msra.mxu1 %v3609_v62  ;;  %v508_v62 = vshll.u32 %v4168_v1, 16  ;;  %v507_v0 = vrot.slane %v505_v7, 7 }
  0x5f   : > { %3139 = vmatprep.subr.bf16.mxu1 %v3610_v13  ;;  %v3618_v13 = vld [vmem:[%s4893_s3 + $0x238] sm:$0xff]  }
  0x60   : > { %v596_v39 = vrot.slane %v508_v62, 1 }
  0x62   : > { %3140 = vmatpush3.bf16.msra.mxu1 %v3611_v16  ;;  %v4217_v16 = vsel %vm3961_vm5, %v595_v15, 0  ;;  %v597_v5 = vor.u32 %v596_v39, %v505_v7  ;;  %v605_v15 = vor.u32 %v604_v25, %v4903_v20  ;;  %v3650_v7 = vmov 0   ;;  %v3622_v39 = vld [vmem:[%s4893_s3 + $0x1b0] sm:$0xff]   ;;  %v3634_v20 = vld [vmem:[%s4893_s3 + $0x1c8] sm:$0xff]  }
  0x63   : > { %3141 = vmatprep.subr.bf16.mxu1 %v3613_v50  ;;  %v496_v50 = vor.u32 %v494_v46, %v493_v36  ;;  %v3639_v25 = vld [vmem:[%s4893_s3 + $0x210] sm:$0xff]  }
  0x64   : > { %971 = vmatmul.mubr.bf16.gmra.mxu0 %v4175_v28  ;;  %v4229_v54 = vsel %vm3961_vm5, %v597_v5, 0  ;;  %v3633_v5 = vld [vmem:[%s4893_s3 + $0x220] sm:$0xff]  }
  0x65   : > { %3430 = vmatmul.mubr.bf16.gmra.mxu1 %v4179_v10  ;;  %978 = vmatprep.mubr.bf16.mxu0 %v4058_v45 }
  0x66   : > { %3433 = vmatprep.mubr.bf16.mxu1 %v4183_v35  ;;  %3142 = vmatpush3.bf16.msra.mxu1 %v3614_v31  ;;  %v4225_v31 = vsel %vm3803_vm2, 0, %v496_v50  ;;  %v3624_v50 = vld [vmem:[%s4893_s3 + $0x1e8] sm:$0xff]  }
  0x67   : > { %3143 = vmatprep.subr.bf16.mxu1 %v3616_v60  ;;  %v500_v60 = vrot.slane %v498_v52, 7 }
  0x69   : > { %v503_v46 = vor.u32 %v501_v11, %v500_v60  ;;  %v510_v11 = vor.u32 %v508_v62, %v507_v0  ;;  %v3620_v62 = vld [vmem:[%s4893_s3 + $0x1b8] sm:$0xff]   ;;  %v3627_v60 = vld [vmem:[%s4893_s3 + $0x1a0] sm:$0xff]  }
  0x6a   : > { %3144 = vmatpush3.bf16.msra.mxu1 %v3617_v19  ;;  %v4254_v19 = vsel %vm3961_vm5, %v4138_v21, 0  ;;  %v4268_v21 = vsel %vm3961_vm5, %v605_v15, 0  ;;  %v3630_v0 = vld [vmem:[%s4893_s3 + $0x198] sm:$0xff]   ;;  %v3640_v15 = vld [vmem:[%s4893_s3 + $0x208] sm:$0xff]  }
  0x6b   : > { %3497 = vmatprep.subr.bf16.mxu1 %v3618_v13  ;;  %v4242_v52 = vsel %vm3803_vm2, 0, %v503_v46  ;;  %v4264_v36 = vsel %vm3803_vm2, 0, %v510_v11  ;;  %v3629_v46 = vld [vmem:[%s4893_s3 + $0x1d8] sm:$0xff]   ;;  %v3632_v11 = vld [vmem:[%s4893_s3 + $0x190] sm:$0xff]  }
  0x6c   : > { %979 = vmatmul.mubr.bf16.gmra.mxu0 %v4208_v23 }
  0x6d   : > { %3434 = vmatmul.mubr.bf16.gmra.mxu1 %v4212_v4  ;;  %986 = vmatprep.mubr.bf16.mxu0 %v4109_v30 }
  0x6e   : > { %3437 = vmatprep.mubr.bf16.mxu1 %v4217_v16 }
  0x74   : > { %987 = vmatmul.mubr.bf16.gmra.mxu0 %v4225_v31 }
  0x75   : > { %3438 = vmatmul.mubr.bf16.gmra.mxu1 %v4229_v54  ;;  %994 = vmatprep.mubr.bf16.mxu0 %v4124_v14 }
  0x76   : > { %3441 = vmatprep.mubr.bf16.mxu1 %v4234_v55 }
  0x7c   : > { %995 = vmatmul.mubr.bf16.gmra.mxu0 %v4242_v52 }
  0x7d   : > { %3442 = vmatmul.mubr.bf16.gmra.mxu1 %v4247_v43  ;;  %1002 = vmatprep.mubr.bf16.mxu0 %v4168_v1 }
  0x7e   : > { %3445 = vmatprep.mubr.bf16.mxu1 %v4254_v19 }
  0x84   : > { %1003 = vmatmul.mubr.bf16.gmra.mxu0 %v4264_v36 }
  0x85   : > { %3446 = vmatmul.mubr.bf16.gmra.mxu1 %v4268_v21  ;;  %3465 = vmatprep.mubr.bf16.mxu0 %v3650_v7 }
  0x86   : > { %1380 = vmatprep.mubr.bf16.mxu1 %v3650_v7 }
  0x8c   : > { %3466 = vmatmul.mubr.bf16.vlgmr.msra.gmra.mxu0 %v3986_v37  ;;  %v3628_v37 = vld [vmem:[%s4893_s3 + $0x228] sm:$0xff]  }
  0x8d   : > { %1381 = vmatmul.mubr.bf16.vlgmr.msra.gmra.mxu1 %v3650_v7  ;;  %3266 = vmatpush3.bf16.msra.mxu0 %v3620_v62  ;;  %v3635_v62 = vld [vmem:[%s4893_s3 + $0x188] sm:$0xff]  }
  0x8e   : > { %3498 = vmatpush3.bf16.msra.mxu1 %v3618_v13  ;;  %1388 = vmatprep.mubr.bf16.mxu1 %v3774_v47  ;;  %v3625_v13 = vld [vmem:[%s4893_s3 + $0x1a8] sm:$0xff]   ;;  %v3626_v47 = vld [vmem:[%s4893_s3 + $0x1e0] sm:$0xff]  }
  0x8f   : > { %3469 = vmatprep.mubr.bf16.mxu0 %v4037_v41  ;;  %3267 = vmatprep.subr.bf16.mxu0 %v3621_v6  ;;  %v3636_v6 = vld [vmem:[%s4893_s3 + $0x1c0] sm:$0xff]  }
  0x90   : > { %3499 = vmatprep.subr.bf16.mxu1 %v3623_v9 }
  0x91   : > { %3268 = vmatpush3.bf16.msra.mxu0 %v3622_v39  ;;  %v3637_v39 = vld [vmem:[%s4893_s3 + $0x180] sm:$0xff]  }
  0x92   : > { %3500 = vmatpush3.bf16.msra.mxu1 %v3623_v9  ;;  %3269 = vmatprep.subr.bf16.mxu0 %v3624_v50  ;;  %v3641_v9 = vld [vmem:[%s4893_s3 + $0x200] sm:$0xff]  }
  0x93   : > { %3501 = vmatprep.subr.bf16.mxu1 %v3628_v37 }
  0x94   : > { %3470 = vmatmul.mubr.bf16.gmra.mxu0 %v4049_v29 }
  0x95   : > { %1389 = vmatmul.mubr.bf16.gmra.mxu1 %v3824_v22  ;;  %3473 = vmatprep.mubr.bf16.mxu0 %v4069_v17  ;;  %v3638_v22 = vld [vmem:[%s4893_s3 + $0x218] sm:$0xff]  }
  0x96   : > { %1396 = vmatprep.mubr.bf16.mxu1 %v3797_v3  ;;  %3270 = vmatpush3.bf16.msra.mxu0 %v3625_v13 }
  0x97   : > { %3271 = vmatprep.subr.bf16.mxu0 %v3626_v47  ;;  %3502 = vmatpush3.bf16.msra.mxu1 %v3628_v37 }
  0x98   : > { %3503 = vmatprep.subr.bf16.mxu1 %v3633_v5 }
  0x9a   : > { %3272 = vmatpush3.bf16.msra.mxu0 %v3627_v60 }
  0x9b   : > { %3273 = vmatprep.subr.bf16.mxu0 %v3629_v46  ;;  %3504 = vmatpush3.bf16.msra.mxu1 %v3633_v5 }
  0x9c   : > { %3474 = vmatmul.mubr.bf16.gmra.mxu0 %v4073_v26  ;;  %3505 = vmatprep.subr.bf16.mxu1 %v3638_v22 }
  0x9d   : > { %1397 = vmatmul.mubr.bf16.gmra.mxu1 %v3862_v42  ;;  %3477 = vmatprep.mubr.bf16.mxu0 %v4146_v12 }
  0x9e   : > { %1404 = vmatprep.mubr.bf16.mxu1 %v3853_v38  ;;  %3274 = vmatpush3.bf16.msra.mxu0 %v3630_v0 }
  0x9f   : > { %3275 = vmatprep.subr.bf16.mxu0 %v3631_v63  ;;  %3506 = vmatpush3.bf16.msra.mxu1 %v3638_v22 }
  0xa0   : > { %3507 = vmatprep.subr.bf16.mxu1 %v3639_v25 }
  0xa2   : > { %3276 = vmatpush3.bf16.msra.mxu0 %v3632_v11 }
  0xa3   : > { %3277 = vmatprep.subr.bf16.mxu0 %v3634_v20  ;;  %3508 = vmatpush3.bf16.msra.mxu1 %v3639_v25 }
  0xa4   : > { %3478 = vmatmul.mubr.bf16.gmra.mxu0 %v4154_v18  ;;  %3509 = vmatprep.subr.bf16.mxu1 %v3640_v15 }
  0xa5   : > { %1405 = vmatmul.mubr.bf16.gmra.mxu1 %v3913_v32  ;;  %3481 = vmatprep.mubr.bf16.mxu0 %v4179_v10 }
  0xa6   : > { %1412 = vmatprep.mubr.bf16.mxu1 %v3901_v24  ;;  %3278 = vmatpush3.bf16.msra.mxu0 %v3635_v62 }
  0xa7   : > { %3279 = vmatprep.subr.bf16.mxu0 %v3636_v6  ;;  %3510 = vmatpush3.bf16.msra.mxu1 %v3640_v15 }
  0xa8   : > { %3511 = vmatprep.subr.bf16.mxu1 %v3641_v9 }
  0xaa   : > { %3280 = vmatpush3.bf16.msra.mxu0 %v3637_v39 }
  0xab   : > { %3512 = vmatpush3.bf16.msra.mxu1 %v3641_v9 }
  0xac   : > { %3482 = vmatmul.mubr.bf16.gmra.mxu0 %v4183_v35 }
  0xad   : > { %1413 = vmatmul.mubr.bf16.gmra.mxu1 %v3982_v33  ;;  %3485 = vmatprep.mubr.bf16.mxu0 %v4212_v4 }
  0xae   : > { %1420 = vmatprep.mubr.bf16.mxu1 %v3930_v49 }
  0xb4   : > { %3486 = vmatmul.mubr.bf16.gmra.mxu0 %v4217_v16 }
  0xb5   : > { %1421 = vmatmul.mubr.bf16.gmra.mxu1 %v4033_v59  ;;  %3489 = vmatprep.mubr.bf16.mxu0 %v4229_v54 }
  0xb6   : > { %1428 = vmatprep.mubr.bf16.mxu1 %v4000_v58 }
  0xbc   : > { %3490 = vmatmul.mubr.bf16.gmra.mxu0 %v4234_v55 }
  0xbd   : > { %1429 = vmatmul.mubr.bf16.gmra.mxu1 %v4078_v34  ;;  %3493 = vmatprep.mubr.bf16.mxu0 %v4247_v43 }
  0xbe   : > { %1436 = vmatprep.mubr.bf16.mxu1 %v4022_v56 }
  0xc4   : > { %3494 = vmatmul.mubr.bf16.gmra.mxu0 %v4254_v19 }
  0xc5   : > { %1437 = vmatmul.mubr.bf16.gmra.mxu1 %v4142_v57  ;;  %1895 = vmatprep.mubr.bf16.mxu0 %v3797_v3 }
  0xc6   : > { %1444 = vmatprep.mubr.bf16.mxu1 %v4056_v61 }
  0xcc   : > { %1896 = vmatmul.mubr.bf16.vlgmr.msra.gmra.mxu0 %v3862_v42 }
  0xcd   : > { %1445 = vmatmul.mubr.bf16.gmra.mxu1 %v4175_v28  ;;  %1903 = vmatprep.mubr.bf16.mxu0 %v3853_v38 }
  0xce   : > { %1452 = vmatprep.mubr.bf16.mxu1 %v4058_v45 }
  0xd4   : > { %1904 = vmatmul.mubr.bf16.gmra.mxu0 %v3913_v32 }
  0xd5   : > { %1453 = vmatmul.mubr.bf16.gmra.mxu1 %v4208_v23  ;;  %1911 = vmatprep.mubr.bf16.mxu0 %v3901_v24 }
  0xd6   : > { %1460 = vmatprep.mubr.bf16.mxu1 %v4109_v30 }
  0xdc   : > { %1912 = vmatmul.mubr.bf16.gmra.mxu0 %v3982_v33 }
  0xdd   : > { %1461 = vmatmul.mubr.bf16.gmra.mxu1 %v4225_v31  ;;  %1919 = vmatprep.mubr.bf16.mxu0 %v3930_v49 }
  0xde   : > { %1468 = vmatprep.mubr.bf16.mxu1 %v4124_v14 }
  0xe4   : > { %1920 = vmatmul.mubr.bf16.gmra.mxu0 %v4033_v59 }
  0xe5   : > { %1469 = vmatmul.mubr.bf16.gmra.mxu1 %v4242_v52  ;;  %1927 = vmatprep.mubr.bf16.mxu0 %v4000_v58 }
  0xe6   : > { %1476 = vmatprep.mubr.bf16.mxu1 %v4168_v1 }
  0xec   : > { %v3009_v3 = vpop.f32.mrf.mxu0  ;;  %1928 = vmatmul.mubr.bf16.gmra.mxu0 %v4078_v34  ;;  %v3081_v38 = vpop.f32.mrf.mxu1 }
  0xed   : > { %1477 = vmatmul.mubr.bf16.gmra.mxu1 %v4264_v36  ;;  %1935 = vmatprep.mubr.bf16.mxu0 %v4022_v56 }
  0xee   : > { %v3010_v42 = vpop.f32.mrf.mxu0  ;;  %1484 = vmatprep.mubr.bf16.mxu1 %v3778_v51  ;;  %v3082_v32 = vpop.f32.mrf.mxu1 }
  0xef   : > { %v4392_v24 = vadd.f32 %v3010_v42, %v3009_v3  ;;  %v4394_v49 = vadd.f32 %v3082_v32, %v3081_v38 }
  0xf0   : > { %v3012_v33 = vpop.f32.mrf.mxu0  ;;  %v3084_v58 = vpop.f32.mrf.mxu1 }
  0xf2   : > { %v3013_v59 = vpop.f32.mrf.mxu0  ;;  %v3085_v37 = vpop.f32.mrf.mxu1 }
  0xf3   : > { %v4396_v50 = vadd.f32 %v3013_v59, %v3012_v33  ;;  %v4398_v34 = vadd.f32 %v3085_v37, %v3084_v58 }
  0xf4   : > { %v3015_v13 = vpop.f32.mrf.mxu0  ;;  %1936 = vmatmul.mubr.bf16.gmra.mxu0 %v4142_v57  ;;  %v3087_v56 = vpop.f32.mrf.mxu1 }
  0xf5   : > { %1485 = vmatmul.mubr.bf16.gmra.mxu1 %v3835_v27  ;;  %1943 = vmatprep.mubr.bf16.mxu0 %v4056_v61 }
  0xf6   : > { %v3016_v47 = vpop.f32.mrf.mxu0  ;;  %1492 = vmatprep.mubr.bf16.mxu1 %v3809_v8  ;;  %v3088_v60 = vpop.f32.mrf.mxu1 }
  0xf7   : > { %v3017_v5 = vadd.f32 %v3016_v47, %v3015_v13  ;;  %v4404_v46 = vadd.f32 %v3088_v60, %v3087_v56 }
  0xf8   : > { %v3018_v22 = vpop.f32.mrf.mxu0  ;;  %v3090_v0 = vpop.f32.mrf.mxu1 }
  0xfa   : > { %v3019_v63 = vpop.f32.mrf.mxu0  ;;  %v3091_v11 = vpop.f32.mrf.mxu1 }
  0xfb   : > { %v3020_v25 = vadd.f32 %v3019_v63, %v3018_v22  ;;  %v4406_v20 = vadd.f32 %v3091_v11, %v3090_v0 }
  0xfc   : > { %v3021_v57 = vpop.f32.mrf.mxu0  ;;  %1944 = vmatmul.mubr.bf16.gmra.mxu0 %v4175_v28 }
  0xfd   : > { %v3093_v15 = vpop.f32.mrf.mxu1  ;;  %1493 = vmatmul.mubr.bf16.gmra.mxu1 %v3870_v48  ;;  %1951 = vmatprep.mubr.bf16.mxu0 %v4058_v45 }
  0xfe   : > { %v3022_v61 = vpop.f32.mrf.mxu0  ;;  %1500 = vmatprep.mubr.bf16.mxu1 %v3882_v2 }
  0xff   : > { %v3023_v62 = vadd.f32 %v3022_v61, %v3021_v57  ;;  %v3094_v6 = vpop.f32.mrf.mxu1 }
 0x100   : > { %v4412_v9 = vadd.f32 %v3094_v6, %v3093_v15  ;;  %v3024_v39 = vpop.f32.mrf.mxu0 }
 0x101   : > { %v3096_v3 = vpop.f32.mrf.mxu1 }
 0x102   : > { %v3025_v38 = vpop.f32.mrf.mxu0 }
 0x103   : > { %v3026_v42 = vadd.f32 %v3025_v38, %v3024_v39  ;;  %v3097_v32 = vpop.f32.mrf.mxu1 }
 0x104   : > { %v4414_v33 = vadd.f32 %v3097_v32, %v3096_v3  ;;  %v3027_v28 = vpop.f32.mrf.mxu0  ;;  %1952 = vmatmul.mubr.bf16.gmra.mxu0 %v4208_v23 }
 0x105   : > { %v3099_v58 = vpop.f32.mrf.mxu1  ;;  %1501 = vmatmul.mubr.bf16.gmra.mxu1 %v3934_v53  ;;  %1959 = vmatprep.mubr.bf16.mxu0 %v4109_v30 }
 0x106   : > { %v3028_v45 = vpop.f32.mrf.mxu0  ;;  %3513 = vmatprep.mubr.bf16.mxu1 %v4037_v41 }
 0x107   : > { %v3029_v59 = vadd.f32 %v3028_v45, %v3027_v28  ;;  %v3100_v37 = vpop.f32.mrf.mxu1 }
 0x108   : > { %v4420_v13 = vadd.f32 %v3100_v37, %v3099_v58  ;;  %v3030_v56 = vpop.f32.mrf.mxu0 }
 0x109   : > { %v3102_v47 = vpop.f32.mrf.mxu1 }
 0x10a   : > { %v3031_v60 = vpop.f32.mrf.mxu0 }
 0x10b   : > { %v3032_v22 = vadd.f32 %v3031_v60, %v3030_v56  ;;  %v3103_v0 = vpop.f32.mrf.mxu1 }
 0x10c   : > { %v4422_v63 = vadd.f32 %v3103_v0, %v3102_v47  ;;  %v3033_v23 = vpop.f32.mrf.mxu0  ;;  %1960 = vmatmul.mubr.bf16.gmra.mxu0 %v4225_v31 }
 0x10d   : > { %v3419_v11 = vpop.f32.mrf.mxu1  ;;  %3514 = vmatmul.mubr.bf16.vlgmr.msra.gmra.mxu1 %v4049_v29  ;;  %1967 = vmatprep.mubr.bf16.mxu0 %v4124_v14 }
 0x10e   : > { %v4427_v41 = vadd.f32 %v3419_v11, %v3017_v5  ;;  %v3034_v30 = vpop.f32.mrf.mxu0  ;;  %3517 = vmatprep.mubr.bf16.mxu1 %v4069_v17 }
 0x10f   : > { %v3035_v57 = vadd.f32 %v3034_v30, %v3033_v23  ;;  %v1077_v15 = vpop.f32.mrf.mxu1 }
 0x110   : > { %v4431_v61 = vadd.f32 %v4392_v24, %v1077_v15  ;;  %v3036_v6 = vpop.f32.mrf.mxu0 }
 0x111   : > { %v3420_v39 = vpop.f32.mrf.mxu1 }
 0x112   : > { %v4433_v3 = vadd.f32 %v3420_v39, %v3020_v25  ;;  %v3037_v31 = vpop.f32.mrf.mxu0 }
 0x113   : > { %v3038_v38 = vadd.f32 %v3037_v31, %v3036_v6  ;;  %v1080_v32 = vpop.f32.mrf.mxu1 }
 0x114   : > { %v4436_v29 = vadd.f32 %v4396_v50, %v1080_v32  ;;  %v3039_v14 = vpop.f32.mrf.mxu0  ;;  %1968 = vmatmul.mubr.bf16.gmra.mxu0 %v4242_v52 }
 0x115   : > { %v3423_v5 = vpop.f32.mrf.mxu1  ;;  %3518 = vmatmul.mubr.bf16.gmra.mxu1 %v4073_v26  ;;  %1975 = vmatprep.mubr.bf16.mxu0 %v4168_v1 }
 0x116   : > { %v4441_v17 = vadd.f32 %v3423_v5, %v3029_v59  ;;  %v3040_v24 = vpop.f32.mrf.mxu0  ;;  %3521 = vmatprep.mubr.bf16.mxu1 %v4146_v12 }
 0x117   : > { %v3041_v25 = vadd.f32 %v3040_v24, %v3039_v14  ;;  %v1093_v28 = vpop.f32.mrf.mxu1 }
 0x118   : > { %v4444_v58 = vadd.f32 %v3023_v62, %v1093_v28  ;;  %v3042_v45 = vpop.f32.mrf.mxu0 }
 0x119   : > { %v3424_v50 = vpop.f32.mrf.mxu1 }
 0x11a   : > { %v4446_v37 = vadd.f32 %v3424_v50, %v3032_v22  ;;  %v3043_v56 = vpop.f32.mrf.mxu0 }
 0x11b   : > { %v3044_v52 = vadd.f32 %v3043_v56, %v3042_v45  ;;  %v1096_v47 = vpop.f32.mrf.mxu1 }
 0x11c   : > { %v4448_v60 = vadd.f32 %v3026_v42, %v1096_v47  ;;  %v3045_v26 = vpop.f32.mrf.mxu0  ;;  %1976 = vmatmul.mubr.bf16.gmra.mxu0 %v4264_v36 }
 0x11d   : > { %v3427_v1 = vpop.f32.mrf.mxu1  ;;  %3522 = vmatmul.mubr.bf16.gmra.mxu1 %v4154_v18  ;;  %1983 = vmatprep.mubr.bf16.mxu0 %v3778_v51 }
 0x11e   : > { %v4453_v12 = vadd.f32 %v3427_v1, %v3041_v25  ;;  %v3046_v62 = vpop.f32.mrf.mxu0  ;;  %3525 = vmatprep.mubr.bf16.mxu1 %v4179_v10 }
 0x11f   : > { %v3047_v59 = vadd.f32 %v3046_v62, %v3045_v26  ;;  %v1109_v22 = vpop.f32.mrf.mxu1 }
 0x120   : > { %v4456_v0 = vadd.f32 %v3035_v57, %v1109_v22  ;;  %v3048_v23 = vpop.f32.mrf.mxu0 }
 0x121   : > { %v3428_v42 = vpop.f32.mrf.mxu1 }
 0x122   : > { %v4458_v11 = vadd.f32 %v3428_v42, %v3044_v52  ;;  %v3049_v30 = vpop.f32.mrf.mxu0 }
 0x123   : > { %v3050_v36 = vadd.f32 %v3049_v30, %v3048_v23  ;;  %v1112_v15 = vpop.f32.mrf.mxu1 }
 0x124   : > { %v4460_v6 = vadd.f32 %v3038_v38, %v1112_v15  ;;  %v3051_v18 = vpop.f32.mrf.mxu0  ;;  %1984 = vmatmul.mubr.bf16.gmra.mxu0 %v3835_v27 }
 0x125   : > { %v3431_v51 = vpop.f32.mrf.mxu1  ;;  %3526 = vmatmul.mubr.bf16.gmra.mxu1 %v4183_v35  ;;  %1991 = vmatprep.mubr.bf16.mxu0 %v3809_v8 }
 0x126   : > { %v3052_v10 = vpop.f32.mrf.mxu0  ;;  %3529 = vmatprep.mubr.bf16.mxu1 %v4212_v4 }
 0x127   : > { %v3053_v57 = vadd.f32 %v3052_v10, %v3051_v18  ;;  %v1125_v39 = vpop.f32.mrf.mxu1 }
 0x128   : > { %v4466_v31 = vadd.f32 %v3047_v59, %v1125_v39  ;;  %v3054_v32 = vpop.f32.mrf.mxu0 }
 0x129   : > { %v4468_v14 = vadd.f32 %v3431_v51, %v3053_v57  ;;  %v3432_v38 = vpop.f32.mrf.mxu1 }
 0x12a   : > { %v3055_v5 = vpop.f32.mrf.mxu0 }
 0x12b   : > { %v3056_v24 = vadd.f32 %v3055_v5, %v3054_v32  ;;  %v1128_v25 = vpop.f32.mrf.mxu1 }
 0x12c   : > { %v4470_v27 = vadd.f32 %v3050_v36, %v1128_v25  ;;  %v3057_v28 = vpop.f32.mrf.mxu0  ;;  %1992 = vmatmul.mubr.bf16.gmra.mxu0 %v3870_v48 }
 0x12d   : > { %v4473_v8 = vadd.f32 %v3432_v38, %v3056_v24  ;;  %v3435_v35 = vpop.f32.mrf.mxu1  ;;  %3530 = vmatmul.mubr.bf16.gmra.mxu1 %v4217_v16  ;;  %1999 = vmatprep.mubr.bf16.mxu0 %v3882_v2 }
 0x12e   : > { %v3058_v4 = vpop.f32.mrf.mxu0  ;;  %3533 = vmatprep.mubr.bf16.mxu1 %v4229_v54 }
 0x12f   : > { %v3059_v45 = vadd.f32 %v3058_v4, %v3057_v28  ;;  %v1141_v50 = vpop.f32.mrf.mxu1 }
 0x130   : > { %v3060_v56 = vpop.f32.mrf.mxu0 }
 0x131   : > { %v4478_v52 = vadd.f32 %v3059_v45, %v1141_v50  ;;  %v3436_v47 = vpop.f32.mrf.mxu1 }
 0x132   : > { %v3061_v26 = vpop.f32.mrf.mxu0 }
 0x133   : > { %v3062_v1 = vadd.f32 %v3061_v26, %v3060_v56  ;;  %v1144_v62 = vpop.f32.mrf.mxu1 }
 0x134   : > { %v3063_v48 = vpop.f32.mrf.mxu0  ;;  %2000 = vmatmul.mubr.bf16.gmra.mxu0 %v3934_v53 }
 0x135   : > { %v4481_v59 = vadd.f32 %v3062_v1, %v1144_v62  ;;  %v3439_v16 = vpop.f32.mrf.mxu1  ;;  %3534 = vmatmul.mubr.bf16.gmra.mxu1 %v4234_v55  ;;  %2007 = vmatprep.mubr.bf16.mxu0 %v3923_v44 }
 0x136   : > { %v3064_v2 = vpop.f32.mrf.mxu0  ;;  %3537 = vmatprep.mubr.bf16.mxu1 %v4247_v43 }
 0x137   : > { %v3065_v54 = vadd.f32 %v3064_v2, %v3063_v48  ;;  %v1157_v22 = vpop.f32.mrf.mxu1 }
 0x138   : > { %v3066_v23 = vpop.f32.mrf.mxu0 }
 0x139   : > { %v4486_v42 = vadd.f32 %v3435_v35, %v3065_v54  ;;  %v3440_v30 = vpop.f32.mrf.mxu1 }
 0x13a   : > { %v3067_v36 = vpop.f32.mrf.mxu0 }
 0x13b   : > { %v3068_v15 = vadd.f32 %v3067_v36, %v3066_v23  ;;  %v1160_v18 = vpop.f32.mrf.mxu1 }
 0x13c   : > { %v3069_v53 = vpop.f32.mrf.mxu0  ;;  %2008 = vmatmul.mubr.bf16.gmra.mxu0 %v3992_v40 }
 0x13d   : > { %v4489_v51 = vadd.f32 %v3436_v47, %v3068_v15  ;;  %v3443_v55 = vpop.f32.mrf.mxu1  ;;  %3538 = vmatmul.mubr.bf16.gmra.mxu1 %v4254_v19  ;;  %2015 = vmatprep.mubr.bf16.mxu0 %v3650_v7 }
 0x13e   : > { %v4494_v44 = vadd.f32 %v3443_v55, %v4404_v46  ;;  %v3070_v43 = vpop.f32.mrf.mxu0  ;;  %3541 = vmatprep.mubr.bf16.mxu1 %v4268_v21 }
 0x13f   : > { %v3071_v10 = vadd.f32 %v3070_v43, %v3069_v53  ;;  %v1173_v57 = vpop.f32.mrf.mxu1 }
 0x140   : > { %v4498_v39 = vadd.f32 %v4394_v49, %v1173_v57  ;;  %v3072_v32 = vpop.f32.mrf.mxu0 }
 0x141   : > { %v4500_v40 = vadd.f32 %v3071_v10, %v1157_v22  ;;  %v3444_v38 = vpop.f32.mrf.mxu1 }
 0x142   : > { %v4503_v5 = vadd.f32 %v3444_v38, %v4406_v20  ;;  %v3073_v19 = vpop.f32.mrf.mxu0 }
 0x143   : > { %v3074_v24 = vadd.f32 %v3073_v19, %v3072_v32  ;;  %v1176_v25 = vpop.f32.mrf.mxu1 }
 0x144   : > { %v4506_v46 = vadd.f32 %v4398_v34, %v1176_v25  ;;  %v3075_v28 = vpop.f32.mrf.mxu0  ;;  %2016 = vmatmul.mubr.bf16.gmra.mxu0 %v3650_v7 }
 0x145   : > { %v4509_v21 = vadd.f32 %v3074_v24, %v1160_v18  ;;  %v3447_v49 = vpop.f32.mrf.mxu1  ;;  %3542 = vmatmul.mubr.bf16.gmra.mxu1 %v3650_v7 }
 0x146   : > { %v4513_v35 = vadd.f32 %v3447_v49, %v4420_v13  ;;  %v3076_v4 = vpop.f32.mrf.mxu0 }
 0x147   : > { %v3077_v20 = vadd.f32 %v3076_v4, %v3075_v28  ;;  %v1189_v45 = vpop.f32.mrf.mxu1 }
 0x148   : > { %v4516_v50 = vadd.f32 %v4412_v9, %v1189_v45  ;;  %v3078_v56 = vpop.f32.mrf.mxu0 }
 0x149   : > { %v4518_v34 = vadd.f32 %v3439_v16, %v3077_v20  ;;  %v3448_v47 = vpop.f32.mrf.mxu1 }
 0x14a   : > { %v4521_v26 = vadd.f32 %v3448_v47, %v4422_v63  ;;  %v3079_v1 = vpop.f32.mrf.mxu0 }
 0x14b   : > { %v3080_v62 = vadd.f32 %v3079_v1, %v3078_v56  ;;  %v1192_v48 = vpop.f32.mrf.mxu1 }
 0x14c   : > { %4904 = vst [vmem:[#allocation2_spill] sm:$0xff] %v4521_v26  ;;  %v4524_v7 = vadd.f32 %v4414_v33, %v1192_v48  ;;  %v3467_v13 = vpop.f32.mrf.mxu0 }
 0x14d   : > { %v4526_v2 = vadd.f32 %v3440_v30, %v3080_v62  ;;  %v3145_v54 = vpop.f32.mrf.mxu1 }
 0x14e   : > { %v1543_v22 = vpop.f32.mrf.mxu0 }
 0x14f   : > { %v3146_v9 = vpop.f32.mrf.mxu1 }
 0x150   : > { %v3147_v23 = vadd.f32 %v3146_v9, %v3145_v54  ;;  %v3468_v36 = vpop.f32.mrf.mxu0 }
 0x151   : > { %v3148_v16 = vpop.f32.mrf.mxu1 }
 0x152   : > { %v1383_v15 = vadd.f32 %v3147_v23, %v4431_v61  ;;  %v1546_v18 = vpop.f32.mrf.mxu0 }
 0x153   : > { %v3149_v63 = vpop.f32.mrf.mxu1 }
 0x154   : > { %v4529_v53 = vadd.f32 %v1543_v22, %v1383_v15  ;;  %v3150_v55 = vadd.f32 %v3149_v63, %v3148_v16  ;;  %v3471_v43 = vpop.f32.mrf.mxu0 }
 0x155   : > { %v3151_v10 = vpop.f32.mrf.mxu1 }
 0x156   : > { %v1386_v33 = vadd.f32 %v3150_v55, %v4436_v29  ;;  %v1559_v57 = vpop.f32.mrf.mxu0 }
 0x157   : > { %v3152_v30 = vpop.f32.mrf.mxu1 }
 0x158   : > { %v4532_v32 = vadd.f32 %v1546_v18, %v1386_v33  ;;  %v3153_v38 = vadd.f32 %v3152_v30, %v3151_v10  ;;  %v3472_v19 = vpop.f32.mrf.mxu0 }
 0x159   : > { %v3154_v24 = vpop.f32.mrf.mxu1 }
 0x15a   : > { %v1391_v25 = vadd.f32 %v3153_v38, %v4427_v41  ;;  %v1562_v28 = vpop.f32.mrf.mxu0 }
 0x15b   : > { %v3155_v61 = vpop.f32.mrf.mxu1 }
 0x15c   : > { %v3156_v49 = vadd.f32 %v3155_v61, %v3154_v24  ;;  %v3475_v4 = vpop.f32.mrf.mxu0  ;;  %v4535_v20 = vadd.f32 %v3467_v13, %v1391_v25 }
 0x15d   : > { %v3157_v45 = vpop.f32.mrf.mxu1 }
 0x15e   : > { %v1394_v56 = vadd.f32 %v3156_v49, %v4433_v3  ;;  %v1575_v47 = vpop.f32.mrf.mxu0 }
 0x15f   : > { %v3158_v29 = vpop.f32.mrf.mxu1 }
 0x160   : > { %v3159_v1 = vadd.f32 %v3158_v29, %v3157_v45  ;;  %v3476_v62 = vpop.f32.mrf.mxu0  ;;  %v4538_v48 = vadd.f32 %v3468_v36, %v1394_v56 }
 0x161   : > { %v3160_v54 = vpop.f32.mrf.mxu1 }
 0x162   : > { %v1399_v22 = vadd.f32 %v3159_v1, %v4444_v58  ;;  %v1578_v9 = vpop.f32.mrf.mxu0 }
 0x163   : > { %v3161_v41 = vpop.f32.mrf.mxu1 }
 0x164   : > { %v3162_v23 = vadd.f32 %v3161_v41, %v3160_v54  ;;  %v4541_v16 = vpop.f32.mrf.mxu0  ;;  %v4543_v15 = vadd.f32 %v1559_v57, %v1399_v22 }
 0x165   : > { %v3163_v13 = vpop.f32.mrf.mxu1 }
 0x166   : > { %v1402_v18 = vadd.f32 %v3162_v23, %v4448_v60  ;;  %v1591_v3 = vpop.f32.mrf.mxu0 }
 0x167   : > { %v3164_v63 = vpop.f32.mrf.mxu1 }
 0x168   : > { %v3165_v55 = vadd.f32 %v3164_v63, %v3163_v13  ;;  %v4546_v10 = vpop.f32.mrf.mxu0  ;;  %v4548_v36 = vadd.f32 %v1562_v28, %v1402_v18 }
 0x169   : > { %v3166_v33 = vpop.f32.mrf.mxu1 }
 0x16a   : > { %v1407_v58 = vadd.f32 %v3165_v55, %v4441_v17  ;;  %v1594_v30 = vpop.f32.mrf.mxu0 }
 0x16b   : > { %v3167_v38 = vpop.f32.mrf.mxu1 }
 0x16c   : > { %v3168_v24 = vadd.f32 %v3167_v38, %v3166_v33  ;;  %v4551_v25 = vpop.f32.mrf.mxu0  ;;  %v4553_v57 = vadd.f32 %v3471_v43, %v1407_v58 }
 0x16d   : > { %v3169_v61 = vpop.f32.mrf.mxu1 }
 0x16e   : > { %v1410_v60 = vadd.f32 %v3168_v24, %v4446_v37  ;;  %v4556_v49 = vpop.f32.mrf.mxu0 }
 0x16f   : > { %v3170_v45 = vpop.f32.mrf.mxu1 }
 0x170   : > { %v3171_v56 = vadd.f32 %v3170_v45, %v3169_v61  ;;  %v4558_v29 = vpop.f32.mrf.mxu0  ;;  %v4560_v28 = vadd.f32 %v3472_v19, %v1410_v60 }
 0x171   : > { %v3172_v1 = vpop.f32.mrf.mxu1 }
 0x172   : > { %v1415_v17 = vadd.f32 %v3171_v56, %v4456_v0  ;;  %v4563_v54 = vpop.f32.mrf.mxu0 }
 0x173   : > { %v3173_v22 = vpop.f32.mrf.mxu1 }
 0x174   : > { %v3174_v41 = vadd.f32 %v3173_v22, %v3172_v1  ;;  %v4565_v43 = vpop.f32.mrf.mxu0  ;;  %v4567_v23 = vadd.f32 %v1575_v47, %v1415_v17 }
 0x175   : > { %v3175_v37 = vpop.f32.mrf.mxu1 }
 0x176   : > { %v1418_v13 = vadd.f32 %v3174_v41, %v4460_v6  ;;  %v4570_v18 = vpop.f32.mrf.mxu0 }
 0x177   : > { %v3176_v63 = vpop.f32.mrf.mxu1 }
 0x178   : > { %v3177_v55 = vadd.f32 %v3176_v63, %v3175_v37  ;;  %v4572_v19 = vpop.f32.mrf.mxu0  ;;  %v4574_v33 = vadd.f32 %v1578_v9, %v1418_v13 }
 0x179   : > { %v3178_v0 = vpop.f32.mrf.mxu1 }
 0x17a   : > { %v1423_v58 = vadd.f32 %v3177_v55, %v4453_v12  ;;  %v4577_v38 = vpop.f32.mrf.mxu0 }
 0x17b   : > { %v3179_v24 = vpop.f32.mrf.mxu1 }
 0x17c   : > { %v3180_v61 = vadd.f32 %v3179_v24, %v3178_v0  ;;  %v4579_v47 = vpop.f32.mrf.mxu0  ;;  %v4581_v60 = vadd.f32 %v3475_v4, %v1423_v58 }
 0x17d   : > { %v3181_v6 = vpop.f32.mrf.mxu1 }
 0x17e   : > { %v1426_v45 = vadd.f32 %v3180_v61, %v4458_v11  ;;  %v4584_v56 = vpop.f32.mrf.mxu0 }
 0x17f   : > { %v3182_v1 = vpop.f32.mrf.mxu1 }
 0x180   : > { %v3183_v17 = vadd.f32 %v3182_v1, %v3181_v6  ;;  %v4586_v9 = vpop.f32.mrf.mxu0  ;;  %v4588_v22 = vadd.f32 %v3476_v62, %v1426_v45 }
 0x181   : > { %v3184_v12 = vpop.f32.mrf.mxu1 }
 0x182   : > { %v1431_v41 = vadd.f32 %v3183_v17, %v4466_v31  ;;  %v4591_v37 = vpop.f32.mrf.mxu0 }
 0x183   : > { %v3185_v13 = vpop.f32.mrf.mxu1 }
 0x184   : > { %v3186_v63 = vadd.f32 %v3185_v13, %v3184_v12  ;;  %v4593_v4 = vpop.f32.mrf.mxu0  ;;  %v4595_v55 = vadd.f32 %v1591_v3, %v1431_v41 }
 0x185   : > { %4905 = vst [vmem:[#allocation3_spill] sm:$0xff] %v4593_v4  ;;  %v3187_v11 = vpop.f32.mrf.mxu1 }
 0x186   : > { %v1434_v0 = vadd.f32 %v3186_v63, %v4470_v27  ;;  %v4598_v58 = vpop.f32.mrf.mxu0 }
 0x187   : > { %v3188_v24 = vpop.f32.mrf.mxu1 }
 0x188   : > { %v3189_v61 = vadd.f32 %v3188_v24, %v3187_v11  ;;  %v4600_v62 = vpop.f32.mrf.mxu0  ;;  %v4602_v6 = vadd.f32 %v1594_v30, %v1434_v0 }
 0x189   : > { %4906 = vst [vmem:[#allocation4_spill] sm:$0xff] %v4600_v62  ;;  %v3190_v31 = vpop.f32.mrf.mxu1 }
 0x18a   : > { %v1439_v45 = vadd.f32 %v3189_v61, %v4468_v14  ;;  %v4605_v1 = vpop.f32.mrf.mxu0 }
 0x18b   : > { %v3191_v17 = vpop.f32.mrf.mxu1 }
 0x18c   : > { %v3192_v12 = vadd.f32 %v3191_v17, %v3190_v31  ;;  %v3281_v3 = vpop.f32.mrf.mxu0  ;;  %v4608_v41 = vadd.f32 %v4541_v16, %v1439_v45 }
 0x18d   : > { %v3193_v27 = vpop.f32.mrf.mxu1 }
 0x18e   : > { %v1442_v13 = vadd.f32 %v3192_v12, %v4473_v8  ;;  %v3282_v63 = vpop.f32.mrf.mxu0 }
 0x18f   : > { %v3194_v11 = vpop.f32.mrf.mxu1  ;;  %v4611_v24 = vadd.f32 %v3282_v63, %v3281_v3 }
 0x190   : > { %v3195_v30 = vadd.f32 %v3194_v11, %v3193_v27  ;;  %v4613_v0 = vpop.f32.mrf.mxu0  ;;  %v4616_v14 = vadd.f32 %v4546_v10, %v1442_v13 }
 0x191   : > { %v3196_v61 = vpop.f32.mrf.mxu1 }
 0x192   : > { %v1447_v31 = vadd.f32 %v3195_v30, %v4478_v52  ;;  %v4619_v17 = vpop.f32.mrf.mxu0 }
 0x193   : > { %v3197_v16 = vpop.f32.mrf.mxu1 }
 0x194   : > { %v3198_v45 = vadd.f32 %v3197_v16, %v3196_v61  ;;  %v4621_v62 = vpop.f32.mrf.mxu0  ;;  %v4624_v8 = vadd.f32 %v4556_v49, %v1447_v31 }
 0x195   : > { %v3199_v12 = vpop.f32.mrf.mxu1 }
 0x196   : > { %v1450_v3 = vadd.f32 %v3198_v45, %v4481_v59  ;;  %v4627_v27 = vpop.f32.mrf.mxu0 }
 0x197   : > { %v3200_v63 = vpop.f32.mrf.mxu1 }
 0x198   : > { %v3201_v10 = vadd.f32 %v3200_v63, %v3199_v12  ;;  %v4629_v13 = vpop.f32.mrf.mxu0  ;;  %v4632_v52 = vadd.f32 %v4563_v54, %v1450_v3 }
 0x199   : > { %v3202_v11 = vpop.f32.mrf.mxu1 }
 0x19a   : > { %4907 = vst [vmem:[#allocation5_spill] sm:$0xff] %v4632_v52  ;;  %v1455_v30 = vadd.f32 %v3201_v10, %v4486_v42  ;;  %v4635_v61 = vpop.f32.mrf.mxu0 }
 0x19b   : > { %v3203_v16 = vpop.f32.mrf.mxu1 }
 0x19c   : > { %v3204_v49 = vadd.f32 %v3203_v16, %v3202_v11  ;;  %v4637_v31 = vpop.f32.mrf.mxu0  ;;  %v4640_v59 = vadd.f32 %v4551_v25, %v1455_v30 }
 0x19d   : > { %v3205_v45 = vpop.f32.mrf.mxu1 }
 0x19e   : > { %v1458_v12 = vadd.f32 %v3204_v49, %v4489_v51  ;;  %v4643_v63 = vpop.f32.mrf.mxu0 }
 0x19f   : > { %v3206_v4 = vpop.f32.mrf.mxu1 }
 0x1a0   : > { %v3207_v54 = vadd.f32 %v3206_v4, %v3205_v45  ;;  %v4645_v3 = vpop.f32.mrf.mxu0  ;;  %v4648_v42 = vadd.f32 %v4558_v29, %v1458_v12 }
 0x1a1   : > { %v3208_v10 = vpop.f32.mrf.mxu1 }
 0x1a2   : > { %4908 = vst [vmem:[#allocation6_spill] sm:$0xff] %v4648_v42  ;;  %v1463_v11 = vadd.f32 %v3207_v54, %v4500_v40  ;;  %v4651_v16 = vpop.f32.mrf.mxu0 }
 0x1a3   : > { %v3209_v26 = vpop.f32.mrf.mxu1 }
 0x1a4   : > { %v3210_v25 = vadd.f32 %v3209_v26, %v3208_v10  ;;  %v4653_v30 = vpop.f32.mrf.mxu0  ;;  %v4656_v51 = vadd.f32 %v4570_v18, %v1463_v11 }
 0x1a5   : > { %v3211_v49 = vpop.f32.mrf.mxu1 }
 0x1a6   : > { %4909 = vst [vmem:[#allocation7_spill] sm:$0xff] %v4656_v51  ;;  %v1466_v4 = vadd.f32 %v3210_v25, %v4509_v21  ;;  %v4659_v45 = vpop.f32.mrf.mxu0 }
 0x1a7   : > { %v3212_v52 = vpop.f32.mrf.mxu1 }
 0x1a8   : > { %v3213_v29 = vadd.f32 %v3212_v52, %v3211_v49  ;;  %v4661_v12 = vpop.f32.mrf.mxu0  ;;  %v4664_v40 = vadd.f32 %v4577_v38, %v1466_v4 }
 0x1a9   : > { %v3214_v54 = vpop.f32.mrf.mxu1 }
 0x1aa   : > { %4910 = vst [vmem:[#allocation8_spill] sm:$0xff] %v4664_v40  ;;  %v1471_v26 = vadd.f32 %v3213_v29, %v4518_v34  ;;  %v4667_v10 = vpop.f32.mrf.mxu0 }
 0x1ab   : > { %v3215_v42 = vpop.f32.mrf.mxu1 }
 0x1ac   : > { %v3216_v18 = vadd.f32 %v3215_v42, %v3214_v54  ;;  %v4669_v11 = vpop.f32.mrf.mxu0  ;;  %v4672_v21 = vadd.f32 %v4565_v43, %v1471_v26 }
 0x1ad   : > { %v3217_v25 = vpop.f32.mrf.mxu1 }
 0x1ae   : > { %4911 = vst [vmem:[#allocation9_spill] sm:$0xff] %v4672_v21  ;;  %v1474_v52 = vadd.f32 %v3216_v18, %v4526_v2  ;;  %v4675_v49 = vpop.f32.mrf.mxu0 }
 0x1af   : > { %v3218_v51 = vpop.f32.mrf.mxu1 }
 0x1b0   : > { %v3219_v38 = vadd.f32 %v3218_v51, %v3217_v25  ;;  %v4677_v4 = vpop.f32.mrf.mxu0  ;;  %v4680_v34 = vadd.f32 %v4572_v19, %v1474_v52 }
 0x1b1   : > { %v3220_v29 = vpop.f32.mrf.mxu1 }
 0x1b2   : > { %4912 = vst [vmem:[#allocation10_spill] sm:$0xff] %v4680_v34  ;;  %v1479_v42 = vadd.f32 %v3219_v38, %v4498_v39  ;;  %v4683_v54 = vpop.f32.mrf.mxu0 }
 0x1b3   : > { %v3221_v40 = vpop.f32.mrf.mxu1 }
 0x1b4   : > { %v3222_v43 = vadd.f32 %v3221_v40, %v3220_v29  ;;  %v4685_v26 = vpop.f32.mrf.mxu0  ;;  %v4688_v2 = vadd.f32 %v4584_v56, %v1479_v42 }
 0x1b5   : > { %v3223_v18 = vpop.f32.mrf.mxu1 }
 0x1b6   : > { %4913 = vst [vmem:[#allocation11_spill] sm:$0xff] %v4688_v2  ;;  %v1482_v51 = vadd.f32 %v3222_v43, %v4506_v46  ;;  %v4691_v25 = vpop.f32.mrf.mxu0 }
 0x1b7   : > { %v3224_v21 = vpop.f32.mrf.mxu1 }
 0x1b8   : > { %v3225_v19 = vadd.f32 %v3224_v21, %v3223_v18  ;;  %v4693_v52 = vpop.f32.mrf.mxu0  ;;  %v4696_v39 = vadd.f32 %v4591_v37, %v1482_v51 }
 0x1b9   : > { %v3226_v38 = vpop.f32.mrf.mxu1 }
 0x1ba   : > { %4914 = vst [vmem:[#allocation12_spill] sm:$0xff] %v4696_v39  ;;  %v1487_v40 = vadd.f32 %v3225_v19, %v4494_v44  ;;  %v4699_v29 = vpop.f32.mrf.mxu0 }
 0x1bb   : > { %v3227_v34 = vpop.f32.mrf.mxu1 }
 0x1bc   : > { %v3228_v56 = vadd.f32 %v3227_v34, %v3226_v38  ;;  %v4701_v42 = vpop.f32.mrf.mxu0  ;;  %v4704_v46 = vadd.f32 %v4579_v47, %v1487_v40 }
 0x1bd   : > { %v3229_v43 = vpop.f32.mrf.mxu1 }
 0x1be   : > { %4915 = vst [vmem:[#allocation13_spill] sm:$0xff] %v4704_v46  ;;  %v1490_v21 = vadd.f32 %v3228_v56, %v4503_v5  ;;  %v4707_v18 = vpop.f32.mrf.mxu0 }
 0x1bf   : > { %v3230_v2 = vpop.f32.mrf.mxu1 }
 0x1c0   : > { %v3231_v37 = vadd.f32 %v3230_v2, %v3229_v43  ;;  %v4709_v51 = vpop.f32.mrf.mxu0  ;;  %v4712_v44 = vadd.f32 %v4586_v9, %v1490_v21 }
 0x1c1   : > { %v3232_v19 = vpop.f32.mrf.mxu1 }
 0x1c2   : > { %4916 = vst [vmem:[#allocation14_spill] sm:$0xff] %v4712_v44  ;;  %v1495_v34 = vadd.f32 %v3231_v37, %v4516_v50  ;;  %v4715_v38 = vpop.f32.mrf.mxu0 }
 0x1c3   : > { %v3233_v39 = vpop.f32.mrf.mxu1 }
 0x1c4   : > { %v3234_v47 = vadd.f32 %v3233_v39, %v3232_v19  ;;  %v4717_v40 = vpop.f32.mrf.mxu0  ;;  %v4720_v5 = vadd.f32 %v4598_v58, %v1495_v34 }
 0x1c5   : > { %v3235_v56 = vpop.f32.mrf.mxu1 }
 0x1c6   : > { %4917 = vst [vmem:[#allocation15_spill] sm:$0xff] %v4720_v5  ;;  %v1498_v2 = vadd.f32 %v3234_v47, %v4524_v7  ;;  %v4723_v43 = vpop.f32.mrf.mxu0 }
 0x1c7   : > { %v3236_v46 = vpop.f32.mrf.mxu1 }
 0x1c8   : > { %v3237_v9 = vadd.f32 %v3236_v46, %v3235_v56  ;;  %v4725_v21 = vpop.f32.mrf.mxu0  ;;  %v4728_v50 = vadd.f32 %v4605_v1, %v1498_v2  ;;  %v3289_v46 = vadd.f32 %v4627_v27, %v4621_v62  ;;  %v3292_v1 = vadd.f32 %v4635_v61, %v4629_v13 }
 0x1c9   : > { %v4730_v37 = vpop.f32.mrf.mxu1 }
 0x1ca   : > { %4918 = vst [vmem:[#allocation16_spill] sm:$0xff] %v4728_v50  ;;  %4919 = vst [vmem:[#allocation17_spill] sm:$0xff] %v4730_v37  ;;  %v4733_v39 = vadd.f32 %v3237_v9, %v4513_v35  ;;  %v4735_v19 = vpop.f32.mrf.mxu0 }
 0x1cb   : > { %v4737_v58 = vpop.f32.mrf.mxu1 }
 0x1cc   : > { %4920 = vst [vmem:[#allocation18_spill] sm:$0xff] %v4733_v39  ;;  %4921 = vst [vmem:[#allocation19_spill] sm:$0xff] %v4737_v58  ;;  %v4739_v34 = vpop.f32.mrf.mxu0  ;;  %v3286_v39 = vadd.f32 %v4619_v17, %v4613_v0 }
 0x1cd   : > { %v3515_v7 = vpop.f32.mrf.mxu1 }
 0x1ce   : > { %v4743_v47 = vpop.f32.mrf.mxu0  ;;  %v2067_v2 = vadd.f32 %v3515_v7, %v3289_v46 }
 0x1cf   : > { %v2058_v56 = vpop.f32.mrf.mxu1 }
 0x1d0   : > { %v2059_v35 = vadd.f32 %v4611_v24, %v2058_v56  ;;  %v4748_v9 = vpop.f32.mrf.mxu0  ;;  %v2187_v58 = vadd.f32 %v2067_v2, %v4535_v20  ;;  %v3301_v24 = vadd.f32 %v4659_v45, %v4653_v30  ;;  %v3304_v30 = vadd.f32 %v4667_v10, %v4661_v12 }
 0x1d1   : > { %v3516_v50 = vpop.f32.mrf.mxu1 }
 0x1d2   : > { %v2185_v5 = vadd.f32 %v2059_v35, %v4529_v53  ;;  %v2070_v44 = vadd.f32 %v3516_v50, %v3292_v1  ;;  %v4753_v62 = vpop.f32.mrf.mxu0  ;;  %v2417_v35 = vmul.f32 %v2187_v58, %v2187_v58 }
 0x1d3   : > { %v2061_v27 = vpop.f32.mrf.mxu1 }
 0x1d4   : > { %v2188_v37 = vadd.f32 %v2070_v44, %v4538_v48  ;;  %v2062_v13 = vadd.f32 %v3286_v39, %v2061_v27  ;;  %v4757_v61 = vpop.f32.mrf.mxu0  ;;  %v3295_v48 = vadd.f32 %v4643_v63, %v4637_v31  ;;  %v2415_v50 = vmul.f32 %v2185_v5, %v2185_v5 }
 0x1d5   : > { %v3519_v53 = vpop.f32.mrf.mxu1 }
 0x1d6   : > { %v2891_v0 = vpack.c.bf16 %v2188_v37, %v2187_v58  ;;  %v2186_v17 = vadd.f32 %v2062_v13, %v4532_v32  ;;  %v4769_v20 = vpop.f32.mrf.mxu0  ;;  %v2083_v45 = vadd.f32 %v3519_v53, %v3301_v24  ;;  %v3298_v32 = vadd.f32 %v4651_v16, %v4645_v3 }
 0x1d7   : > { %v2074_v44 = vpop.f32.mrf.mxu1  ;;  %v2418_v10 = vmul.f32 %v2188_v37, %v2188_v37 }
 0x1d8   : > { %2978 = vst [vmem:[%s4766_s21 + $0x8] sm:$0xff] %v2891_v0   ;;  %v2886_v39 = vpack.c.bf16 %v2186_v17, %v2185_v5  ;;  %v2377_v7 = vadd.f32 %v2186_v17, %v2185_v5  ;;  %v2416_v46 = vmul.f32 %v2186_v17, %v2186_v17  ;;  %v4776_v56 = vpop.f32.mrf.mxu0  ;;  %v2075_v1 = vadd.f32 %v3295_v48, %v2074_v44 }
 0x1d9   : > { %v3520_v2 = vpop.f32.mrf.mxu1  ;;  %v2191_v13 = vadd.f32 %v2083_v45, %v4553_v57  ;;  %v3313_v48 = vadd.f32 %v4691_v25, %v4685_v26 }
 0x1da   : > { %2887 = vst [vmem:[%s4766_s21] sm:$0xff] %v2886_v39   ;;  %v2378_v31 = vadd.f32 %v2377_v7, %v2187_v58  ;;  %v2447_v63 = vadd.f32 %v2416_v46, %v2415_v50  ;;  %v2086_v27 = vadd.f32 %v3520_v2, %v3304_v30  ;;  %v4781_v12 = vpop.f32.mrf.mxu0  ;;  %v2189_v5 = vadd.f32 %v2075_v1, %v4543_v15 }
 0x1db   : > { %v2077_v24 = vpop.f32.mrf.mxu1  ;;  %v3307_v58 = vadd.f32 %v4675_v49, %v4669_v11  ;;  %v3316_v39 = vadd.f32 %v4699_v29, %v4693_v52  ;;  %v3310_v2 = vadd.f32 %v4683_v54, %v4677_v4 }
 0x1dc   : > { %v2448_v53 = vadd.f32 %v2447_v63, %v2417_v35  ;;  %v2379_v0 = vadd.f32 %v2378_v31, %v2188_v37  ;;  %v2192_v3 = vadd.f32 %v2086_v27, %v4560_v28  ;;  %v2078_v16 = vadd.f32 %v3298_v32, %v2077_v24  ;;  %v4786_v17 = vpop.f32.mrf.mxu0 }
 0x1dd   : > { %v3523_v30 = vpop.f32.mrf.mxu1  ;;  %v2419_v57 = vmul.f32 %v2189_v5, %v2189_v5  ;;  %v2421_v31 = vmul.f32 %v2191_v13, %v2191_v13 }
 0x1de   : > { %v2380_v44 = vadd.f32 %v2379_v0, %v2189_v5  ;;  %v2449_v45 = vadd.f32 %v2448_v53, %v2418_v10  ;;  %v2901_v15 = vpack.c.bf16 %v2192_v3, %v2191_v13  ;;  %v4792_v50 = vpop.f32.mrf.mxu0  ;;  %v2190_v37 = vadd.f32 %v2078_v16, %v4548_v36 }
 0x1df   : > { %v2090_v28 = vpop.f32.mrf.mxu1  ;;  %v2099_v11 = vadd.f32 %v3523_v30, %v3313_v48  ;;  %v2422_v0 = vmul.f32 %v2192_v3, %v2192_v3 }
 0x1e0   : > { %v2450_v7 = vadd.f32 %v2449_v45, %v2419_v57  ;;  %2980 = vst [vmem:[%s4766_s21 + $0x18] sm:$0xff] %v2901_v15   ;;  %v2091_v49 = vadd.f32 %v3307_v58, %v2090_v28  ;;  %v4798_v46 = vpop.f32.mrf.mxu0  ;;  %v2896_v26 = vpack.c.bf16 %v2190_v37, %v2189_v5  ;;  %v2381_v25 = vadd.f32 %v2380_v44, %v2190_v37 }
 0x1e1   : > { %v2420_v32 = vmul.f32 %v2190_v37, %v2190_v37  ;;  %v3524_v1 = vpop.f32.mrf.mxu1  ;;  %v2195_v10 = vadd.f32 %v2099_v11, %v4581_v60  ;;  %v3319_v58 = vadd.f32 %v4707_v18, %v4701_v42 }
 0x1e2   : > { %v2102_v35 = vadd.f32 %v3524_v1, %v3316_v39  ;;  %v4802_v36 = vpop.f32.mrf.mxu0  ;;  %2979 = vst [vmem:[%s4766_s21 + $0x10] sm:$0xff] %v2896_v26   ;;  %v2382_v63 = vadd.f32 %v2381_v25, %v2191_v13  ;;  %v2193_v29 = vadd.f32 %v2091_v49, %v4567_v23  ;;  %v3325_v13 = vadd.f32 %v4723_v43, %v4717_v40 }
 0x1e3   : > { %v2451_v52 = vadd.f32 %v2450_v7, %v2420_v32  ;;  %v2093_v27 = vpop.f32.mrf.mxu1 }
 0x1e4   : > { %v2196_v5 = vadd.f32 %v2102_v35, %v4588_v22  ;;  %v2094_v24 = vadd.f32 %v3310_v2, %v2093_v27  ;;  %v4808_v53 = vpop.f32.mrf.mxu0  ;;  %v2383_v54 = vadd.f32 %v2382_v63, %v2192_v3  ;;  %v3328_v22 = vadd.f32 %v4735_v19, %v4725_v21 }
 0x1e5   : > { %v2452_v4 = vadd.f32 %v2451_v52, %v2421_v31  ;;  %v3527_v16 = vpop.f32.mrf.mxu1  ;;  %v2423_v44 = vmul.f32 %v2193_v29, %v2193_v29  ;;  %v2425_v21 = vmul.f32 %v2195_v10, %v2195_v10  ;;  %v3331_v63 = vadd.f32 %v4743_v47, %v4739_v34 }
 0x1e6   : > { %v2911_v23 = vpack.c.bf16 %v2196_v5, %v2195_v10  ;;  %v2194_v48 = vadd.f32 %v2094_v24, %v4574_v33  ;;  %v4815_v60 = vpop.f32.mrf.mxu0  ;;  %v2384_v30 = vadd.f32 %v2383_v54, %v2193_v29  ;;  %v2115_v42 = vadd.f32 %v3527_v16, %v3325_v13 }
 0x1e7   : > { %v2453_v57 = vadd.f32 %v2452_v4, %v2422_v0  ;;  %v2106_v3 = vpop.f32.mrf.mxu1  ;;  %v3322_v33 = vadd.f32 %v4715_v38, %v4709_v51  ;;  %v2426_v35 = vmul.f32 %v2196_v5, %v2196_v5  ;;  %v3337_v52 = vadd.f32 %v4769_v20, %v4757_v61 }
 0x1e8   : > { %2982 = vst [vmem:[%s4766_s21 + $0x28] sm:$0xff] %v2911_v23   ;;  %v2906_v45 = vpack.c.bf16 %v2194_v48, %v2193_v29  ;;  %v2424_v15 = vmul.f32 %v2194_v48, %v2194_v48  ;;  %v2107_v18 = vadd.f32 %v3319_v58, %v2106_v3  ;;  %v3350_v37 = vpop.f32.mrf.mxu0  ;;  %v2385_v43 = vadd.f32 %v2384_v30, %v2194_v48 }
 0x1e9   : > { %v2454_v40 = vadd.f32 %v2453_v57, %v2423_v44  ;;  %v3528_v28 = vpop.f32.mrf.mxu1  ;;  %v2199_v25 = vadd.f32 %v2115_v42, %v4608_v41  ;;  %v3334_v16 = vadd.f32 %v4753_v62, %v4748_v9  ;;  %v4922_v44 = vld [vmem:[#allocation6_spill] sm:$0xff] }
 0x1ea   : > { %2981 = vst [vmem:[%s4766_s21 + $0x20] sm:$0xff] %v2906_v45   ;;  %v2118_v39 = vadd.f32 %v3528_v28, %v3328_v22  ;;  %v3351_v7 = vpop.f32.mrf.mxu0  ;;  %v2386_v19 = vadd.f32 %v2385_v43, %v2195_v10  ;;  %v2197_v49 = vadd.f32 %v2107_v18, %v4595_v55  ;;  %v3343_v18 = vadd.f32 %v4792_v50, %v4786_v17 }
 0x1eb   : > { %v2455_v11 = vadd.f32 %v2454_v40, %v2424_v15  ;;  %v2109_v26 = vpop.f32.mrf.mxu1  ;;  %v3349_v40 = vadd.f32 %v4815_v60, %v4808_v53  ;;  %v3346_v53 = vadd.f32 %v4802_v36, %v4798_v46 }
 0x1ec   : > { %v2200_v32 = vadd.f32 %v2118_v39, %v4616_v14  ;;  %v2110_v1 = vadd.f32 %v3322_v33, %v2109_v26  ;;  %v4826_v2 = vpop.f32.mrf.mxu0  ;;  %v2387_v51 = vadd.f32 %v2386_v19, %v2196_v5  ;;  %v3340_v14 = vadd.f32 %v4781_v12, %v4776_v56 }
 0x1ed   : > { %v2456_v31 = vadd.f32 %v2455_v11, %v2425_v21  ;;  %v3531_v38 = vpop.f32.mrf.mxu1  ;;  %v2427_v10 = vmul.f32 %v2197_v49, %v2197_v49  ;;  %v2429_v12 = vmul.f32 %v2199_v25, %v2199_v25 }
 0x1ee   : > { %v2921_v55 = vpack.c.bf16 %v2200_v32, %v2199_v25  ;;  %v2198_v29 = vadd.f32 %v2110_v1, %v4602_v6  ;;  %v4833_v41 = vpop.f32.mrf.mxu0  ;;  %v2388_v27 = vadd.f32 %v2387_v51, %v2197_v49  ;;  %v2131_v34 = vadd.f32 %v3531_v38, %v3337_v52  ;;  %v4924_v38 = vld [vmem:[#allocation7_spill] sm:$0xff] }
 0x1ef   : > { %v2457_v24 = vadd.f32 %v2456_v31, %v2426_v35  ;;  %v2122_v5 = vpop.f32.mrf.mxu1  ;;  %v2430_v15 = vmul.f32 %v2200_v32, %v2200_v32  ;;  %v3355_v36 = vadd.f32 %v4833_v41, %v4826_v2 }
 0x1f0   : > { %2984 = vst [vmem:[%s4766_s21 + $0x38] sm:$0xff] %v2921_v55   ;;  %v2916_v0 = vpack.c.bf16 %v2198_v29, %v2197_v49  ;;  %v2428_v4 = vmul.f32 %v2198_v29, %v2198_v29  ;;  %v2123_v47 = vadd.f32 %v3331_v63, %v2122_v5  ;;  %v4838_v54 = vpop.f32.mrf.mxu0  ;;  %v2389_v20 = vadd.f32 %v2388_v27, %v2198_v29  ;;  %v4925_v55 = vld [vmem:[#allocation9_spill] sm:$0xff] }
 0x1f1   : > { %v2458_v61 = vadd.f32 %v2457_v24, %v2427_v10  ;;  %v3532_v6 = vpop.f32.mrf.mxu1  ;;  %v2203_v30 = vadd.f32 %v2131_v34, %v4640_v59  ;;  %v3352_v59 = vadd.f32 %v3351_v7, %v3350_v37 }
 0x1f2   : > { %2983 = vst [vmem:[%s4766_s21 + $0x30] sm:$0xff] %v2916_v0   ;;  %v2134_v58 = vadd.f32 %v3532_v6, %v3340_v14  ;;  %v4843_v56 = vpop.f32.mrf.mxu0  ;;  %v2390_v13 = vadd.f32 %v2389_v20, %v2199_v25  ;;  %v2201_v48 = vadd.f32 %v2123_v47, %v4624_v8  ;;  %v4923_v8 = vld [vmem:[#allocation5_spill] sm:$0xff]  ;;  %v4926_v14 = vld [vmem:[#allocation10_spill] sm:$0xff] }
 0x1f3   : > { %v2459_v23 = vadd.f32 %v2458_v61, %v2428_v4  ;;  %v2125_v22 = vpop.f32.mrf.mxu1  ;;  %v2433_v37 = vmul.f32 %v2203_v30, %v2203_v30  ;;  %v4927_v61 = vld [vmem:[#allocation8_spill] sm:$0xff]  ;;  %v3358_v41 = vadd.f32 %v4843_v56, %v4838_v54 }
 0x1f4   : > { %v2204_v57 = vadd.f32 %v2134_v58, %v4922_v44  ;;  %v2126_v3 = vadd.f32 %v3334_v16, %v2125_v22  ;;  %v3359_v45 = vpop.f32.mrf.mxu0  ;;  %v2391_v9 = vadd.f32 %v2390_v13, %v2200_v32  ;;  %v2431_v21 = vmul.f32 %v2201_v48, %v2201_v48 }
 0x1f5   : > { %v2460_v42 = vadd.f32 %v2459_v23, %v2429_v12  ;;  %v3535_v62 = vpop.f32.mrf.mxu1 }
 0x1f6   : > { %v2931_v43 = vpack.c.bf16 %v2204_v57, %v2203_v30  ;;  %v2202_v28 = vadd.f32 %v2126_v3, %v4923_v8  ;;  %v3360_v33 = vpop.f32.mrf.mxu0  ;;  %v2392_v39 = vadd.f32 %v2391_v9, %v2201_v48  ;;  %v2147_v25 = vadd.f32 %v3535_v62, %v3349_v40  ;;  %v4928_v40 = vld [vmem:[#allocation11_spill] sm:$0xff] }
 0x1f7   : > { %v2461_v19 = vadd.f32 %v2460_v42, %v2430_v15  ;;  %v2138_v11 = vpop.f32.mrf.mxu1  ;;  %v2434_v5 = vmul.f32 %v2204_v57, %v2204_v57  ;;  %v3361_v34 = vadd.f32 %v3360_v33, %v3359_v45  ;;  %v4930_v33 = vld [vmem:[#allocation19_spill] sm:$0xff] }
 0x1f8   : > { %2986 = vst [vmem:[%s4766_s21 + $0x48] sm:$0xff] %v2931_v43   ;;  %v2926_v49 = vpack.c.bf16 %v2202_v28, %v2201_v48  ;;  %v2432_v26 = vmul.f32 %v2202_v28, %v2202_v28  ;;  %v2139_v32 = vadd.f32 %v3343_v18, %v2138_v11  ;;  %v3362_v1 = vpop.f32.mrf.mxu0  ;;  %v2393_v50 = vadd.f32 %v2392_v39, %v2202_v28  ;;  %v4929_v28 = vld [vmem:[#allocation17_spill] sm:$0xff] }
 0x1f9   : > { %v2462_v17 = vadd.f32 %v2461_v19, %v2431_v21  ;;  %v3536_v35 = vpop.f32.mrf.mxu1  ;;  %v2207_v29 = vadd.f32 %v2147_v25, %v4925_v55  ;;  %v4931_v39 = vld [vmem:[#allocation13_spill] sm:$0xff]  ;;  %v4932_v19 = vld [vmem:[#allocation14_spill] sm:$0xff] }
 0x1fa   : > { %2985 = vst [vmem:[%s4766_s21 + $0x40] sm:$0xff] %v2926_v49   ;;  %v2150_v60 = vadd.f32 %v3536_v35, %v3352_v59  ;;  %v3363_v31 = vpop.f32.mrf.mxu0  ;;  %v2394_v7 = vadd.f32 %v2393_v50, %v2203_v30  ;;  %v2205_v63 = vadd.f32 %v2139_v32, %v4924_v38  ;;  %v3240_v59 = vadd.f32 %v4930_v33, %v4929_v28  ;;  %v4933_v50 = vld [vmem:[#allocation12_spill] sm:$0xff]  ;;  %v4934_v38 = vld [vmem:[#allocation2_spill] sm:$0xff] }
 0x1fb   : > { %v2463_v51 = vadd.f32 %v2462_v17, %v2432_v26  ;;  %v2141_v52 = vpop.f32.mrf.mxu1  ;;  %v3364_v13 = vadd.f32 %v3363_v31, %v3362_v1  ;;  %v2437_v9 = vmul.f32 %v2207_v29, %v2207_v29 }
 0x1fc   : > { %v2208_v27 = vadd.f32 %v2150_v60, %v4926_v14  ;;  %v2142_v10 = vadd.f32 %v3346_v53, %v2141_v52  ;;  %v3365_v24 = vpop.f32.mrf.mxu0  ;;  %v2395_v4 = vadd.f32 %v2394_v7, %v2204_v57  ;;  %v2435_v58 = vmul.f32 %v2205_v63, %v2205_v63 }
 0x1fd   : > { %v2464_v0 = vadd.f32 %v2463_v51, %v2433_v37  ;;  %v3539_v46 = vpop.f32.mrf.mxu1 }
 0x1fe   : > { %v2941_v47 = vpack.c.bf16 %v2208_v27, %v2207_v29  ;;  %v2206_v20 = vadd.f32 %v2142_v10, %v4927_v61  ;;  %v3366_v6 = vpop.f32.mrf.mxu0  ;;  %v2396_v16 = vadd.f32 %v2395_v4, %v2205_v63  ;;  %v2163_v30 = vadd.f32 %v3539_v46, %v3361_v34 }
 0x1ff   : > { %v2465_v12 = vadd.f32 %v2464_v0, %v2434_v5  ;;  %v2154_v23 = vpop.f32.mrf.mxu1  ;;  %v2438_v54 = vmul.f32 %v2208_v27, %v2208_v27  ;;  %v3367_v1 = vadd.f32 %v3366_v6, %v3365_v24 }
 0x200   : > { %2988 = vst [vmem:[%s4766_s21 + $0x58] sm:$0xff] %v2941_v47   ;;  %v2936_v48 = vpack.c.bf16 %v2206_v20, %v2205_v63  ;;  %v2436_v22 = vmul.f32 %v2206_v20, %v2206_v20  ;;  %v2155_v44 = vadd.f32 %v3355_v36, %v2154_v23  ;;  %v3368_v57 = vpop.f32.mrf.mxu0  ;;  %v2397_v15 = vadd.f32 %v2396_v16, %v2206_v20  ;;  %v4935_v47 = vld [vmem:[#allocation15_spill] sm:$0xff]  ;;  %v4936_v16 = vld [vmem:[#allocation18_spill] sm:$0xff] }
 0x201   : > { %v2466_v3 = vadd.f32 %v2465_v12, %v2435_v58  ;;  %v3540_v2 = vpop.f32.mrf.mxu1  ;;  %v2211_v21 = vadd.f32 %v2163_v30, %v4931_v39  ;;  %v1506_v63 = vadd.f32 %v3240_v59, %v4934_v38  ;;  %v4937_v58 = vld [vmem:[#allocation3_spill] sm:$0xff] }
 0x202   : > { %2987 = vst [vmem:[%s4766_s21 + $0x50] sm:$0xff] %v2936_v48   ;;  %v2166_v45 = vadd.f32 %v3540_v2, %v3364_v13  ;;  %v3369_v42 = vpop.f32.mrf.mxu0  ;;  %v2398_v62 = vadd.f32 %v2397_v15, %v2207_v29  ;;  %v2209_v43 = vadd.f32 %v2155_v44, %v4928_v40  ;;  %v1664_v12 = vadd.f32 %v4937_v58, %v4936_v16  ;;  %v4938_v13 = vld [vmem:[#allocation4_spill] sm:$0xff] }
 0x203   : > { %v2467_v18 = vadd.f32 %v2466_v3, %v2436_v22  ;;  %v2157_v8 = vpop.f32.mrf.mxu1  ;;  %v2441_v5 = vmul.f32 %v2211_v21, %v2211_v21  ;;  %v3370_v0 = vadd.f32 %v3369_v42, %v3368_v57  ;;  %v1667_v23 = vadd.f32 %v4938_v13, %v1506_v63  ;;  %v4939_v15 = vld [vmem:[#allocation16_spill] sm:$0xff] }
 0x204   : > { %v2212_v11 = vadd.f32 %v2166_v45, %v4932_v19  ;;  %v2158_v49 = vadd.f32 %v3358_v41, %v2157_v8  ;;  %v3371_v26 = vpop.f32.mrf.mxu0  ;;  %v2399_v25 = vadd.f32 %v2398_v62, %v2208_v27  ;;  %v2439_v31 = vmul.f32 %v2209_v43, %v2209_v43 }
 0x205   : > { %v2468_v56 = vadd.f32 %v2467_v18, %v2437_v9  ;;  %v3543_v32 = vpop.f32.mrf.mxu1 }
 0x206   : > { %v2951_v17 = vpack.c.bf16 %v2212_v11, %v2211_v21  ;;  %v2210_v35 = vadd.f32 %v2158_v49, %v4933_v50  ;;  %v3372_v53 = vpop.f32.mrf.mxu0  ;;  %v2400_v60 = vadd.f32 %v2399_v25, %v2209_v43  ;;  %v2442_v22 = vmul.f32 %v2212_v11, %v2212_v11 }
 0x207   : > { %v2469_v37 = vadd.f32 %v2468_v56, %v2438_v54  ;;  %v3373_v7 = vadd.f32 %v3372_v53, %v3371_v26  ;;  %v2170_v51 = vpop.f32.mrf.mxu1 }
 0x208   : > { %2990 = vst [vmem:[%s4766_s21 + $0x68] sm:$0xff] %v2951_v17   ;;  %v2946_v52 = vpack.c.bf16 %v2210_v35, %v2209_v43  ;;  %v2440_v55 = vmul.f32 %v2210_v35, %v2210_v35  ;;  %v2171_v29 = vadd.f32 %v3367_v1, %v2170_v51  ;;  %v3374_v14 = vpop.f32.mrf.mxu0  ;;  %v2401_v10 = vadd.f32 %v2400_v60, %v2210_v35 }
 0x209   : > { %v2470_v27 = vadd.f32 %v2469_v37, %v2439_v31  ;;  %v3544_v24 = vpop.f32.mrf.mxu1  ;;  %v2179_v4 = vadd.f32 %v3543_v32, %v3373_v7 }
 0x20a   : > { %2989 = vst [vmem:[%s4766_s21 + $0x60] sm:$0xff] %v2946_v52   ;;  %v3375_v46 = vpop.f32.mrf.mxu0  ;;  %v2402_v36 = vadd.f32 %v2401_v10, %v2211_v21  ;;  %v2213_v61 = vadd.f32 %v2171_v29, %v4935_v47 }
 0x20b   : > { %v2471_v34 = vadd.f32 %v2470_v27, %v2440_v55  ;;  %v3376_v20 = vadd.f32 %v3375_v46, %v3374_v14  ;;  %v2173_v6 = vpop.f32.mrf.mxu1  ;;  %v2215_v3 = vadd.f32 %v2179_v4, %v1664_v12 }
 0x20c   : > { %v2174_v48 = vadd.f32 %v3370_v0, %v2173_v6  ;;  %v2403_v44 = vadd.f32 %v2402_v36, %v2212_v11  ;;  %v2443_v45 = vmul.f32 %v2213_v61, %v2213_v61 }
 0x20d   : > { %v2472_v30 = vadd.f32 %v2471_v34, %v2441_v5  ;;  %v2182_v57 = vadd.f32 %v3544_v24, %v3376_v20  ;;  %v2445_v28 = vmul.f32 %v2215_v3, %v2215_v3 }
 0x20e   : > { %v2214_v2 = vadd.f32 %v2174_v48, %v4939_v15  ;;  %v2404_v41 = vadd.f32 %v2403_v44, %v2213_v61 }
 0x20f   : > { %v2473_v42 = vadd.f32 %v2472_v30, %v2442_v22  ;;  %v2216_v9 = vadd.f32 %v2182_v57, %v1667_v23 }
 0x210   : > { %v2956_v62 = vpack.c.bf16 %v2214_v2, %v2213_v61  ;;  %v2444_v18 = vmul.f32 %v2214_v2, %v2214_v2  ;;  %v2405_v8 = vadd.f32 %v2404_v41, %v2214_v2 }
 0x211   : > { %v2474_v40 = vadd.f32 %v2473_v42, %v2443_v45  ;;  %v2961_v43 = vpack.c.bf16 %v2216_v9, %v2215_v3  ;;  %v2446_v39 = vmul.f32 %v2216_v9, %v2216_v9 }
 0x212   : > { %2991 = vst [vmem:[%s4766_s21 + $0x70] sm:$0xff] %v2956_v62   ;;  %v2406_v33 = vadd.f32 %v2405_v8, %v2215_v3 }
 0x213   : > { %2992 = vst [vmem:[%s4766_s21 + $0x78] sm:$0xff] %v2961_v43   ;;  %v2475_v59 = vadd.f32 %v2474_v40, %v2444_v18 }
 0x214   : > { %v2407_v21 = vadd.f32 %v2406_v33, %v2216_v9 }
 0x215   : > { %v2476_v19 = vadd.f32 %v2475_v59, %v2445_v28 }
 0x216   : > { %v2408_v11 = vrot.slane %v2407_v21, 4 }
 0x217   : > { %v2477_v49 = vadd.f32 %v2476_v19, %v2446_v39 }
 0x218   : > { %v2409_v26 = vadd.f32 %v2408_v11, %v2407_v21 }
 0x219   : > { %v2478_v54 = vrot.slane %v2477_v49, 4 }
 0x21a   : > { %v2410_v56 = vrot.slane %v2409_v26, 2 }
 0x21b   : > { %v2479_v25 = vadd.f32 %v2478_v54, %v2477_v49 }
 0x21c   : > { %v2411_v32 = vadd.f32 %v2410_v56, %v2409_v26 }
 0x21d   : > { %v2480_v1 = vrot.slane %v2479_v25, 2 }
 0x21e   : > { %v2412_v17 = vrot.slane %v2411_v32, 1 }
 0x21f   : > { %v2481_v50 = vadd.f32 %v2480_v1, %v2479_v25 }
 0x220   : > { %v2413_v35 = vadd.f32 %v2412_v17, %v2411_v32 }
 0x221   : > { %v2482_v53 = vrot.slane %v2481_v50, 1 }
 0x222   : > { %2414 = vst [vmem:[%s235_s24] sm:$0x1] %v2413_v35 }
 0x223   : > { %v2483_v60 = vadd.f32 %v2482_v53, %v2481_v50 }
 0x225   : > { %2484 = vst [vmem:[%s235_s24 + $0x1] sm:$0x1] %v2483_v60 }
 0x226 PF: > { %s16_s18 = sadd.s32 1, %s3648_s18  }
 0x227   : > { %p13_p4 = scmp.ge.s32.totalorder %s16_s18, 4  }
 0x229   :  { %15 = sbr.rel (!%p13_p4) target bundleno = 1 (0x1), region = 80 }

</bundles_post_ra>
